<compile_context>
chip_gen: v7x
topology: tpu7x:2x2x1
jax: 0.10.0
libtpu: 0.0.40
codegen_flags: <defaults>
</compile_context>

<pallas_src>
import jax
import jax.numpy as jnp
from jax.experimental import pallas as pl
from jax.experimental.pallas import tpu as pltpu

F_IN = 121           # raw node-feature width of the torch module
F_PAD = 128          # zero-padded, tile-aligned K for the first matmul
F_HID = 64
GRP = 128            # each of [W_msg | W_self | W_gate] padded to a 128-lane group
W_COLS = 3 * GRP     # fused weight width
MXU_ROWS = 256       # target M rows per grid step (256-wide MXU on v6e/v7x,
                     # clean 2x the 128-wide v5e tile)


def _fused_kernel(a_ref, x_ref, w1_ref, w2_ref, w3_ref, wlin_ref, blin_ref,
                  o_ref):
    tb, n, f_in = x_ref.shape
    a = a_ref[...]                                   # (TB, N, N)    bf16
    x = x_ref[...].reshape(tb * n, f_in)             # (TB*N, F_PAD) bf16

    def gated_conv(h_bf, w_ref):
        # h_bf: (TB*N, fin) bf16.  w_ref: (fin, 384) bf16 with column groups
        # [W_msg | 0 | W_self | 0 | W_gate | 0]; every group starts on a
        # 128-lane boundary so the slices below need no lane relayout.
        p = jnp.dot(h_bf, w_ref[...], preferred_element_type=jnp.float32)
        m_pre = p[:, 0:F_HID]
        s = p[:, GRP:GRP + F_HID]
        g = p[:, 2 * GRP:2 * GRP + F_HID]
        # Aggregate neighbor messages: batched (N,N)@(N,64) per graph.
        m = jnp.einsum(
            "bij,bjf->bif", a,
            m_pre.astype(jnp.bfloat16).reshape(tb, n, F_HID),
            preferred_element_type=jnp.float32).reshape(tb * n, F_HID)
        z = jax.nn.sigmoid(g)
        return s + z * (m - s)                       # == z*m + (1-z)*s

    x1 = jnp.maximum(gated_conv(x, w1_ref), 0.0)
    x2 = jnp.maximum(gated_conv(x1.astype(jnp.bfloat16), w2_ref), 0.0) + x1
    x3 = jnp.maximum(gated_conv(x2.astype(jnp.bfloat16), w3_ref), 0.0) + x2

    # GlobalSumPooling over nodes, then Linear(64 -> 1): reduce nodes first,
    # then one (TB,64)*(1,64) multiply + lane reduction.
    pooled = jnp.sum(x3.reshape(tb, n, F_HID), axis=1)        # (TB, 64) f32
    per_graph = jnp.sum(pooled * wlin_ref[...], axis=-1)      # (TB,)
    o_ref[...] = (per_graph + blin_ref[0]).reshape(1, 1, tb)


def prepare_params(params):
    """One-time packing of params into kernel operands (hoisted out of the
    per-step forward so the jitted forward is just the pallas_call)."""
    def fuse(layer, fin_pad):
        fin = layer["w_msg"].shape[0]
        w = jnp.zeros((fin_pad, W_COLS), jnp.float32)
        w = w.at[:fin, 0:F_HID].set(layer["w_msg"])
        w = w.at[:fin, GRP:GRP + F_HID].set(layer["w_self"])
        w = w.at[:fin, 2 * GRP:2 * GRP + F_HID].set(layer["w_gate"])
        return w.astype(jnp.bfloat16)

    w1 = fuse(params[0], F_PAD)     # rows 121..127 stay zero (matches padded x)
    w2 = fuse(params[1], F_HID)
    w3 = fuse(params[2], F_HID)
    w_lin = params[3]["w"].reshape(1, F_HID).astype(jnp.float32)
    b_lin = params[3]["b"].reshape(1).astype(jnp.float32)
    return w1, w2, w3, w_lin, b_lin


@jax.jit
def _forward_jit(prepared, A, x):
    w1, w2, w3, w_lin, b_lin = prepared
    B, N, fin = x.shape

    if fin < F_PAD:
        x = jnp.pad(x, ((0, 0), (0, 0), (0, F_PAD - fin)))

    # Batch TB graphs per grid step so the MXU M dimension (TB*N) is filled.
    tb = max(1, min(B, MXU_ROWS // N)) if N <= MXU_ROWS else 1
    pad_b = (-B) % tb
    if pad_b:
        A = jnp.pad(A, ((0, pad_b), (0, 0), (0, 0)))
        x = jnp.pad(x, ((0, pad_b), (0, 0), (0, 0)))
    steps = (B + pad_b) // tb

    a_bf = A.astype(jnp.bfloat16)
    x_bf = x.astype(jnp.bfloat16)

    # TODO(synk): for large N, add a row-tiled "arbitrary" grid axis for A
    # (block (TB, TN, N) + VMEM accumulator) so the dense adjacency block
    # stays within v7x's 64 MiB VMEM.
    out = pl.pallas_call(
        _fused_kernel,
        out_shape=jax.ShapeDtypeStruct((steps, 1, tb), jnp.float32),
        grid_spec=pltpu.PrefetchScalarGridSpec(
            num_scalar_prefetch=0,
            grid=(steps,),
            in_specs=[
                pl.BlockSpec((tb, N, N), lambda b: (b, 0, 0)),        # A
                pl.BlockSpec((tb, N, F_PAD), lambda b: (b, 0, 0)),    # x
                pl.BlockSpec((F_PAD, W_COLS), lambda b: (0, 0)),      # W1 fused
                pl.BlockSpec((F_HID, W_COLS), lambda b: (0, 0)),      # W2 fused
                pl.BlockSpec((F_HID, W_COLS), lambda b: (0, 0)),      # W3 fused
                pl.BlockSpec((1, F_HID), lambda b: (0, 0)),           # w_lin
                pl.BlockSpec(memory_space=pltpu.MemorySpace.SMEM),    # b_lin
            ],
            out_specs=pl.BlockSpec((1, 1, tb), lambda b: (b, 0, 0)),
        ),
        # On v7x, switch dimension_semantics to (pltpu.CORE_PARALLEL,) if
        # profiling shows one TensorCore idle; "parallel" keeps this portable
        # across v5e/v6e/v7x.
        compiler_params=pltpu.CompilerParams(
            dimension_semantics=("parallel",),
            vmem_limit_bytes=32 * 1024 * 1024),
    )(a_bf, x_bf, w1, w2, w3, w_lin, b_lin)

    return out.reshape(steps * tb, 1)[:B]


def toy_gated_forward(prepared, A, x, masks=None):
    del masks  # unused by the torch module's forward pass
    return _forward_jit(prepared, A, x)


def init_params(key):
    """Deterministic PyTorch-Linear-style uniform init."""
    def lin(k, fan_in, shape):
        bound = 1.0 / jnp.sqrt(jnp.float32(fan_in))
        return jax.random.uniform(k, shape, jnp.float32, -bound, bound)

    dims = [(F_IN, F_HID), (F_HID, F_HID), (F_HID, F_HID)]   # gc1, gc2, gc3
    keys = jax.random.split(key, 3 * len(dims) + 2)
    params = []
    for i, (fin, fout) in enumerate(dims):
        params.append(dict(
            w_msg=lin(keys[3 * i + 0], fin, (fin, fout)),
            w_self=lin(keys[3 * i + 1], fin, (fin, fout)),
            w_gate=lin(keys[3 * i + 2], fin, (fin, fout)),
        ))
    params.append(dict(
        w=lin(keys[-2], F_HID, (F_HID, 1)),
        b=lin(keys[-1], F_HID, (1,)),
    ))
    return params


# ----- pure-JAX reference (mirrors the kernel's bf16 input/weight casts with
# f32 accumulation, so the check isolates the Pallas implementation) ---------
def _gated_conv_ref(a_bf, h, layer):
    hb = h.astype(jnp.bfloat16)
    m_pre = jnp.einsum("bnk,kf->bnf", hb, layer["w_msg"].astype(jnp.bfloat16),
                       preferred_element_type=jnp.float32)
    s = jnp.einsum("bnk,kf->bnf", hb, layer["w_self"].astype(jnp.bfloat16),
                   preferred_element_type=jnp.float32)
    g = jnp.einsum("bnk,kf->bnf", hb, layer["w_gate"].astype(jnp.bfloat16),
                   preferred_element_type=jnp.float32)
    m = jnp.einsum("bij,bjf->bif", a_bf, m_pre.astype(jnp.bfloat16),
                   preferred_element_type=jnp.float32)
    z = jax.nn.sigmoid(g)
    return s + z * (m - s)


def _forward_ref(params, A, x):
    a_bf = A.astype(jnp.bfloat16)
    x1 = jnp.maximum(_gated_conv_ref(a_bf, x, params[0]), 0.0)
    x2 = jnp.maximum(_gated_conv_ref(a_bf, x1, params[1]), 0.0) + x1
    x3 = jnp.maximum(_gated_conv_ref(a_bf, x2, params[2]), 0.0) + x2
    pooled = jnp.sum(x3, axis=1)                        # (B, F_HID)
    return pooled @ params[3]["w"] + params[3]["b"]     # (B, 1)


if __name__ == "__main__":
    key = jax.random.PRNGKey(0)
    k_A, k_x, k_p = jax.random.split(key, 3)

    B, N = 32, 16   # 32 small graphs -> TB=16 graphs per step, grid=(2,)

    # Random symmetric adjacency with self loops, row-normalized.
    raw = (jax.random.uniform(k_A, (B, N, N)) < 0.25).astype(jnp.float32)
    adj = jnp.clip(raw + jnp.swapaxes(raw, 1, 2), 0.0, 1.0)
    adj = adj + jnp.eye(N, dtype=jnp.float32)[None]
    deg = jnp.sum(adj, axis=-1, keepdims=True)
    A = adj / deg

    x = jax.random.normal(k_x, (B, N, F_IN), dtype=jnp.float32)
    masks = jnp.ones((B, N), dtype=jnp.float32)   # unused by forward

    params = init_params(k_p)
    prepared = prepare_params(params)

    out = toy_gated_forward(prepared, A, x, masks)
    out = jax.block_until_ready(out)
    assert out.shape == (B, 1), out.shape

    ref = jax.block_until_ready(_forward_ref(params, A, x))
    assert jnp.allclose(out, ref, atol=1e-2, rtol=1e-2), (
        float(jnp.max(jnp.abs(out - ref))))

    print("KERNEL_OK")
</pallas_src>

<mosaic_0001>
module attributes {stable_mosaic.version = 11 : i64} {
  func.func @_fused_kernel(%arg0: i32, %arg1: memref<16x16x16xbf16, #tpu.memory_space<vmem>>, %arg2: memref<16x16x128xbf16, #tpu.memory_space<vmem>>, %arg3: memref<128x384xbf16, #tpu.memory_space<vmem>>, %arg4: memref<64x384xbf16, #tpu.memory_space<vmem>>, %arg5: memref<64x384xbf16, #tpu.memory_space<vmem>>, %arg6: memref<1x64xf32, #tpu.memory_space<vmem>>, %arg7: memref<1xf32, #tpu.memory_space<smem>>, %arg8: memref<1x1x16xf32, #tpu.memory_space<vmem>>) attributes {dimension_semantics = [#tpu.dimension_semantics<parallel>], iteration_bounds = array<i64: 2>, scalar_prefetch = 0 : i64, scratch_operands = 0 : i64, tpu.core_type = #tpu.core_type<tc>, window_params = [{transform_indices = @transform_0, window_bounds = array<i64: 16, 16, 16>}, {transform_indices = @transform_1, window_bounds = array<i64: 16, 16, 128>}, {pipeline_mode = #tpu.pipeline_mode<synchronous>, transform_indices = @transform_2, window_bounds = array<i64: 128, 384>}, {pipeline_mode = #tpu.pipeline_mode<synchronous>, transform_indices = @transform_3, window_bounds = array<i64: 64, 384>}, {pipeline_mode = #tpu.pipeline_mode<synchronous>, transform_indices = @transform_4, window_bounds = array<i64: 64, 384>}, {pipeline_mode = #tpu.pipeline_mode<synchronous>, transform_indices = @transform_5, window_bounds = array<i64: 1, 64>}, {transform_indices = @transform_6, window_bounds = array<i64: 1>}, {transform_indices = @transform_7, window_bounds = array<i64: 1, 1, 16>}]} {
    %c0 = arith.constant 0 : index
    %c0_0 = arith.constant 0 : index
    %c0_1 = arith.constant 0 : index
    %0 = vector.load %arg1[%c0, %c0_0, %c0_1] : memref<16x16x16xbf16, #tpu.memory_space<vmem>>, vector<16x16x16xbf16>
    %c0_2 = arith.constant 0 : index
    %c0_3 = arith.constant 0 : index
    %c0_4 = arith.constant 0 : index
    %1 = vector.load %arg2[%c0_2, %c0_3, %c0_4] : memref<16x16x128xbf16, #tpu.memory_space<vmem>>, vector<16x16x128xbf16>
    %2 = vector.shape_cast %1 : vector<16x16x128xbf16> to vector<256x128xbf16>
    %c0_5 = arith.constant 0 : index
    %c0_6 = arith.constant 0 : index
    %3 = vector.load %arg3[%c0_5, %c0_6] : memref<128x384xbf16, #tpu.memory_space<vmem>>, vector<128x384xbf16>
    %cst = arith.constant dense<0.000000e+00> : vector<256x384xf32>
    %4 = tpu.matmul %2, %3, %cst {dimension_numbers = #tpu.dot_dimension_numbers<[1], [0], [0], [1], [0, 0, 1, 1], [], []>} : vector<256x128xbf16>, vector<128x384xbf16>, vector<256x384xf32> -> vector<256x384xf32>
    %5 = vector.extract_strided_slice %4 {offsets = [0, 0], sizes = [256, 64], strides = [1, 1]} : vector<256x384xf32> to vector<256x64xf32>
    %6 = vector.extract_strided_slice %4 {offsets = [0, 128], sizes = [256, 64], strides = [1, 1]} : vector<256x384xf32> to vector<256x64xf32>
    %7 = vector.extract_strided_slice %4 {offsets = [0, 256], sizes = [256, 64], strides = [1, 1]} : vector<256x384xf32> to vector<256x64xf32>
    %8 = arith.truncf %5 : vector<256x64xf32> to vector<256x64xbf16>
    %9 = vector.shape_cast %8 : vector<256x64xbf16> to vector<16x16x64xbf16>
    "tpu.trace_start"() <{level = 10 : i32, message = "bij,bjf->bif"}> : () -> ()
    %cst_7 = arith.constant dense<0.000000e+00> : vector<16x16x64xf32>
    %10 = tpu.matmul %0, %9, %cst_7 {dimension_numbers = #tpu.dot_dimension_numbers<[2], [1], [1], [2], [0, 0, 0, 1, 1, 2], [0], [0]>} : vector<16x16x16xbf16>, vector<16x16x64xbf16>, vector<16x16x64xf32> -> vector<16x16x64xf32>
    "tpu.trace_stop"() : () -> ()
    %11 = vector.shape_cast %10 : vector<16x16x64xf32> to vector<256x64xf32>
    %12 = arith.negf %7 : vector<256x64xf32>
    %13 = math.exp %12 : vector<256x64xf32>
    %cst_8 = arith.constant 1.000000e+00 : f32
    %14 = vector.broadcast %cst_8 : f32 to vector<256x64xf32>
    %15 = arith.addf %14, %13 : vector<256x64xf32>
    %16 = arith.divf %14, %15 : vector<256x64xf32>
    %17 = arith.subf %11, %6 : vector<256x64xf32>
    %18 = arith.mulf %16, %17 : vector<256x64xf32>
    %19 = arith.addf %6, %18 : vector<256x64xf32>
    %cst_9 = arith.constant 0.000000e+00 : f32
    %20 = vector.broadcast %cst_9 : f32 to vector<256x64xf32>
    %21 = arith.maximumf %19, %20 : vector<256x64xf32>
    %22 = arith.truncf %21 : vector<256x64xf32> to vector<256x64xbf16>
    %c0_10 = arith.constant 0 : index
    %c0_11 = arith.constant 0 : index
    %23 = vector.load %arg4[%c0_10, %c0_11] : memref<64x384xbf16, #tpu.memory_space<vmem>>, vector<64x384xbf16>
    %cst_12 = arith.constant dense<0.000000e+00> : vector<256x384xf32>
    %24 = tpu.matmul %22, %23, %cst_12 {dimension_numbers = #tpu.dot_dimension_numbers<[1], [0], [0], [1], [0, 0, 1, 1], [], []>} : vector<256x64xbf16>, vector<64x384xbf16>, vector<256x384xf32> -> vector<256x384xf32>
    %25 = vector.extract_strided_slice %24 {offsets = [0, 0], sizes = [256, 64], strides = [1, 1]} : vector<256x384xf32> to vector<256x64xf32>
    %26 = vector.extract_strided_slice %24 {offsets = [0, 128], sizes = [256, 64], strides = [1, 1]} : vector<256x384xf32> to vector<256x64xf32>
    %27 = vector.extract_strided_slice %24 {offsets = [0, 256], sizes = [256, 64], strides = [1, 1]} : vector<256x384xf32> to vector<256x64xf32>
    %28 = arith.truncf %25 : vector<256x64xf32> to vector<256x64xbf16>
    %29 = vector.shape_cast %28 : vector<256x64xbf16> to vector<16x16x64xbf16>
    "tpu.trace_start"() <{level = 10 : i32, message = "bij,bjf->bif"}> : () -> ()
    %cst_13 = arith.constant dense<0.000000e+00> : vector<16x16x64xf32>
    %30 = tpu.matmul %0, %29, %cst_13 {dimension_numbers = #tpu.dot_dimension_numbers<[2], [1], [1], [2], [0, 0, 0, 1, 1, 2], [0], [0]>} : vector<16x16x16xbf16>, vector<16x16x64xbf16>, vector<16x16x64xf32> -> vector<16x16x64xf32>
    "tpu.trace_stop"() : () -> ()
    %31 = vector.shape_cast %30 : vector<16x16x64xf32> to vector<256x64xf32>
    %32 = arith.negf %27 : vector<256x64xf32>
    %33 = math.exp %32 : vector<256x64xf32>
    %cst_14 = arith.constant 1.000000e+00 : f32
    %34 = vector.broadcast %cst_14 : f32 to vector<256x64xf32>
    %35 = arith.addf %34, %33 : vector<256x64xf32>
    %36 = arith.divf %34, %35 : vector<256x64xf32>
    %37 = arith.subf %31, %26 : vector<256x64xf32>
    %38 = arith.mulf %36, %37 : vector<256x64xf32>
    %39 = arith.addf %26, %38 : vector<256x64xf32>
    %cst_15 = arith.constant 0.000000e+00 : f32
    %40 = vector.broadcast %cst_15 : f32 to vector<256x64xf32>
    %41 = arith.maximumf %39, %40 : vector<256x64xf32>
    %42 = arith.addf %41, %21 : vector<256x64xf32>
    %43 = arith.truncf %42 : vector<256x64xf32> to vector<256x64xbf16>
    %c0_16 = arith.constant 0 : index
    %c0_17 = arith.constant 0 : index
    %44 = vector.load %arg5[%c0_16, %c0_17] : memref<64x384xbf16, #tpu.memory_space<vmem>>, vector<64x384xbf16>
    %cst_18 = arith.constant dense<0.000000e+00> : vector<256x384xf32>
    %45 = tpu.matmul %43, %44, %cst_18 {dimension_numbers = #tpu.dot_dimension_numbers<[1], [0], [0], [1], [0, 0, 1, 1], [], []>} : vector<256x64xbf16>, vector<64x384xbf16>, vector<256x384xf32> -> vector<256x384xf32>
    %46 = vector.extract_strided_slice %45 {offsets = [0, 0], sizes = [256, 64], strides = [1, 1]} : vector<256x384xf32> to vector<256x64xf32>
    %47 = vector.extract_strided_slice %45 {offsets = [0, 128], sizes = [256, 64], strides = [1, 1]} : vector<256x384xf32> to vector<256x64xf32>
    %48 = vector.extract_strided_slice %45 {offsets = [0, 256], sizes = [256, 64], strides = [1, 1]} : vector<256x384xf32> to vector<256x64xf32>
    %49 = arith.truncf %46 : vector<256x64xf32> to vector<256x64xbf16>
    %50 = vector.shape_cast %49 : vector<256x64xbf16> to vector<16x16x64xbf16>
    "tpu.trace_start"() <{level = 10 : i32, message = "bij,bjf->bif"}> : () -> ()
    %cst_19 = arith.constant dense<0.000000e+00> : vector<16x16x64xf32>
    %51 = tpu.matmul %0, %50, %cst_19 {dimension_numbers = #tpu.dot_dimension_numbers<[2], [1], [1], [2], [0, 0, 0, 1, 1, 2], [0], [0]>} : vector<16x16x16xbf16>, vector<16x16x64xbf16>, vector<16x16x64xf32> -> vector<16x16x64xf32>
    "tpu.trace_stop"() : () -> ()
    %52 = vector.shape_cast %51 : vector<16x16x64xf32> to vector<256x64xf32>
    %53 = arith.negf %48 : vector<256x64xf32>
    %54 = math.exp %53 : vector<256x64xf32>
    %cst_20 = arith.constant 1.000000e+00 : f32
    %55 = vector.broadcast %cst_20 : f32 to vector<256x64xf32>
    %56 = arith.addf %55, %54 : vector<256x64xf32>
    %57 = arith.divf %55, %56 : vector<256x64xf32>
    %58 = arith.subf %52, %47 : vector<256x64xf32>
    %59 = arith.mulf %57, %58 : vector<256x64xf32>
    %60 = arith.addf %47, %59 : vector<256x64xf32>
    %cst_21 = arith.constant 0.000000e+00 : f32
    %61 = vector.broadcast %cst_21 : f32 to vector<256x64xf32>
    %62 = arith.maximumf %60, %61 : vector<256x64xf32>
    %63 = arith.addf %62, %42 : vector<256x64xf32>
    %64 = vector.shape_cast %63 : vector<256x64xf32> to vector<16x16x64xf32>
    %cst_22 = arith.constant dense<0.000000e+00> : vector<16x64xf32>
    %65 = vector.multi_reduction <add>, %64, %cst_22 [1] : vector<16x16x64xf32> to vector<16x64xf32>
    %c0_23 = arith.constant 0 : index
    %c0_24 = arith.constant 0 : index
    %66 = vector.load %arg6[%c0_23, %c0_24] : memref<1x64xf32, #tpu.memory_space<vmem>>, vector<1x64xf32>
    %67 = vector.broadcast %66 : vector<1x64xf32> to vector<16x64xf32>
    %68 = arith.mulf %65, %67 : vector<16x64xf32>
    %cst_25 = arith.constant dense<0.000000e+00> : vector<16xf32>
    %69 = vector.multi_reduction <add>, %68, %cst_25 [1] : vector<16x64xf32> to vector<16xf32>
    %c0_26 = arith.constant 0 : index
    %70 = memref.load %arg7[%c0_26] : memref<1xf32, #tpu.memory_space<smem>>
    %71 = vector.broadcast %70 : f32 to vector<16xf32>
    %72 = arith.addf %69, %71 : vector<16xf32>
    %73 = vector.shape_cast %72 : vector<16xf32> to vector<1x1x16xf32>
    %c0_27 = arith.constant 0 : index
    %c0_28 = arith.constant 0 : index
    %c0_29 = arith.constant 0 : index
    %74 = vector.load %arg8[%c0_27, %c0_28, %c0_29] : memref<1x1x16xf32, #tpu.memory_space<vmem>>, vector<1x1x16xf32>
    tpu.vector_store %arg8[%c0_27, %c0_28, %c0_29], %73 {strides = array<i32>} : memref<1x1x16xf32, #tpu.memory_space<vmem>>, vector<1x1x16xf32>,
    return
  }
  func.func @transform_0(%arg0: i32) -> (i32, i32, i32) {
    %c0_i32 = arith.constant 0 : i32
    %c0_i32_0 = arith.constant 0 : i32
    %c0_i32_1 = arith.constant 0 : i32
    return %arg0, %c0_i32, %c0_i32_0 : i32, i32, i32
  }
  func.func @transform_1(%arg0: i32) -> (i32, i32, i32) {
    %c0_i32 = arith.constant 0 : i32
    %c0_i32_0 = arith.constant 0 : i32
    %c0_i32_1 = arith.constant 0 : i32
    return %arg0, %c0_i32, %c0_i32_0 : i32, i32, i32
  }
  func.func @transform_2(%arg0: i32) -> (i32, i32) {
    %c0_i32 = arith.constant 0 : i32
    %c0_i32_0 = arith.constant 0 : i32
    %c0_i32_1 = arith.constant 0 : i32
    return %c0_i32, %c0_i32_0 : i32, i32
  }
  func.func @transform_3(%arg0: i32) -> (i32, i32) {
    %c0_i32 = arith.constant 0 : i32
    %c0_i32_0 = arith.constant 0 : i32
    %c0_i32_1 = arith.constant 0 : i32
    return %c0_i32, %c0_i32_0 : i32, i32
  }
  func.func @transform_4(%arg0: i32) -> (i32, i32) {
    %c0_i32 = arith.constant 0 : i32
    %c0_i32_0 = arith.constant 0 : i32
    %c0_i32_1 = arith.constant 0 : i32
    return %c0_i32, %c0_i32_0 : i32, i32
  }
  func.func @transform_5(%arg0: i32) -> (i32, i32) {
    %c0_i32 = arith.constant 0 : i32
    %c0_i32_0 = arith.constant 0 : i32
    %c0_i32_1 = arith.constant 0 : i32
    return %c0_i32, %c0_i32_0 : i32, i32
  }
  func.func @transform_6(%arg0: i32) -> i32 {
    %c0_i32 = arith.constant 0 : i32
    %c0_i32_0 = arith.constant 0 : i32
    return %c0_i32 : i32
  }
  func.func @transform_7(%arg0: i32) -> (i32, i32, i32) {
    %c0_i32 = arith.constant 0 : i32
    %c0_i32_0 = arith.constant 0 : i32
    %c0_i32_1 = arith.constant 0 : i32
    return %arg0, %c0_i32, %c0_i32_0 : i32, i32, i32
  }
}

</mosaic_0001>

<bundles_post_ra>
// kernel: _forward_jit.1
= control target key start
LH: loop header
LB: loop body
LE: loop exit
PB: predicated region body
PF: predicated region fallthrough
CT: control target
= control target key end

     0   :  { %s6911_s26 = smov 0   ;;  %s8552_s0 = inlined_call_operand.vmem [shape: bf16[32,16,16], index: 0, kind: input, shape index: {}]   ;;  %s8553_s1 = inlined_call_operand.vmem [shape: bf16[32,16,128], index: 1, kind: input, shape index: {}]   ;;  %s8554_s2 = inlined_call_operand.vmem [shape: bf16[128,384], index: 2, kind: input, shape index: {}]   ;;  %s8555_s3 = inlined_call_operand.vmem [shape: bf16[64,384], index: 3, kind: input, shape index: {}]   ;;  %s8556_s4 = inlined_call_operand.vmem [shape: bf16[64,384], index: 4, kind: input, shape index: {}]   ;;  %s8557_s5 = inlined_call_operand.vmem [shape: f32[1,64], index: 5, kind: input, shape index: {}]   ;;  %s8558_s6 = inlined_call_operand.<no memory space> [shape: f32[1], index: 6, kind: input, shape index: {}]   ;;  %s8559_s7 = inlined_call_operand.vmem [shape: f32[2,1,16], index: 7, kind: output, shape index: {}]  }
   0x1   :  { %12 = sst [smem:[#allocation2]] %s8558_s6 }
   0x2 LB: > { %s6917_s27 = sadd.s32 4294967295, %s6863_s26   ;;  %p5458_p0 = scmp.ge.s32.totalorder %s6863_s26, 1  ;;  %s6863_s26 = sphi %s6911_s26, %s18_s26  }
   0x3   : > { %p252_p1 = scmp.lt.s32.totalorder %s6863_s26, 3 }
   0x5   : > { %p253_p2 = pnand %p5458_p0, %p252_p1 }
   0x7   : > { %256 = sbr.rel (%p253_p2) target bundleno = 1667 (0x683), region = 48 }
   0xe   : > { %v6345_v0 = vld [vmem:[%s8554_s2 + $0x4] ss:$12 sps:$4 sm:$0xff]   ;;  %s5459_s6 = sshll.u32 %s6917_s27, 4  ;;  %v6347_v1 = vld [vmem:[%s8554_s2] ss:$12 sps:$4 sm:$0xff]   ;;  %v8560_v2 = vmov 0  }
   0xf   : > { %659 = vmatprep.mubr.bf16.mxu0 %v8560_v2  ;;  %p290_p3 = scmp.lt.s32.totalorder %s5459_s6, 31  ;;  %627 = vmatprep.subr.bf16.mxu0 %v6345_v0  ;;  %v6348_v3 = vld [vmem:[%s8554_s2 + $0x1c] ss:$12 sps:$4 sm:$0xff]   ;;  %v6350_v4 = vld [vmem:[%s8554_s2 + $0x18] ss:$12 sps:$4 sm:$0xff]   ;;  %v8566_v41 = vmov 0.0  }
  0x10   : > { %628 = vmatpush1.bf16.msra.mxu0 %v6347_v1  ;;  %v6351_v5 = vld [vmem:[%s8554_s2 + $0x34] ss:$12 sps:$4 sm:$0xff]   ;;  %v6353_v6 = vld [vmem:[%s8554_s2 + $0x30] ss:$12 sps:$4 sm:$0xff]   ;;  %v6354_v7 = vld [vmem:[%s8554_s2 + $0x4c] ss:$12 sps:$4 sm:$0xff]  }
  0x11   : > { %s8910_s6 = smov (!%p290_p3, %s5459_s6), 31  ;;  %629 = vmatprep.subr.bf16.mxu0 %v6348_v3  ;;  %v6356_v8 = vld [vmem:[%s8554_s2 + $0x48] ss:$12 sps:$4 sm:$0xff]   ;;  %v6357_v10 = vld [vmem:[%s8554_s2 + $0x64] ss:$12 sps:$4 sm:$0xff]   ;;  %vm6867_vm0 = vmmov 0  }
  0x12   : > { %s5756_s15 = sshll.u32 %s8910_s6, 3  ;;  %v6359_v11 = vld [vmem:[%s8554_s2 + $0x60] ss:$12 sps:$4 sm:$0xff]   ;;  %v6360_v12 = vld [vmem:[%s8554_s2 + $0x7c] ss:$12 sps:$4 sm:$0xff]   ;;  %vm1002_vm1 = vcmask 130048  }
  0x13   : > { %s6952_s22 = scalar_lea.vmem %s8553_s1, %s5756_s15  ;;  %v6362_v13 = vld [vmem:[%s8554_s2 + $0x78] ss:$12 sps:$4 sm:$0xff]   ;;  %v6363_v14 = vld [vmem:[%s8554_s2 + $0x94] ss:$12 sps:$4 sm:$0xff]   ;;  %v6365_v15 = vld [vmem:[%s8554_s2 + $0x90] ss:$12 sps:$4 sm:$0xff]   ;;  %s6996_s9 = scalar_lea.vmem %s8552_s0, %s5756_s15 }
  0x14   : > { %630 = vmatpush1.bf16.msra.mxu0 %v6350_v4  ;;  %v6369_v9 = vld [vmem:[%s6952_s22] sm:$0xff]   ;;  %v6366_v16 = vld [vmem:[%s8554_s2 + $0xac] ss:$12 sps:$4 sm:$0xff]   ;;  %v6368_v17 = vld [vmem:[%s8554_s2 + $0xa8] ss:$12 sps:$4 sm:$0xff]   ;;  %vm2198_vm2 = vcmask 523264  }
  0x15   : > { %631 = vmatprep.subr.bf16.mxu0 %v6351_v5  ;;  %5934 = vmatprep.mubr.bf16.mxu1 %v6369_v9  ;;  %v6385_v18 = vld [vmem:[%s8554_s2 + $0x8] ss:$12 sps:$4 sm:$0xff]   ;;  %v6386_v19 = vld [vmem:[%s8554_s2 + $0x20] ss:$12 sps:$4 sm:$0xff]   ;;  %v6387_v20 = vld [vmem:[%s8554_s2 + $0x38] ss:$12 sps:$4 sm:$0xff]  }
  0x16   : > { %5918 = vmatprep.subr.bf16.mxu1 %v6385_v18  ;;  %v6388_v21 = vld [vmem:[%s8554_s2 + $0x50] ss:$12 sps:$4 sm:$0xff]   ;;  %v6370_v22 = vld [vmem:[%s6952_s22 + $0x8] sm:$0xff]   ;;  %v6391_v26 = vld [vmem:[%s8554_s2 + $0x98] ss:$12 sps:$4 sm:$0xff]   ;;  %vm5331_vm3 = vcmask 1041409  }
  0x17   : > { %5919 = vmatpush3.bf16.msra.mxu1 %v6385_v18  ;;  %v6389_v23 = vld [vmem:[%s8554_s2 + $0x68] ss:$12 sps:$4 sm:$0xff]   ;;  %v6390_v24 = vld [vmem:[%s8554_s2 + $0x80] ss:$12 sps:$4 sm:$0xff]   ;;  %v6392_v27 = vld [vmem:[%s8554_s2 + $0xb0] ss:$12 sps:$4 sm:$0xff]  }
  0x18   : > { %632 = vmatpush1.bf16.msra.mxu0 %v6353_v6  ;;  %5920 = vmatprep.subr.bf16.mxu1 %v6386_v19  ;;  %v6371_v25 = vld [vmem:[%s6952_s22 + $0x10] sm:$0xff]   ;;  %v6372_v28 = vld [vmem:[%s6952_s22 + $0x18] sm:$0xff]   ;;  %v6373_v29 = vld [vmem:[%s6952_s22 + $0x20] sm:$0xff]   ;;  %vm5334_vm4 = vcmask 1042434   ;;  %vm5337_vm5 = vcmask 1043459   ;;  %vm5340_vm6 = vcmask 1044484  }
  0x19   : > { %633 = vmatprep.subr.bf16.mxu0 %v6354_v7  ;;  %v6374_v30 = vld [vmem:[%s6952_s22 + $0x28] sm:$0xff]   ;;  %v6375_v31 = vld [vmem:[%s6952_s22 + $0x30] sm:$0xff]   ;;  %v6376_v32 = vld [vmem:[%s6952_s22 + $0x38] sm:$0xff]   ;;  %vm5343_vm7 = vcmask 1045509   ;;  %vm5346_vm8 = vcmask 1046534   ;;  %vm5349_vm9 = vcmask 1047559  }
  0x1a   : > { %v6377_v33 = vld [vmem:[%s6952_s22 + $0x40] sm:$0xff]   ;;  %v6378_v34 = vld [vmem:[%s6952_s22 + $0x48] sm:$0xff]   ;;  %v6379_v35 = vld [vmem:[%s6952_s22 + $0x50] sm:$0xff]   ;;  %s5373_s28 = sld [smem:[#allocation2]]  ;;  %p303_p4 = scmp.lt.s32.totalorder %s6917_s27, 1  ;;  %vm5390_vm10 = vcmask 130112  }
  0x1b   : > { %5921 = vmatpush3.bf16.msra.mxu1 %v6386_v19  ;;  %v6380_v36 = vld [vmem:[%s6952_s22 + $0x58] sm:$0xff]   ;;  %v6381_v37 = vld [vmem:[%s6952_s22 + $0x60] sm:$0xff]   ;;  %v6382_v38 = vld [vmem:[%s6952_s22 + $0x68] sm:$0xff]   ;;  %vm5393_vm11 = vcmask 122880  }
  0x1c   : > { %634 = vmatpush1.bf16.msra.mxu0 %v6356_v8  ;;  %5922 = vmatprep.subr.bf16.mxu1 %v6387_v20  ;;  %v6383_v39 = vld [vmem:[%s6952_s22 + $0x70] sm:$0xff]   ;;  %v6384_v40 = vld [vmem:[%s6952_s22 + $0x78] sm:$0xff]   ;;  %v6393_v47 = vld [vmem:[%s6996_s9] sm:$0xff]   ;;  %s8912_s27 = smov (!%p303_p4, %s6917_s27), 1 }
  0x1d   : > { %635 = vmatprep.subr.bf16.mxu0 %v6357_v10  ;;  %v6394_v53 = vld [vmem:[%s6996_s9 + $0x8] sm:$0xff]   ;;  %v6395_v59 = vld [vmem:[%s6996_s9 + $0x10] sm:$0xff]   ;;  %v6396_v3 = vld [vmem:[%s6996_s9 + $0x18] sm:$0xff]   ;;  %s305_s8 = scalar_lea.vmem %s8559_s7, %s8912_s27 }
  0x1f   : > { %5923 = vmatpush3.bf16.msra.mxu1 %v6387_v20 }
  0x20   : > { %636 = vmatpush1.bf16.msra.mxu0 %v6359_v11  ;;  %5924 = vmatprep.subr.bf16.mxu1 %v6388_v21 }
  0x21   : > { %637 = vmatprep.subr.bf16.mxu0 %v6360_v12 }
  0x23   : > { %5925 = vmatpush3.bf16.msra.mxu1 %v6388_v21 }
  0x24   : > { %638 = vmatpush1.bf16.msra.mxu0 %v6362_v13  ;;  %5926 = vmatprep.subr.bf16.mxu1 %v6389_v23  ;;  %v6397_v13 = vld [vmem:[%s6996_s9 + $0x20] sm:$0xff]  }
  0x25   : > { %639 = vmatprep.subr.bf16.mxu0 %v6363_v14 }
  0x27   : > { %5927 = vmatpush3.bf16.msra.mxu1 %v6389_v23  ;;  %v6398_v23 = vld [vmem:[%s6996_s9 + $0x28] sm:$0xff]  }
  0x28   : > { %640 = vmatpush1.bf16.msra.mxu0 %v6365_v15  ;;  %5928 = vmatprep.subr.bf16.mxu1 %v6390_v24 }
  0x29   : > { %641 = vmatprep.subr.bf16.mxu0 %v6366_v16 }
  0x2b   : > { %5929 = vmatpush3.bf16.msra.mxu1 %v6390_v24 }
  0x2c   : > { %642 = vmatpush1.bf16.msra.mxu0 %v6368_v17  ;;  %5930 = vmatprep.subr.bf16.mxu1 %v6391_v26 }
  0x2d   : > { %6014 = vmatprep.subr.bf16.mxu0 %v8566_v41 }
  0x2f   : > { %660 = vmatmul.mubr.bf16.vlgmr.msra.gmra.mrb[0].mxu0 %v6369_v9  ;;  %5931 = vmatpush3.bf16.msra.mxu1 %v6391_v26 }
  0x30   : > { %669 = vmatprep.mubr.bf16.mxu0 %v8560_v2  ;;  %5932 = vmatprep.subr.bf16.mxu1 %v6392_v27 }
  0x33   : > { %5933 = vmatpush3.bf16.msra.mxu1 %v6392_v27 }
  0x34   : > { %5966 = vmatprep.subr.bf16.mxu1 %v8566_v41 }
  0x36   : > { %5935 = vmatmul.mubr.bf16.vlgmr.msra.gmra.mrb[0].mxu1 %v6370_v22 }
  0x37   : > { %670 = vmatmul.mubr.bf16.gmra.mrb[4].mxu0 %v6370_v22  ;;  %5938 = vmatprep.mubr.bf16.mxu1 %v6371_v25 }
  0x38   : > { %679 = vmatprep.mubr.bf16.mxu0 %v8560_v2 }
  0x3e   : > { %5939 = vmatmul.mubr.bf16.gmra.mrb[4].mxu1 %v6372_v28 }
  0x3f   : > { %680 = vmatmul.mubr.bf16.gmra.mrb[8].mxu0 %v6371_v25  ;;  %5942 = vmatprep.mubr.bf16.mxu1 %v6373_v29 }
  0x40   : > { %689 = vmatprep.mubr.bf16.mxu0 %v8560_v2 }
  0x46   : > { %5943 = vmatmul.mubr.bf16.gmra.mrb[8].mxu1 %v6374_v30 }
  0x47   : > { %690 = vmatmul.mubr.bf16.gmra.mrb[12].mxu0 %v6372_v28  ;;  %5946 = vmatprep.mubr.bf16.mxu1 %v6375_v31 }
  0x48   : > { %699 = vmatprep.mubr.bf16.mxu0 %v8560_v2 }
  0x4e   : > { %5947 = vmatmul.mubr.bf16.gmra.mrb[12].mxu1 %v6376_v32 }
  0x4f   : > { %700 = vmatmul.mubr.bf16.gmra.mrb[16].mxu0 %v6373_v29  ;;  %5950 = vmatprep.mubr.bf16.mxu1 %v6377_v33 }
  0x50   : > { %709 = vmatprep.mubr.bf16.mxu0 %v8560_v2 }
  0x56   : > { %5951 = vmatmul.mubr.bf16.gmra.mrb[16].mxu1 %v6378_v34 }
  0x57   : > { %710 = vmatmul.mubr.bf16.gmra.mrb[20].mxu0 %v6374_v30  ;;  %5954 = vmatprep.mubr.bf16.mxu1 %v6379_v35 }
  0x58   : > { %719 = vmatprep.mubr.bf16.mxu0 %v8560_v2 }
  0x5e   : > { %5955 = vmatmul.mubr.bf16.gmra.mrb[20].mxu1 %v6380_v36 }
  0x5f   : > { %720 = vmatmul.mubr.bf16.gmra.mrb[24].mxu0 %v6375_v31  ;;  %5958 = vmatprep.mubr.bf16.mxu1 %v6381_v37 }
  0x60   : > { %729 = vmatprep.mubr.bf16.mxu0 %v8560_v2 }
  0x66   : > { %5959 = vmatmul.mubr.bf16.gmra.mrb[24].mxu1 %v6382_v38 }
  0x67   : > { %730 = vmatmul.mubr.bf16.gmra.mrb[28].mxu0 %v6376_v32  ;;  %5962 = vmatprep.mubr.bf16.mxu1 %v6383_v39 }
  0x68   : > { %739 = vmatprep.mubr.bf16.mxu0 %v8560_v2 }
  0x6e   : > { %5963 = vmatmul.mubr.bf16.gmra.mrb[28].mxu1 %v6384_v40 }
  0x6f   : > { %740 = vmatmul.mubr.bf16.gmra.mrb[32].mxu0 %v6377_v33  ;;  %5968 = vmatprep.mubr.msk.bf16.mxu1 %vm6867_vm0, %v8566_v41  ;;  %v6399_v33 = vld [vmem:[%s6996_s9 + $0x30] sm:$0xff]  }
  0x70   : > { %749 = vmatprep.mubr.bf16.mxu0 %v8560_v2 }
  0x77   : > { %750 = vmatmul.mubr.bf16.gmra.mrb[36].mxu0 %v6378_v34 }
  0x78   : > { %759 = vmatprep.mubr.bf16.mxu0 %v8560_v2 }
  0x7f   : > { %760 = vmatmul.mubr.bf16.gmra.mrb[40].mxu0 %v6379_v35 }
  0x80   : > { %769 = vmatprep.mubr.bf16.mxu0 %v8560_v2 }
  0x87   : > { %770 = vmatmul.mubr.bf16.gmra.mrb[44].mxu0 %v6380_v36 }
  0x88   : > { %779 = vmatprep.mubr.bf16.mxu0 %v8560_v2 }
  0x8f   : > { %780 = vmatmul.mubr.bf16.gmra.mrb[48].mxu0 %v6381_v37 }
  0x90   : > { %789 = vmatprep.mubr.bf16.mxu0 %v8560_v2 }
  0x97   : > { %790 = vmatmul.mubr.bf16.gmra.mrb[52].mxu0 %v6382_v38 }
  0x98   : > { %799 = vmatprep.mubr.bf16.mxu0 %v8560_v2 }
  0x9f   : > { %800 = vmatmul.mubr.bf16.gmra.mrb[56].mxu0 %v6383_v39 }
  0xa0   : > { %809 = vmatprep.mubr.bf16.mxu0 %v8560_v2 }
  0xa7   : > { %810 = vmatmul.mubr.bf16.gmra.mrb[60].mxu0 %v6384_v40 }
  0xa8   : > { %6016 = vmatprep.mubr.msk.bf16.mxu0 %vm6867_vm0, %v8566_v41 }
 0x102   : > { %v661_v42 = vpop.f32.mrb[0].mxu0 }
 0x103   : > { %v7049_v43 = vpop.f32.mrb[1].mxu0 }
 0x104   : > { %v665_v44 = vpop.f32.mrb[2].mxu0 }
 0x105   : > { %v981_v45 = vpack.c.bf16 %v665_v44, %v661_v42  ;;  %v7051_v46 = vpop.f32.mrb[3].mxu0 }
 0x107   : > { %5967 = vmatpush3.bf16.msra.mxu1 %v981_v45  ;;  %v6400_v45 = vld [vmem:[%s6996_s9 + $0x38] sm:$0xff]  }
 0x108   : > { %5972 = vmatprep.subr.bf16.mxu1 %v8566_v41 }
 0x109   : > { %v7080_v1 = vpop.f32.mrb[0].mxu1 }
 0x10a   : > { %v671_v48 = vpop.f32.mrb[4].mxu0  ;;  %5969 = vmatmul.mubr.msk.bf16.vlgmr.msra.gmra.mrb[32].mxu1 %vm1002_vm1, %v6393_v47  ;;  %v7083_v4 = vpop.f32.mrb[1].mxu1 }
 0x10b   : > { %v7056_v49 = vpop.f32.mrb[5].mxu0  ;;  %5974 = vmatprep.mubr.msk.bf16.mxu1 %vm6867_vm0, %v8566_v41  ;;  %v7085_v5 = vpop.f32.mrb[2].mxu1 }
 0x10c   : > { %v675_v50 = vpop.f32.mrb[6].mxu0  ;;  %v7088_v6 = vpop.f32.mrb[3].mxu1 }
 0x10d   : > { %v982_v51 = vpack.c.bf16 %v675_v50, %v671_v48  ;;  %v7060_v52 = vpop.f32.mrb[7].mxu0 }
 0x10f   : > { %5973 = vmatpush3.bf16.msra.mxu1 %v982_v51 }
 0x110   : > { %5978 = vmatprep.subr.bf16.mxu1 %v8566_v41 }
 0x111   : > { %v7097_v12 = vpop.f32.mrb[4].mxu1 }
 0x112   : > { %v681_v54 = vpop.f32.mrb[8].mxu0  ;;  %5975 = vmatmul.mubr.msk.bf16.vlgmr.msra.gmra.mrb[36].mxu1 %vm1002_vm1, %v6394_v53  ;;  %v7100_v14 = vpop.f32.mrb[5].mxu1 }
 0x113   : > { %v7065_v55 = vpop.f32.mrb[9].mxu0  ;;  %5980 = vmatprep.mubr.msk.bf16.mxu1 %vm6867_vm0, %v8566_v41  ;;  %v7102_v15 = vpop.f32.mrb[6].mxu1 }
 0x114   : > { %v685_v56 = vpop.f32.mrb[10].mxu0  ;;  %v7105_v16 = vpop.f32.mrb[7].mxu1 }
 0x115   : > { %v983_v57 = vpack.c.bf16 %v685_v56, %v681_v54  ;;  %v7069_v58 = vpop.f32.mrb[11].mxu0 }
 0x117   : > { %5979 = vmatpush3.bf16.msra.mxu1 %v983_v57 }
 0x118   : > { %5984 = vmatprep.subr.bf16.mxu1 %v8566_v41 }
 0x119   : > { %v7114_v22 = vpop.f32.mrb[8].mxu1 }
 0x11a   : > { %v691_v60 = vpop.f32.mrb[12].mxu0  ;;  %5981 = vmatmul.mubr.msk.bf16.vlgmr.msra.gmra.mrb[40].mxu1 %vm1002_vm1, %v6395_v59  ;;  %v7117_v24 = vpop.f32.mrb[9].mxu1 }
 0x11b   : > { %v7074_v61 = vpop.f32.mrb[13].mxu0  ;;  %5986 = vmatprep.mubr.msk.bf16.mxu1 %vm6867_vm0, %v8566_v41  ;;  %v7119_v25 = vpop.f32.mrb[10].mxu1 }
 0x11c   : > { %v695_v62 = vpop.f32.mrb[14].mxu0  ;;  %v7122_v26 = vpop.f32.mrb[11].mxu1 }
 0x11d   : > { %v984_v63 = vpack.c.bf16 %v695_v62, %v691_v60  ;;  %v7078_v0 = vpop.f32.mrb[15].mxu0  ;;  %v6401_v60 = vld [vmem:[%s6996_s9 + $0x40] sm:$0xff]  }
 0x11f   : > { %5985 = vmatpush3.bf16.msra.mxu1 %v984_v63 }
 0x120   : > { %5990 = vmatprep.subr.bf16.mxu1 %v8566_v41 }
 0x121   : > { %v7131_v32 = vpop.f32.mrb[12].mxu1 }
 0x122   : > { %v701_v7 = vpop.f32.mrb[16].mxu0  ;;  %5987 = vmatmul.mubr.msk.bf16.vlgmr.msra.gmra.mrb[44].mxu1 %vm1002_vm1, %v6396_v3  ;;  %v7134_v34 = vpop.f32.mrb[13].mxu1 }
 0x123   : > { %v7091_v8 = vpop.f32.mrb[17].mxu0  ;;  %5992 = vmatprep.mubr.msk.bf16.mxu1 %vm6867_vm0, %v8566_v41  ;;  %v7136_v35 = vpop.f32.mrb[14].mxu1 }
 0x124   : > { %v705_v9 = vpop.f32.mrb[18].mxu0  ;;  %v7139_v36 = vpop.f32.mrb[15].mxu1 }
 0x125   : > { %v985_v10 = vpack.c.bf16 %v705_v9, %v701_v7  ;;  %v7095_v11 = vpop.f32.mrb[19].mxu0 }
 0x127   : > { %5991 = vmatpush3.bf16.msra.mxu1 %v985_v10 }
 0x128   : > { %5996 = vmatprep.subr.bf16.mxu1 %v8566_v41 }
 0x129   : > { %v7148_v44 = vpop.f32.mrb[16].mxu1 }
 0x12a   : > { %v711_v17 = vpop.f32.mrb[20].mxu0  ;;  %5993 = vmatmul.mubr.msk.bf16.vlgmr.msra.gmra.mrb[48].mxu1 %vm1002_vm1, %v6397_v13  ;;  %v7151_v47 = vpop.f32.mrb[17].mxu1 }
 0x12b   : > { %v7108_v18 = vpop.f32.mrb[21].mxu0  ;;  %5998 = vmatprep.mubr.msk.bf16.mxu1 %vm6867_vm0, %v8566_v41  ;;  %v7153_v48 = vpop.f32.mrb[18].mxu1 }
 0x12c   : > { %v715_v19 = vpop.f32.mrb[22].mxu0  ;;  %v7156_v50 = vpop.f32.mrb[19].mxu1 }
 0x12d   : > { %v986_v20 = vpack.c.bf16 %v715_v19, %v711_v17  ;;  %v7112_v21 = vpop.f32.mrb[23].mxu0 }
 0x12f   : > { %5997 = vmatpush3.bf16.msra.mxu1 %v986_v20  ;;  %v6402_v20 = vld [vmem:[%s6996_s9 + $0x48] sm:$0xff]  }
 0x130   : > { %6002 = vmatprep.subr.bf16.mxu1 %v8566_v41 }
 0x131   : > { %v7165_v59 = vpop.f32.mrb[20].mxu1 }
 0x132   : > { %v721_v27 = vpop.f32.mrb[24].mxu0  ;;  %5999 = vmatmul.mubr.msk.bf16.vlgmr.msra.gmra.mrb[52].mxu1 %vm1002_vm1, %v6398_v23  ;;  %v7168_v62 = vpop.f32.mrb[21].mxu1 }
 0x133   : > { %v7125_v28 = vpop.f32.mrb[25].mxu0  ;;  %6004 = vmatprep.mubr.msk.bf16.mxu1 %vm6867_vm0, %v8566_v41  ;;  %v7170_v63 = vpop.f32.mrb[22].mxu1 }
 0x134   : > { %v725_v29 = vpop.f32.mrb[26].mxu0  ;;  %v7173_v3 = vpop.f32.mrb[23].mxu1 }
 0x135   : > { %v987_v30 = vpack.c.bf16 %v725_v29, %v721_v27  ;;  %v7129_v31 = vpop.f32.mrb[27].mxu0 }
 0x137   : > { %6003 = vmatpush3.bf16.msra.mxu1 %v987_v30 }
 0x138   : > { %6008 = vmatprep.subr.bf16.mxu1 %v8566_v41 }
 0x139   : > { %v7182_v19 = vpop.f32.mrb[24].mxu1 }
 0x13a   : > { %v731_v37 = vpop.f32.mrb[28].mxu0  ;;  %6005 = vmatmul.mubr.msk.bf16.vlgmr.msra.gmra.mrb[56].mxu1 %vm1002_vm1, %v6399_v33  ;;  %v7185_v23 = vpop.f32.mrb[25].mxu1 }
 0x13b   : > { %v7142_v38 = vpop.f32.mrb[29].mxu0  ;;  %6010 = vmatprep.mubr.msk.bf16.mxu1 %vm6867_vm0, %v8566_v41  ;;  %v7187_v27 = vpop.f32.mrb[26].mxu1 }
 0x13c   : > { %v735_v39 = vpop.f32.mrb[30].mxu0  ;;  %v7190_v29 = vpop.f32.mrb[27].mxu1 }
 0x13d   : > { %v988_v40 = vpack.c.bf16 %v735_v39, %v731_v37  ;;  %v7146_v42 = vpop.f32.mrb[31].mxu0 }
 0x13f   : > { %6009 = vmatpush3.bf16.msra.mxu1 %v988_v40 }
 0x140   : > { %6020 = vmatprep.subr.bf16.mxu1 %v8566_v41 }
 0x142   : > { %v741_v51 = vpop.f32.mrb[32].mxu0  ;;  %6011 = vmatmul.mubr.msk.bf16.vlgmr.msra.gmra.mrb[60].mxu1 %vm1002_vm1, %v6400_v45  ;;  %v7199_v45 = vpop.f32.mrb[28].mxu1 }
 0x143   : > { %v7159_v53 = vpop.f32.mrb[33].mxu0  ;;  %6022 = vmatprep.mubr.msk.bf16.mxu1 %vm6867_vm0, %v8566_v41  ;;  %8679 = vst [vmem:[#allocation3_spill] sm:$0xff] %v7199_v45 }
 0x144   : > { %v745_v54 = vpop.f32.mrb[34].mxu0 }
 0x145   : > { %v989_v56 = vpack.c.bf16 %v745_v54, %v741_v51  ;;  %v7163_v57 = vpop.f32.mrb[35].mxu0  ;;  %v6403_v51 = vld [vmem:[%s6996_s9 + $0x50] sm:$0xff]   ;;  %v7202_v54 = vpop.f32.mrb[29].mxu1 }
 0x147   : > { %6015 = vmatpush3.bf16.msra.mxu0 %v989_v56  ;;  %v7204_v56 = vpop.f32.mrb[30].mxu1 }
 0x148   : > { %6026 = vmatprep.subr.bf16.mxu0 %v8566_v41  ;;  %8680 = vst [vmem:[#allocation4_spill] sm:$0xff] %v7204_v56 }
 0x14a   : > { %v751_v7 = vpop.f32.mrb[36].mxu0  ;;  %6017 = vmatmul.mubr.msk.bf16.vlgmr.msra.gmra.mrb[64].mxu0 %vm1002_vm1, %v6401_v60  ;;  %v7207_v60 = vpop.f32.mrb[31].mxu1 }
 0x14b   : > { %v7176_v9 = vpop.f32.mrb[37].mxu0  ;;  %6028 = vmatprep.mubr.msk.bf16.mxu0 %vm6867_vm0, %v8566_v41 }
 0x14c   : > { %v755_v10 = vpop.f32.mrb[38].mxu0 }
 0x14d   : > { %v990_v13 = vpack.c.bf16 %v755_v10, %v751_v7  ;;  %v7180_v17 = vpop.f32.mrb[39].mxu0 }
 0x14f   : > { %6021 = vmatpush3.bf16.msra.mxu1 %v990_v13 }
 0x150   : > { %6032 = vmatprep.subr.bf16.mxu1 %v8566_v41 }
 0x152   : > { %v761_v30 = vpop.f32.mrb[40].mxu0  ;;  %6023 = vmatmul.mubr.msk.bf16.vlgmr.msra.gmra.mrb[64].mxu1 %vm1002_vm1, %v6402_v20 }
 0x153   : > { %v7193_v33 = vpop.f32.mrb[41].mxu0  ;;  %6034 = vmatprep.mubr.msk.bf16.mxu1 %vm6867_vm0, %v8566_v41 }
 0x154   : > { %v765_v37 = vpop.f32.mrb[42].mxu0 }
 0x155   : > { %v991_v39 = vpack.c.bf16 %v765_v37, %v761_v30  ;;  %v7197_v40 = vpop.f32.mrb[43].mxu0  ;;  %v6404_v37 = vld [vmem:[%s6996_s9 + $0x58] sm:$0xff]  }
 0x157   : > { %6027 = vmatpush3.bf16.msra.mxu0 %v991_v39 }
 0x158   : > { %6038 = vmatprep.subr.bf16.mxu0 %v8566_v41 }
 0x15a   : > { %v771_v7 = vpop.f32.mrb[44].mxu0  ;;  %6029 = vmatmul.mubr.msk.bf16.vlgmr.msra.gmra.mrb[68].mxu0 %vm1002_vm1, %v6403_v51 }
 0x15b   : > { %v7210_v10 = vpop.f32.mrb[45].mxu0  ;;  %6040 = vmatprep.mubr.msk.bf16.mxu0 %vm6867_vm0, %v8566_v41 }
 0x15c   : > { %8681 = vst [vmem:[#allocation5_spill] sm:$0xff] %v7210_v10  ;;  %v775_v13 = vpop.f32.mrb[46].mxu0  ;;  %v6422_v10 = vld [vmem:[%s8555_s3 + $0x20] ss:$12 sps:$4 sm:$0xff]  }
 0x15d   : > { %v992_v20 = vpack.c.bf16 %v775_v13, %v771_v7  ;;  %v7214_v30 = vpop.f32.mrb[47].mxu0  ;;  %v6405_v7 = vld [vmem:[%s6996_s9 + $0x60] sm:$0xff]  }
 0x15e   : > { %8682 = vst [vmem:[#allocation6_spill] sm:$0xff] %v7214_v30 }
 0x15f   : > { %6033 = vmatpush3.bf16.msra.mxu1 %v992_v20 }
 0x160   : > { %6044 = vmatprep.subr.bf16.mxu1 %v8566_v41 }
 0x162   : > { %v781_v39 = vpop.f32.mrb[48].mxu0  ;;  %6035 = vmatmul.mubr.msk.bf16.vlgmr.msra.gmra.mrb[68].mxu1 %vm1002_vm1, %v6404_v37 }
 0x163   : > { %v7219_v2 = vpop.f32.mrb[49].mxu0  ;;  %6046 = vmatprep.mubr.msk.bf16.mxu1 %vm6867_vm0, %v8566_v41 }
 0x164   : > { %8683 = vst [vmem:[#allocation7_spill] sm:$0xff] %v7219_v2  ;;  %v785_v51 = vpop.f32.mrb[50].mxu0 }
 0x165   : > { %v993_v56 = vpack.c.bf16 %v785_v51, %v781_v39  ;;  %v7223_v45 = vpop.f32.mrb[51].mxu0  ;;  %v6406_v39 = vld [vmem:[%s6996_s9 + $0x68] sm:$0xff]  }
 0x166   : > { %8684 = vst [vmem:[#allocation8_spill] sm:$0xff] %v7223_v45 }
 0x167   : > { %6039 = vmatpush3.bf16.msra.mxu0 %v993_v56 }
 0x168   : > { %6050 = vmatprep.subr.bf16.mxu0 %v8566_v41 }
 0x16a   : > { %v791_v13 = vpop.f32.mrb[52].mxu0  ;;  %6041 = vmatmul.mubr.msk.bf16.vlgmr.msra.gmra.mrb[72].mxu0 %vm1002_vm1, %v6405_v7 }
 0x16b   : > { %v7228_v20 = vpop.f32.mrb[53].mxu0  ;;  %6052 = vmatprep.mubr.msk.bf16.mxu0 %vm6867_vm0, %v8566_v41 }
 0x16c   : > { %8685 = vst [vmem:[#allocation9_spill] sm:$0xff] %v7228_v20  ;;  %v795_v37 = vpop.f32.mrb[54].mxu0  ;;  %v6411_v20 = vld [vmem:[%s8555_s3 + $0x4] ss:$12 sps:$4 sm:$0xff]  }
 0x16d   : > { %v994_v2 = vpack.c.bf16 %v795_v37, %v791_v13  ;;  %v7232_v30 = vpop.f32.mrb[55].mxu0 }
 0x16e   : > { %8686 = vst [vmem:[#allocation10_spill] sm:$0xff] %v7232_v30  ;;  %v6407_v30 = vld [vmem:[%s6996_s9 + $0x70] sm:$0xff]  }
 0x16f   : > { %6045 = vmatpush3.bf16.msra.mxu1 %v994_v2  ;;  %v6409_v2 = vld [vmem:[%s8555_s3] ss:$12 sps:$4 sm:$0xff]  }
 0x170   : > { %6056 = vmatprep.subr.bf16.mxu1 %v8566_v41 }
 0x172   : > { %v801_v56 = vpop.f32.mrb[56].mxu0  ;;  %6047 = vmatmul.mubr.msk.bf16.vlgmr.msra.gmra.mrb[72].mxu1 %vm1002_vm1, %v6406_v39  ;;  %v6414_v39 = vld [vmem:[%s8555_s3 + $0x1c] ss:$12 sps:$4 sm:$0xff]  }
 0x173   : > { %v7237_v51 = vpop.f32.mrb[57].mxu0  ;;  %6058 = vmatprep.mubr.msk.bf16.mxu1 %vm6867_vm0, %v8566_v41 }
 0x174   : > { %8687 = vst [vmem:[#allocation11_spill] sm:$0xff] %v7237_v51  ;;  %v805_v7 = vpop.f32.mrb[58].mxu0 }
 0x175   : > { %v995_v13 = vpack.c.bf16 %v805_v7, %v801_v56  ;;  %v7244_v37 = vpop.f32.mrb[59].mxu0  ;;  %v6412_v56 = vld [vmem:[%s8555_s3 + $0x18] ss:$12 sps:$4 sm:$0xff]   ;;  %v8690_v7 = vmov 0  }
 0x176   : > { %8688 = vst [vmem:[#allocation12_spill] sm:$0xff] %v7244_v37  ;;  %v6418_v37 = vld [vmem:[%s8555_s3 + $0x8] ss:$12 sps:$4 sm:$0xff]  }
 0x177   : > { %6051 = vmatpush3.bf16.msra.mxu0 %v995_v13 }
 0x178   : > { %2247 = vmatprep.subr.bf16.mxu0 %v6411_v20  ;;  %v6417_v20 = vld [vmem:[%s8555_s3 + $0x34] ss:$12 sps:$4 sm:$0xff]  }
 0x17a   : > { %v811_v41 = vpop.f32.mrb[60].mxu0  ;;  %6053 = vmatmul.mubr.msk.bf16.vlgmr.msra.gmra.mrb[76].mxu0 %vm1002_vm1, %v6407_v30 }
 0x17b   : > { %v7254_v51 = vpop.f32.mrb[61].mxu0  ;;  %2248 = vmatpush1.bf16.msra.mxu0 %v6409_v2  ;;  %2279 = vmatprep.mubr.bf16.mxu0 %v8690_v7  ;;  %v6408_v2 = vld [vmem:[%s6996_s9 + $0x78] sm:$0xff]  }
 0x17c   : > { %8689 = vst [vmem:[#allocation13_spill] sm:$0xff] %v7254_v51  ;;  %v815_v13 = vpop.f32.mrb[62].mxu0  ;;  %2249 = vmatprep.subr.bf16.mxu0 %v6414_v39  ;;  %v6415_v51 = vld [vmem:[%s8555_s3 + $0x30] ss:$12 sps:$4 sm:$0xff]   ;;  %v6421_v39 = vld [vmem:[%s8555_s3 + $0x4c] ss:$12 sps:$4 sm:$0xff]  }
 0x17d   : > { %v996_v30 = vpack.c.bf16 %v815_v13, %v811_v41  ;;  %v7266_v45 = vpop.f32.mrb[63].mxu0  ;;  %v6419_v41 = vld [vmem:[%s8555_s3 + $0x48] ss:$12 sps:$4 sm:$0xff]   ;;  %v6424_v13 = vld [vmem:[%s8555_s3 + $0x50] ss:$12 sps:$4 sm:$0xff]  }
 0x17f   : > { %6057 = vmatpush3.bf16.msra.mxu1 %v996_v30  ;;  %2250 = vmatpush1.bf16.msra.mxu0 %v6412_v56  ;;  %v6423_v56 = vld [vmem:[%s8555_s3 + $0x38] ss:$12 sps:$4 sm:$0xff]   ;;  %v5540_v30 = vmul.f32 -1.442695, %v7085_v5  ;;  %v5544_v5 = vmul.f32 -1.442695, %v7102_v15 }
 0x180   : > { %2251 = vmatprep.subr.bf16.mxu0 %v6417_v20  ;;  %6062 = vmatprep.subr.bf16.mxu1 %v6418_v37  ;;  %v8691_v20 = vmov 0.0  }
 0x182   : > { %6059 = vmatmul.mubr.msk.bf16.vlgmr.msra.gmra.mrb[76].mxu1 %vm1002_vm1, %v6408_v2 }
 0x183   : > { %2252 = vmatpush1.bf16.msra.mxu0 %v6415_v51  ;;  %6063 = vmatpush3.bf16.msra.mxu1 %v6418_v37  ;;  %v5537_v51 = vmul.f32 -1.442695, %v7083_v4  ;;  %v5538_v37 = vmul.f32 -1.442695, %v7088_v6 }
 0x184   : > { %2253 = vmatprep.subr.bf16.mxu0 %v6421_v39  ;;  %6064 = vmatprep.subr.bf16.mxu1 %v6422_v10 }
 0x185   : > { %6441 = vpow2.f32 %v5537_v51 }
 0x186   : > { %6443 = vpow2.f32 %v5538_v37 }
 0x187   : > { %2254 = vmatpush1.bf16.msra.mxu0 %v6419_v41  ;;  %6065 = vmatpush3.bf16.msra.mxu1 %v6422_v10  ;;  %v5539_v10 = vmul.f32 -1.442695, %v7080_v1  ;;  %v5541_v41 = vmul.f32 -1.442695, %v7100_v14  ;;  %v5543_v1 = vmul.f32 -1.442695, %v7097_v12 }
 0x188   : > { %6066 = vmatprep.subr.bf16.mxu1 %v6423_v56  ;;  %6150 = vmatprep.subr.bf16.mxu0 %v8691_v20 }
 0x189   : > { %6445 = vpow2.f32 %v5539_v10 }
 0x18a   : > { %6447 = vpow2.f32 %v5540_v30 }
 0x18b   : > { %6067 = vmatpush3.bf16.msra.mxu1 %v6423_v56  ;;  %6449 = vpow2.f32 %v5541_v41 }
 0x18c   : > { %6068 = vmatprep.subr.bf16.mxu1 %v6424_v13 }
 0x18f   : > { %6069 = vmatpush3.bf16.msra.mxu1 %v6424_v13  ;;  %v6442_v2 = vpop.eup %6441  ;;  %v5542_v13 = vmul.f32 -1.442695, %v7105_v16 }
 0x190   : > { %6102 = vmatprep.subr.bf16.mxu1 %v8691_v20  ;;  %v6444_v39 = vpop.eup %6443  ;;  %v1878_v56 = vadd.f32 1.0, %v6442_v2 }
 0x191   : > { %v1879_v20 = vadd.f32 1.0, %v6444_v39 }
 0x192   : > { %6451 = vrcp.f32 %v1878_v56 }
 0x193   : > { %v6446_v4 = vpop.eup %6445  ;;  %6453 = vpow2.f32 %v5542_v13 }
 0x194   : > { %6455 = vrcp.f32 %v1879_v20  ;;  %v6448_v6 = vpop.eup %6447  ;;  %v1880_v51 = vadd.f32 1.0, %v6446_v4  ;;  %v5545_v20 = vmul.f32 -1.442695, %v7117_v24 }
 0x195   : > { %v1881_v37 = vadd.f32 1.0, %v6448_v6  ;;  %6457 = vpow2.f32 %v5543_v1  ;;  %v6450_v14 = vpop.eup %6449  ;;  %v5546_v6 = vmul.f32 -1.442695, %v7122_v26 }
 0x196   : > { %6459 = vrcp.f32 %v1880_v51  ;;  %v1882_v4 = vadd.f32 1.0, %v6450_v14 }
 0x197   : > { %6461 = vpow2.f32 %v5544_v5 }
 0x198   : > { %6463 = vrcp.f32 %v1881_v37 }
 0x199   : > { %6465 = vpow2.f32 %v5545_v20 }
 0x19a   : > { %6467 = vrcp.f32 %v1882_v4  ;;  %v5548_v4 = vmul.f32 -1.442695, %v7119_v25 }
 0x19b   : > { %6469 = vpow2.f32 %v5546_v6 }
 0x19c   : > { %v6452_v2 = vpop.eup %6451 }
 0x19d   : > { %v6454_v41 = vpop.eup %6453 }
 0x19e   : > { %v6456_v15 = vpop.eup %6455  ;;  %v1883_v5 = vadd.f32 1.0, %v6454_v41  ;;  %v5547_v41 = vmul.f32 -1.442695, %v7114_v22 }
 0x19f   : > { %v6458_v24 = vpop.eup %6457 }
 0x1a0   : > { %6471 = vrcp.f32 %v1883_v5 }
 0x1a1   : > { %6473 = vpow2.f32 %v5547_v41  ;;  %v5549_v41 = vmul.f32 -1.442695, %v7134_v34 }
 0x1dd   : > { %v1040_v10 = vpop.f32.mrb[32].mxu1 }
 0x1de   : > { %v1974_v16 = vsub.f32 %v1040_v10, %v7049_v43  ;;  %v5970_v30 = vpop.f32.mrb[33].mxu1 }
 0x1df   : > { %v1043_v39 = vpop.f32.mrb[34].mxu1 }
 0x1e0   : > { %v2006_v56 = vmul.f32 %v6452_v2, %v1974_v16  ;;  %v1975_v12 = vsub.f32 %v1043_v39, %v7051_v46  ;;  %v5971_v13 = vpop.f32.mrb[35].mxu1  ;;  %v6460_v2 = vpop.eup %6459 }
 0x1e1   : > { %v6462_v39 = vpop.eup %6461 }
 0x1e2   : > { %v7303_v1 = vadd.f32 %v2006_v56, %v7049_v43  ;;  %v2007_v51 = vmul.f32 %v6456_v15, %v1975_v12  ;;  %v6464_v13 = vpop.eup %6463  ;;  %v1884_v15 = vadd.f32 1.0, %v6458_v24  ;;  %v1885_v22 = vadd.f32 1.0, %v6462_v39 }
 0x1e3   : > { %v6466_v24 = vpop.eup %6465 }
 0x1e4   : > { %v7306_v37 = vadd.f32 %v2007_v51, %v7051_v46  ;;  %v8605_v16 = vmax.f32 %v7303_v1, 0.0  ;;  %6475 = vrcp.f32 %v1884_v15  ;;  %v5550_v15 = vmul.f32 -1.442695, %v7139_v36 }
 0x1e5   : > { %v1089_v10 = vpop.f32.mrb[36].mxu1  ;;  %6477 = vpow2.f32 %v5548_v4 }
 0x1e6   : > { %v8604_v30 = vmax.f32 %v7306_v37, 0.0  ;;  %v1976_v14 = vsub.f32 %v1089_v10, %v7056_v49  ;;  %v5976_v26 = vpop.f32.mrb[37].mxu1  ;;  %6479 = vrcp.f32 %v1885_v22 }
 0x1e7   : > { %v1092_v43 = vpop.f32.mrb[38].mxu1  ;;  %6481 = vpow2.f32 %v5549_v41  ;;  %v5551_v41 = vmul.f32 -1.442695, %v7131_v32 }
 0x1e8   : > { %v2102_v46 = vpack.c.bf16 %v8604_v30, %v8605_v16  ;;  %v2008_v20 = vmul.f32 %v6460_v2, %v1976_v14  ;;  %v1977_v56 = vsub.f32 %v1092_v43, %v7060_v52  ;;  %v5977_v12 = vpop.f32.mrb[39].mxu1  ;;  %v6468_v2 = vpop.eup %6467  ;;  %v6830_v30 = vld [vmem:[%s6996_s9 + $0x28] sm:$0xff]  }
 0x1e9   : > { %v6470_v39 = vpop.eup %6469 }
 0x1ea   : > { %v7319_v6 = vadd.f32 %v2008_v20, %v7056_v49  ;;  %v2009_v51 = vmul.f32 %v6464_v13, %v1977_v56  ;;  %5581 = vmatmul.mubr.msk.bf16.vlgmr.msra.gmra.mrb[80].mxu0 %vm2198_vm2, %v2102_v46  ;;  %6070 = vmatprep.mubr.msk.bf16.mxu1 %vm2198_vm2, %v2102_v46  ;;  %v6472_v12 = vpop.eup %6471  ;;  %v1886_v13 = vadd.f32 1.0, %v6466_v24  ;;  %v1887_v34 = vadd.f32 1.0, %v6470_v39 }
 0x1eb   : > { %2289 = vmatprep.mubr.bf16.mxu0 %v8690_v7  ;;  %v6474_v24 = vpop.eup %6473 }
 0x1ec   : > { %v7325_v5 = vadd.f32 %v2009_v51, %v7060_v52  ;;  %v8603_v25 = vmax.f32 %v7319_v6, 0.0  ;;  %6483 = vrcp.f32 %v1886_v13  ;;  %v5552_v13 = vmul.f32 -1.442695, %v7136_v35 }
 0x1ed   : > { %v1138_v10 = vpop.f32.mrb[40].mxu1  ;;  %6485 = vpow2.f32 %v5550_v15 }
 0x1ee   : > { %v8602_v49 = vmax.f32 %v7325_v5, 0.0  ;;  %v1978_v14 = vsub.f32 %v1138_v10, %v7065_v55  ;;  %v5982_v26 = vpop.f32.mrb[41].mxu1  ;;  %6487 = vrcp.f32 %v1887_v34 }
 0x1ef   : > { %v1141_v43 = vpop.f32.mrb[42].mxu1  ;;  %6489 = vpow2.f32 %v5551_v41  ;;  %v5553_v41 = vmul.f32 -1.442695, %v7151_v47 }
 0x1f0   : > { %v2103_v52 = vpack.c.bf16 %v8602_v49, %v8603_v25  ;;  %v2010_v46 = vmul.f32 %v6468_v2, %v1978_v14  ;;  %v1979_v20 = vsub.f32 %v1141_v43, %v7069_v58  ;;  %v5983_v56 = vpop.f32.mrb[43].mxu1  ;;  %v6476_v2 = vpop.eup %6475 }
 0x1f1   : > { %v6478_v39 = vpop.eup %6477 }
 0x1f2   : > { %v7338_v4 = vadd.f32 %v2010_v46, %v7065_v55  ;;  %v2011_v51 = vmul.f32 %v6472_v12, %v1979_v20  ;;  %5582 = vmatmul.mubr.msk.bf16.gmra.mrb[84].mxu0 %vm2198_vm2, %v2103_v52  ;;  %6071 = vmatmul.mubr.msk.bf16.vlgmr.msra.gmra.mrb[80].mxu1 %vm2198_vm2, %v2103_v52  ;;  %v6480_v56 = vpop.eup %6479  ;;  %v1888_v12 = vadd.f32 1.0, %v6474_v24  ;;  %v1889_v32 = vadd.f32 1.0, %v6478_v39 }
 0x1f3   : > { %2299 = vmatprep.mubr.bf16.mxu0 %v8690_v7  ;;  %v6482_v24 = vpop.eup %6481 }
 0x1f4   : > { %v7344_v22 = vadd.f32 %v2011_v51, %v7069_v58  ;;  %v8601_v36 = vmax.f32 %v7338_v4, 0.0  ;;  %6491 = vrcp.f32 %v1888_v12  ;;  %v5554_v12 = vmul.f32 -1.442695, %v7156_v50 }
 0x1f5   : > { %v1187_v10 = vpop.f32.mrb[44].mxu1  ;;  %6493 = vpow2.f32 %v5552_v13 }
 0x1f6   : > { %v8600_v55 = vmax.f32 %v7344_v22, 0.0  ;;  %v1980_v14 = vsub.f32 %v1187_v10, %v7074_v61  ;;  %v5988_v26 = vpop.f32.mrb[45].mxu1  ;;  %6495 = vrcp.f32 %v1889_v32 }
 0x1f7   : > { %v1190_v43 = vpop.f32.mrb[46].mxu1  ;;  %6497 = vpow2.f32 %v5553_v41  ;;  %v5555_v41 = vmul.f32 -1.442695, %v7148_v44 }
 0x1f8   : > { %v2104_v58 = vpack.c.bf16 %v8600_v55, %v8601_v36  ;;  %v2012_v52 = vmul.f32 %v6476_v2, %v1980_v14  ;;  %v1981_v46 = vsub.f32 %v1190_v43, %v7078_v0  ;;  %v5989_v20 = vpop.f32.mrb[47].mxu1  ;;  %v6484_v2 = vpop.eup %6483  ;;  %v6829_v55 = vld [vmem:[%s6996_s9 + $0x20] sm:$0xff]  }
 0x1f9   : > { %v6486_v39 = vpop.eup %6485 }
 0x1fa   : > { %v7357_v15 = vadd.f32 %v2012_v52, %v7074_v61  ;;  %v2013_v51 = vmul.f32 %v6480_v56, %v1981_v46  ;;  %5583 = vmatmul.mubr.msk.bf16.gmra.mrb[88].mxu0 %vm2198_vm2, %v2104_v58  ;;  %6074 = vmatprep.mubr.msk.bf16.mxu1 %vm2198_vm2, %v2104_v58  ;;  %v6488_v20 = vpop.eup %6487  ;;  %v1890_v56 = vadd.f32 1.0, %v6482_v24  ;;  %v1891_v47 = vadd.f32 1.0, %v6486_v39 }
 0x1fb   : > { %2309 = vmatprep.mubr.bf16.mxu0 %v8690_v7  ;;  %v6490_v24 = vpop.eup %6489 }
 0x1fc   : > { %v7363_v34 = vadd.f32 %v2013_v51, %v7078_v0  ;;  %v8599_v35 = vmax.f32 %v7357_v15, 0.0  ;;  %6499 = vrcp.f32 %v1890_v56  ;;  %v5556_v56 = vmul.f32 -1.442695, %v7153_v48 }
 0x1fd   : > { %v1236_v10 = vpop.f32.mrb[48].mxu1  ;;  %6501 = vpow2.f32 %v5554_v12 }
 0x1fe   : > { %v8598_v61 = vmax.f32 %v7363_v34, 0.0  ;;  %v1982_v14 = vsub.f32 %v1236_v10, %v7091_v8  ;;  %v5994_v26 = vpop.f32.mrb[49].mxu1  ;;  %6503 = vrcp.f32 %v1891_v47 }
 0x1ff   : > { %v1239_v43 = vpop.f32.mrb[50].mxu1  ;;  %6505 = vpow2.f32 %v5555_v41  ;;  %v5557_v41 = vmul.f32 -1.442695, %v7168_v62 }
 0x200   : > { %v2105_v0 = vpack.c.bf16 %v8598_v61, %v8599_v35  ;;  %v2014_v58 = vmul.f32 %v6484_v2, %v1982_v14  ;;  %v1983_v52 = vsub.f32 %v1239_v43, %v7095_v11  ;;  %v5995_v46 = vpop.f32.mrb[51].mxu1  ;;  %v6492_v2 = vpop.eup %6491 }
 0x201   : > { %v6494_v39 = vpop.eup %6493 }
 0x202   : > { %v7376_v13 = vadd.f32 %v2014_v58, %v7091_v8  ;;  %v2015_v51 = vmul.f32 %v6488_v20, %v1983_v52  ;;  %5584 = vmatmul.mubr.msk.bf16.gmra.mrb[92].mxu0 %vm2198_vm2, %v2105_v0  ;;  %6075 = vmatmul.mubr.msk.bf16.gmra.mrb[84].mxu1 %vm2198_vm2, %v2105_v0  ;;  %v6496_v46 = vpop.eup %6495  ;;  %v1892_v20 = vadd.f32 1.0, %v6490_v24  ;;  %v1893_v44 = vadd.f32 1.0, %v6494_v39 }
 0x203   : > { %2319 = vmatprep.mubr.bf16.mxu0 %v8690_v7  ;;  %v6498_v24 = vpop.eup %6497 }
 0x204   : > { %v7382_v32 = vadd.f32 %v2015_v51, %v7095_v11  ;;  %v8597_v50 = vmax.f32 %v7376_v13, 0.0  ;;  %6507 = vrcp.f32 %v1892_v20  ;;  %v5558_v20 = vmul.f32 -1.442695, %v7173_v3 }
 0x205   : > { %v1285_v10 = vpop.f32.mrb[52].mxu1  ;;  %6509 = vpow2.f32 %v5556_v56 }
 0x206   : > { %v8596_v8 = vmax.f32 %v7382_v32, 0.0  ;;  %v1984_v14 = vsub.f32 %v1285_v10, %v7108_v18  ;;  %v6000_v26 = vpop.f32.mrb[53].mxu1  ;;  %6511 = vrcp.f32 %v1893_v44 }
 0x207   : > { %v1288_v43 = vpop.f32.mrb[54].mxu1  ;;  %6513 = vpow2.f32 %v5557_v41  ;;  %v5559_v41 = vmul.f32 -1.442695, %v7165_v59 }
 0x208   : > { %v2106_v11 = vpack.c.bf16 %v8596_v8, %v8597_v50  ;;  %v2016_v0 = vmul.f32 %v6492_v2, %v1984_v14  ;;  %v1985_v58 = vsub.f32 %v1288_v43, %v7112_v21  ;;  %v6001_v52 = vpop.f32.mrb[55].mxu1  ;;  %v6500_v2 = vpop.eup %6499  ;;  %v6828_v8 = vld [vmem:[%s6996_s9 + $0x18] sm:$0xff]  }
 0x209   : > { %v6502_v39 = vpop.eup %6501 }
 0x20a   : > { %v7395_v12 = vadd.f32 %v2016_v0, %v7108_v18  ;;  %v2017_v51 = vmul.f32 %v6496_v46, %v1985_v58  ;;  %5585 = vmatmul.mubr.msk.bf16.gmra.mrb[96].mxu0 %vm2198_vm2, %v2106_v11  ;;  %6078 = vmatprep.mubr.msk.bf16.mxu1 %vm2198_vm2, %v2106_v11  ;;  %v6504_v52 = vpop.eup %6503  ;;  %v1894_v46 = vadd.f32 1.0, %v6498_v24  ;;  %v1895_v62 = vadd.f32 1.0, %v6502_v39 }
 0x20b   : > { %2329 = vmatprep.mubr.bf16.mxu0 %v8690_v7  ;;  %v6506_v24 = vpop.eup %6505 }
 0x20c   : > { %v7401_v47 = vadd.f32 %v2017_v51, %v7112_v21  ;;  %v8595_v48 = vmax.f32 %v7395_v12, 0.0  ;;  %6515 = vrcp.f32 %v1894_v46  ;;  %v5560_v46 = vmul.f32 -1.442695, %v7170_v63 }
 0x20d   : > { %v1334_v10 = vpop.f32.mrb[56].mxu1  ;;  %6517 = vpow2.f32 %v5558_v20 }
 0x20e   : > { %v8594_v18 = vmax.f32 %v7401_v47, 0.0  ;;  %v1986_v14 = vsub.f32 %v1334_v10, %v7125_v28  ;;  %v6006_v26 = vpop.f32.mrb[57].mxu1  ;;  %6519 = vrcp.f32 %v1895_v62 }
 0x20f   : > { %v1337_v43 = vpop.f32.mrb[58].mxu1  ;;  %6521 = vpow2.f32 %v5559_v41  ;;  %v5561_v41 = vmul.f32 -1.442695, %v7185_v23 }
 0x210   : > { %v2107_v21 = vpack.c.bf16 %v8594_v18, %v8595_v48  ;;  %v2018_v11 = vmul.f32 %v6500_v2, %v1986_v14  ;;  %v1987_v0 = vsub.f32 %v1337_v43, %v7129_v31  ;;  %v6007_v58 = vpop.f32.mrb[59].mxu1  ;;  %v6508_v2 = vpop.eup %6507 }
 0x211   : > { %v6510_v39 = vpop.eup %6509 }
 0x212   : > { %v7414_v56 = vadd.f32 %v2018_v11, %v7125_v28  ;;  %v2019_v51 = vmul.f32 %v6504_v52, %v1987_v0  ;;  %5586 = vmatmul.mubr.msk.bf16.gmra.mrb[100].mxu0 %vm2198_vm2, %v2107_v21  ;;  %6079 = vmatmul.mubr.msk.bf16.gmra.mrb[88].mxu1 %vm2198_vm2, %v2107_v21  ;;  %v6512_v58 = vpop.eup %6511  ;;  %v1896_v52 = vadd.f32 1.0, %v6506_v24  ;;  %v1897_v59 = vadd.f32 1.0, %v6510_v39 }
 0x213   : > { %2339 = vmatprep.mubr.bf16.mxu0 %v8690_v7  ;;  %v6514_v24 = vpop.eup %6513 }
 0x214   : > { %v7420_v44 = vadd.f32 %v2019_v51, %v7129_v31  ;;  %v8593_v3 = vmax.f32 %v7414_v56, 0.0  ;;  %6523 = vrcp.f32 %v1896_v52  ;;  %v5562_v52 = vmul.f32 -1.442695, %v7190_v29 }
 0x215   : > { %v1383_v10 = vpop.f32.mrb[60].mxu1  ;;  %6525 = vpow2.f32 %v5560_v46 }
 0x216   : > { %8692 = vst [vmem:[#allocation14_spill] sm:$0xff] %v7420_v44  ;;  %v8592_v28 = vmax.f32 %v7420_v44, 0.0  ;;  %v1988_v14 = vsub.f32 %v1383_v10, %v7142_v38  ;;  %v6012_v26 = vpop.f32.mrb[61].mxu1  ;;  %6527 = vrcp.f32 %v1897_v59 }
 0x217   : > { %v1386_v43 = vpop.f32.mrb[62].mxu1  ;;  %6529 = vpow2.f32 %v5561_v41  ;;  %v5563_v41 = vmul.f32 -1.442695, %v7182_v19 }
 0x218   : > { %v2108_v31 = vpack.c.bf16 %v8592_v28, %v8593_v3  ;;  %v2020_v21 = vmul.f32 %v6508_v2, %v1988_v14  ;;  %v1989_v11 = vsub.f32 %v1386_v43, %v7146_v42  ;;  %v6013_v0 = vpop.f32.mrb[63].mxu1  ;;  %v6516_v2 = vpop.eup %6515  ;;  %v6827_v28 = vld [vmem:[%s6996_s9 + $0x10] sm:$0xff]  }
 0x219   : > { %v6518_v39 = vpop.eup %6517 }
 0x21a   : > { %v7433_v20 = vadd.f32 %v2020_v21, %v7142_v38  ;;  %v2021_v51 = vmul.f32 %v6512_v58, %v1989_v11  ;;  %5587 = vmatmul.mubr.msk.bf16.gmra.mrb[104].mxu0 %vm2198_vm2, %v2108_v31  ;;  %6082 = vmatprep.mubr.msk.bf16.mxu1 %vm2198_vm2, %v2108_v31  ;;  %v6520_v0 = vpop.eup %6519  ;;  %v1898_v58 = vadd.f32 1.0, %v6514_v24  ;;  %v1899_v23 = vadd.f32 1.0, %v6518_v39 }
 0x21b   : > { %2349 = vmatprep.mubr.bf16.mxu0 %v8690_v7  ;;  %v6522_v24 = vpop.eup %6521 }
 0x21c   : > { %8693 = vst [vmem:[#allocation15_spill] sm:$0xff] %v7433_v20  ;;  %v7439_v62 = vadd.f32 %v2021_v51, %v7146_v42  ;;  %v8591_v63 = vmax.f32 %v7433_v20, 0.0  ;;  %6531 = vrcp.f32 %v1898_v58  ;;  %v5564_v58 = vmul.f32 -1.442695, %v7187_v27  ;;  %v6836_v20 = vld [vmem:[%s6996_s9 + $0x58] sm:$0xff]  }
 0x21d   : > { %v1432_v10 = vpop.f32.mrb[64].mxu0  ;;  %6533 = vpow2.f32 %v5562_v52 }
 0x21e   : > { %8694 = vst [vmem:[#allocation16_spill] sm:$0xff] %v7439_v62  ;;  %v8590_v38 = vmax.f32 %v7439_v62, 0.0  ;;  %v1990_v14 = vsub.f32 %v1432_v10, %v7159_v53  ;;  %v6018_v26 = vpop.f32.mrb[65].mxu0  ;;  %6535 = vrcp.f32 %v1899_v23 }
 0x21f   : > { %v1435_v43 = vpop.f32.mrb[66].mxu0  ;;  %6537 = vpow2.f32 %v5563_v41  ;;  %v5565_v41 = vmul.f32 -1.442695, %v7202_v54 }
 0x220   : > { %v2109_v42 = vpack.c.bf16 %v8590_v38, %v8591_v63  ;;  %v2022_v31 = vmul.f32 %v6516_v2, %v1990_v14  ;;  %v1991_v21 = vsub.f32 %v1435_v43, %v7163_v57  ;;  %v6019_v11 = vpop.f32.mrb[67].mxu0  ;;  %v6524_v2 = vpop.eup %6523 }
 0x221   : > { %v6526_v39 = vpop.eup %6525 }
 0x222   : > { %v7452_v46 = vadd.f32 %v2022_v31, %v7159_v53  ;;  %v2023_v51 = vmul.f32 %v6520_v0, %v1991_v21  ;;  %5588 = vmatmul.mubr.msk.bf16.gmra.mrb[108].mxu0 %vm2198_vm2, %v2109_v42  ;;  %6083 = vmatmul.mubr.msk.bf16.gmra.mrb[92].mxu1 %vm2198_vm2, %v2109_v42  ;;  %v6528_v11 = vpop.eup %6527  ;;  %v1900_v0 = vadd.f32 1.0, %v6522_v24  ;;  %v1901_v19 = vadd.f32 1.0, %v6526_v39 }
 0x223   : > { %2359 = vmatprep.mubr.bf16.mxu0 %v8690_v7  ;;  %v6530_v24 = vpop.eup %6529 }
 0x224   : > { %8695 = vst [vmem:[#allocation17_spill] sm:$0xff] %v7452_v46  ;;  %v7458_v59 = vadd.f32 %v2023_v51, %v7163_v57  ;;  %v8589_v29 = vmax.f32 %v7452_v46, 0.0  ;;  %6539 = vrcp.f32 %v1900_v0  ;;  %v5566_v0 = vmul.f32 -1.442695, %v7207_v60 }
 0x225   : > { %v1481_v10 = vpop.f32.mrb[64].mxu1  ;;  %6541 = vpow2.f32 %v5564_v58 }
 0x226   : > { %8696 = vst [vmem:[#allocation18_spill] sm:$0xff] %v7458_v59  ;;  %v8580_v53 = vmax.f32 %v7458_v59, 0.0  ;;  %v1992_v14 = vsub.f32 %v1481_v10, %v7176_v9  ;;  %v6024_v26 = vpop.f32.mrb[65].mxu1  ;;  %6543 = vrcp.f32 %v1901_v19  ;;  %v6834_v59 = vld [vmem:[%s6996_s9 + $0x48] sm:$0xff]  }
 0x227   : > { %v1484_v43 = vpop.f32.mrb[66].mxu1  ;;  %6545 = vpow2.f32 %v5565_v41 }
 0x228   : > { %v2110_v57 = vpack.c.bf16 %v8580_v53, %v8589_v29  ;;  %v2024_v42 = vmul.f32 %v6524_v2, %v1992_v14  ;;  %v1993_v31 = vsub.f32 %v1484_v43, %v7180_v17  ;;  %v6025_v21 = vpop.f32.mrb[67].mxu1  ;;  %v6532_v2 = vpop.eup %6531 }
 0x229   : > { %v6534_v39 = vpop.eup %6533 }
 0x22a   : > { %v7471_v52 = vadd.f32 %v2024_v42, %v7176_v9  ;;  %v2025_v51 = vmul.f32 %v6528_v11, %v1993_v31  ;;  %5589 = vmatmul.mubr.msk.bf16.gmra.mrb[112].mxu0 %vm2198_vm2, %v2110_v57  ;;  %6086 = vmatprep.mubr.msk.bf16.mxu1 %vm2198_vm2, %v2110_v57  ;;  %v6536_v21 = vpop.eup %6535  ;;  %v1902_v11 = vadd.f32 1.0, %v6530_v24  ;;  %v1903_v54 = vadd.f32 1.0, %v6534_v39 }
 0x22b   : > { %2369 = vmatprep.mubr.bf16.mxu0 %v8690_v7  ;;  %v6538_v24 = vpop.eup %6537 }
 0x22c   : > { %8697 = vst [vmem:[#allocation19_spill] sm:$0xff] %v7471_v52  ;;  %v7477_v23 = vadd.f32 %v2025_v51, %v7180_v17  ;;  %v8579_v27 = vmax.f32 %v7471_v52, 0.0  ;;  %6547 = vrcp.f32 %v1902_v11 }
 0x22d   : > { %v1530_v10 = vpop.f32.mrb[68].mxu0  ;;  %6549 = vpow2.f32 %v5566_v0 }
 0x22e   : > { %8698 = vst [vmem:[#allocation20_spill] sm:$0xff] %v7477_v23  ;;  %v8574_v9 = vmax.f32 %v7477_v23, 0.0  ;;  %v1994_v14 = vsub.f32 %v1530_v10, %v7193_v33  ;;  %v6030_v26 = vpop.f32.mrb[69].mxu0  ;;  %6551 = vrcp.f32 %v1903_v54 }
 0x22f   : > { %v1533_v43 = vpop.f32.mrb[70].mxu0 }
 0x230   : > { %v2111_v17 = vpack.c.bf16 %v8574_v9, %v8579_v27  ;;  %v2026_v57 = vmul.f32 %v6532_v2, %v1994_v14  ;;  %v1995_v42 = vsub.f32 %v1533_v43, %v7197_v40  ;;  %v6031_v31 = vpop.f32.mrb[71].mxu0  ;;  %v8701_v14 = vld [vmem:[#allocation5_spill] sm:$0xff]  ;;  %v6540_v43 = vpop.eup %6539  ;;  %v8704_v9 = vld [vmem:[#allocation4_spill] sm:$0xff] }
 0x231   : > { %v8703_v31 = vld [vmem:[#allocation6_spill] sm:$0xff] }
 0x232   : > { %v7490_v58 = vadd.f32 %v2026_v57, %v7193_v33  ;;  %v2027_v51 = vmul.f32 %v6536_v21, %v1995_v42  ;;  %5590 = vmatmul.mubr.msk.bf16.gmra.mrb[116].mxu0 %vm2198_vm2, %v2111_v17  ;;  %6087 = vmatmul.mubr.msk.bf16.gmra.mrb[96].mxu1 %vm2198_vm2, %v2111_v17  ;;  %v6542_v17 = vpop.eup %6541  ;;  %v8702_v57 = vld [vmem:[#allocation3_spill] sm:$0xff] }
 0x233   : > { %2379 = vmatprep.mubr.bf16.mxu0 %v8690_v7  ;;  %v5567_v41 = vmul.f32 -1.442695, %v8702_v57  ;;  %v6544_v0 = vpop.eup %6543  ;;  %v1905_v57 = vadd.f32 1.0, %v6542_v17 }
 0x234   : > { %8699 = vst [vmem:[#allocation21_spill] sm:$0xff] %v7490_v58  ;;  %v7496_v19 = vadd.f32 %v2027_v51, %v7197_v40  ;;  %v8576_v60 = vmax.f32 %v7490_v58, 0.0  ;;  %v1904_v51 = vadd.f32 1.0, %v6538_v24  ;;  %v6546_v24 = vpop.eup %6545 }
 0x235   : > { %v1579_v10 = vpop.f32.mrb[68].mxu1  ;;  %6553 = vpow2.f32 %v5567_v41 }
 0x236   : > { %8700 = vst [vmem:[#allocation22_spill] sm:$0xff] %v7496_v19  ;;  %v8575_v33 = vmax.f32 %v7496_v19, 0.0  ;;  %v1996_v26 = vsub.f32 %v1579_v10, %v8701_v14  ;;  %v6036_v2 = vpop.f32.mrb[69].mxu1  ;;  %v5568_v10 = vmul.f32 -1.442695, %v8704_v9  ;;  %6555 = vrcp.f32 %v1904_v51  ;;  %v6833_v19 = vld [vmem:[%s6996_s9 + $0x40] sm:$0xff]  }
 0x237   : > { %v1582_v39 = vpop.f32.mrb[70].mxu1 }
 0x238   : > { %v2112_v40 = vpack.c.bf16 %v8575_v33, %v8576_v60  ;;  %v2028_v42 = vmul.f32 %v6540_v43, %v1996_v26  ;;  %v1997_v21 = vsub.f32 %v1582_v39, %v8703_v31  ;;  %v6037_v11 = vpop.f32.mrb[71].mxu1  ;;  %6557 = vpow2.f32 %v5568_v10  ;;  %v8707_v39 = vld [vmem:[#allocation7_spill] sm:$0xff] }
 0x239   : > { %v6548_v11 = vpop.eup %6547  ;;  %6559 = vrcp.f32 %v1905_v57  ;;  %v1906_v33 = vadd.f32 1.0, %v6546_v24 }
 0x23a   : > { %v7509_v2 = vadd.f32 %v2028_v42, %v8701_v14  ;;  %v2029_v54 = vmul.f32 %v6544_v0, %v1997_v21  ;;  %5591 = vmatmul.mubr.msk.bf16.gmra.mrb[120].mxu0 %vm2198_vm2, %v2112_v40  ;;  %6090 = vmatprep.mubr.msk.bf16.mxu1 %vm2198_vm2, %v2112_v40  ;;  %v6550_v40 = vpop.eup %6549  ;;  %v8708_v0 = vld [vmem:[#allocation8_spill] sm:$0xff] }
 0x23b   : > { %2389 = vmatprep.mubr.bf16.mxu0 %v8690_v7  ;;  %v1907_v57 = vadd.f32 1.0, %v6550_v40  ;;  %6561 = vrcp.f32 %v1906_v33  ;;  %v8712_v33 = vld [vmem:[#allocation10_spill] sm:$0xff] }
 0x23c   : > { %8705 = vst [vmem:[#allocation5_spill] sm:$0xff] %v7509_v2  ;;  %v7515_v26 = vadd.f32 %v2029_v54, %v8703_v31  ;;  %v8578_v9 = vmax.f32 %v7509_v2, 0.0  ;;  %v6552_v54 = vpop.eup %6551 }
 0x23d   : > { %v1628_v43 = vpop.f32.mrb[72].mxu0  ;;  %6563 = vrcp.f32 %v1907_v57 }
 0x23e   : > { %8706 = vst [vmem:[#allocation3_spill] sm:$0xff] %v7515_v26  ;;  %v8577_v14 = vmax.f32 %v7515_v26, 0.0  ;;  %v1998_v42 = vsub.f32 %v1628_v43, %v8707_v39  ;;  %v6042_v21 = vpop.f32.mrb[73].mxu0 }
 0x23f   : > { %v1631_v17 = vpop.f32.mrb[74].mxu0 }
 0x240   : > { %v2113_v41 = vpack.c.bf16 %v8577_v14, %v8578_v9  ;;  %v2030_v31 = vmul.f32 %v6548_v11, %v1998_v42  ;;  %v1999_v51 = vsub.f32 %v1631_v17, %v8708_v0  ;;  %v6043_v10 = vpop.f32.mrb[75].mxu0  ;;  %v6554_v11 = vpop.eup %6553 }
 0x241   : > { %v6556_v10 = vpop.eup %6555  ;;  %v1908_v27 = vadd.f32 1.0, %v6554_v11 }
 0x242   : > { %v7526_v60 = vadd.f32 %v2030_v31, %v8707_v39  ;;  %v2031_v43 = vmul.f32 %v6552_v54, %v1999_v51  ;;  %5592 = vmatmul.mubr.msk.bf16.gmra.mrb[124].mxu0 %vm2198_vm2, %v2113_v41  ;;  %6091 = vmatmul.mubr.msk.bf16.gmra.mrb[100].mxu1 %vm2198_vm2, %v2113_v41  ;;  %v8711_v39 = vld [vmem:[#allocation9_spill] sm:$0xff]  ;;  %v6558_v41 = vpop.eup %6557 }
 0x243   : > { %2399 = vmatprep.mubr.bf16.mxu0 %v8690_v7  ;;  %v6560_v9 = vpop.eup %6559  ;;  %v1909_v57 = vadd.f32 1.0, %v6558_v41  ;;  %6565 = vrcp.f32 %v1908_v27 }
 0x244   : > { %8709 = vst [vmem:[#allocation6_spill] sm:$0xff] %v7526_v60  ;;  %v7532_v21 = vadd.f32 %v2031_v43, %v8708_v0  ;;  %v8582_v17 = vmax.f32 %v7526_v60, 0.0 }
 0x245   : > { %v1677_v42 = vpop.f32.mrb[72].mxu1  ;;  %6567 = vrcp.f32 %v1909_v57 }
 0x246   : > { %8710 = vst [vmem:[#allocation4_spill] sm:$0xff] %v7532_v21  ;;  %v8581_v24 = vmax.f32 %v7532_v21, 0.0  ;;  %v2000_v31 = vsub.f32 %v1677_v42, %v8711_v39  ;;  %v6048_v51 = vpop.f32.mrb[73].mxu1  ;;  %v6832_v21 = vld [vmem:[%s6996_s9 + $0x38] sm:$0xff]  }
 0x247   : > { %v1680_v54 = vpop.f32.mrb[74].mxu1 }
 0x248   : > { %v2114_v40 = vpack.c.bf16 %v8581_v24, %v8582_v17  ;;  %v2032_v0 = vmul.f32 %v6556_v10, %v2000_v31  ;;  %v2001_v43 = vsub.f32 %v1680_v54, %v8712_v33  ;;  %v6049_v14 = vpop.f32.mrb[75].mxu1  ;;  %v8715_v10 = vld [vmem:[#allocation11_spill] sm:$0xff] }
 0x24a   : > { %v7543_v53 = vadd.f32 %v2032_v0, %v8711_v39  ;;  %v2033_v42 = vmul.f32 %v6560_v9, %v2001_v43  ;;  %5593 = vmatmul.mubr.msk.bf16.gmra.mrb[128].mxu0 %vm2198_vm2, %v2114_v40  ;;  %6094 = vmatprep.mubr.msk.bf16.mxu1 %vm2198_vm2, %v2114_v40  ;;  %v6562_v9 = vpop.eup %6561 }
 0x24b   : > { %2409 = vmatprep.mubr.bf16.mxu0 %v8690_v7 }
 0x24c   : > { %8713 = vst [vmem:[#allocation7_spill] sm:$0xff] %v7543_v53  ;;  %v7549_v51 = vadd.f32 %v2033_v42, %v8712_v33  ;;  %v8584_v14 = vmax.f32 %v7543_v53, 0.0  ;;  %v8716_v33 = vld [vmem:[#allocation12_spill] sm:$0xff]  ;;  %v6564_v42 = vpop.eup %6563 }
 0x24d   : > { %v1726_v31 = vpop.f32.mrb[76].mxu0 }
 0x24e   : > { %8714 = vst [vmem:[#allocation8_spill] sm:$0xff] %v7549_v51  ;;  %v8583_v11 = vmax.f32 %v7549_v51, 0.0  ;;  %v2002_v39 = vsub.f32 %v1726_v31, %v8715_v10  ;;  %v6054_v54 = vpop.f32.mrb[77].mxu0 }
 0x24f   : > { %v1729_v0 = vpop.f32.mrb[78].mxu0 }
 0x250   : > { %v2115_v41 = vpack.c.bf16 %v8583_v11, %v8584_v14  ;;  %v2034_v40 = vmul.f32 %v6562_v9, %v2002_v39  ;;  %v2003_v43 = vsub.f32 %v1729_v0, %v8716_v33  ;;  %v6055_v27 = vpop.f32.mrb[79].mxu0  ;;  %v8719_v9 = vld [vmem:[#allocation13_spill] sm:$0xff] }
 0x252   : > { %v7560_v24 = vadd.f32 %v2034_v40, %v8715_v10  ;;  %v2035_v17 = vmul.f32 %v6564_v42, %v2003_v43  ;;  %5594 = vmatmul.mubr.msk.bf16.gmra.mrb[132].mxu0 %vm2198_vm2, %v2115_v41  ;;  %6095 = vmatmul.mubr.msk.bf16.gmra.mrb[104].mxu1 %vm2198_vm2, %v2115_v41  ;;  %v6566_v10 = vpop.eup %6565 }
 0x253   : > { %2419 = vmatprep.mubr.bf16.mxu0 %v8690_v7 }
 0x254   : > { %8717 = vst [vmem:[#allocation9_spill] sm:$0xff] %v7560_v24  ;;  %v7566_v57 = vadd.f32 %v2035_v17, %v8716_v33  ;;  %v8588_v39 = vmax.f32 %v7560_v24, 0.0  ;;  %v6568_v33 = vpop.eup %6567 }
 0x255   : > { %v1775_v31 = vpop.f32.mrb[76].mxu1 }
 0x256   : > { %8718 = vst [vmem:[#allocation10_spill] sm:$0xff] %v7566_v57  ;;  %v8587_v54 = vmax.f32 %v7566_v57, 0.0  ;;  %v2004_v0 = vsub.f32 %v1775_v31, %v8719_v9  ;;  %v6060_v27 = vpop.f32.mrb[77].mxu1  ;;  %v6831_v57 = vld [vmem:[%s6996_s9 + $0x30] sm:$0xff]  }
 0x257   : > { %v1778_v40 = vpop.f32.mrb[78].mxu1 }
 0x258   : > { %v2116_v41 = vpack.c.bf16 %v8587_v54, %v8588_v39  ;;  %v2036_v43 = vmul.f32 %v6566_v10, %v2004_v0  ;;  %v2005_v42 = vsub.f32 %v1778_v40, %v7266_v45  ;;  %v6061_v17 = vpop.f32.mrb[79].mxu1  ;;  %v8722_v10 = vmov 0.0   ;;  %v6826_v39 = vld [vmem:[%s6996_s9 + $0x8] sm:$0xff]  }
 0x25a   : > { %v7577_v11 = vadd.f32 %v2036_v43, %v8719_v9  ;;  %v2037_v14 = vmul.f32 %v6568_v33, %v2005_v42  ;;  %5595 = vmatmul.mubr.msk.bf16.gmra.mrb[136].mxu0 %vm2198_vm2, %v2116_v41  ;;  %6098 = vmatprep.mubr.msk.bf16.mxu1 %vm2198_vm2, %v2116_v41  ;;  %v6825_v33 = vld [vmem:[%s6996_s9] sm:$0xff]  }
 0x25b   : > { %2429 = vmatprep.mubr.bf16.mxu0 %v8690_v7 }
 0x25c   : > { %8720 = vst [vmem:[#allocation11_spill] sm:$0xff] %v7577_v11  ;;  %v7583_v31 = vadd.f32 %v2037_v14, %v7266_v45  ;;  %v8586_v27 = vmax.f32 %v7577_v11, 0.0 }
 0x25e   : > { %8721 = vst [vmem:[#allocation12_spill] sm:$0xff] %v7583_v31  ;;  %v8585_v0 = vmax.f32 %v7583_v31, 0.0 }
 0x260   : > { %v2117_v9 = vpack.c.bf16 %v8585_v0, %v8586_v27 }
 0x262   : > { %5596 = vmatmul.mubr.msk.bf16.gmra.mrb[140].mxu0 %vm2198_vm2, %v2117_v9  ;;  %6099 = vmatmul.mubr.msk.bf16.gmra.mrb[108].mxu1 %vm2198_vm2, %v2117_v9 }
 0x263   : > { %6104 = vmatprep.mubr.msk.bf16.mxu1 %vm6867_vm0, %v8722_v10  ;;  %6152 = vmatprep.mubr.msk.bf16.mxu0 %vm6867_vm0, %v8722_v10 }
 0x2bd   : > { %v2281_v45 = vpop.f32.mrb[80].mxu0 }
 0x2be   : > { %v7597_v14 = vpop.f32.mrb[81].mxu0 }
 0x2bf   : > { %v2285_v40 = vpop.f32.mrb[82].mxu0 }
 0x2c0   : > { %v2601_v41 = vpack.c.bf16 %v2285_v40, %v2281_v45  ;;  %v7599_v43 = vpop.f32.mrb[83].mxu0 }
 0x2c2   : > { %6103 = vmatpush3.bf16.msra.mxu1 %v2601_v41 }
 0x2c3   : > { %6108 = vmatprep.subr.bf16.mxu1 %v8722_v10 }
 0x2c5   : > { %v2291_v42 = vpop.f32.mrb[84].mxu0  ;;  %v7602_v17 = vpop.f32.mrb[80].mxu1  ;;  %6105 = vmatmul.mubr.msk.bf16.vlgmr.msra.gmra.mrb[112].mxu1 %vm1002_vm1, %v6825_v33 }
 0x2c6   : > { %v7606_v9 = vpop.f32.mrb[85].mxu0  ;;  %v7608_v0 = vpop.f32.mrb[81].mxu1  ;;  %6110 = vmatprep.mubr.msk.bf16.mxu1 %vm6867_vm0, %v8722_v10 }
 0x2c7   : > { %v2295_v45 = vpop.f32.mrb[86].mxu0  ;;  %v7612_v40 = vpop.f32.mrb[82].mxu1 }
 0x2c8   : > { %v2602_v41 = vpack.c.bf16 %v2295_v45, %v2291_v42  ;;  %v7614_v27 = vpop.f32.mrb[87].mxu0  ;;  %v7616_v54 = vpop.f32.mrb[83].mxu1 }
 0x2ca   : > { %6109 = vmatpush3.bf16.msra.mxu1 %v2602_v41 }
 0x2cb   : > { %6114 = vmatprep.subr.bf16.mxu1 %v8722_v10 }
 0x2cd   : > { %v2301_v33 = vpop.f32.mrb[88].mxu0  ;;  %6111 = vmatmul.mubr.msk.bf16.vlgmr.msra.gmra.mrb[116].mxu1 %vm1002_vm1, %v6826_v39 }
 0x2ce   : > { %v7621_v29 = vpop.f32.mrb[89].mxu0  ;;  %6116 = vmatprep.mubr.msk.bf16.mxu1 %vm6867_vm0, %v8722_v10 }
 0x2cf   : > { %v2305_v38 = vpop.f32.mrb[90].mxu0 }
 0x2d0   : > { %v2603_v63 = vpack.c.bf16 %v2305_v38, %v2301_v33  ;;  %v7625_v42 = vpop.f32.mrb[91].mxu0 }
 0x2d2   : > { %6115 = vmatpush3.bf16.msra.mxu1 %v2603_v63 }
 0x2d3   : > { %6120 = vmatprep.subr.bf16.mxu1 %v8722_v10 }
 0x2d5   : > { %v2311_v45 = vpop.f32.mrb[92].mxu0  ;;  %v7628_v41 = vpop.f32.mrb[84].mxu1  ;;  %6117 = vmatmul.mubr.msk.bf16.vlgmr.msra.gmra.mrb[120].mxu1 %vm1002_vm1, %v6827_v28 }
 0x2d6   : > { %v7632_v39 = vpop.f32.mrb[93].mxu0  ;;  %v7634_v3 = vpop.f32.mrb[85].mxu1  ;;  %6122 = vmatprep.mubr.msk.bf16.mxu1 %vm6867_vm0, %v8722_v10 }
 0x2d7   : > { %v2315_v38 = vpop.f32.mrb[94].mxu0  ;;  %v7638_v33 = vpop.f32.mrb[86].mxu1 }
 0x2d8   : > { %v2604_v63 = vpack.c.bf16 %v2315_v38, %v2311_v45  ;;  %v7640_v18 = vpop.f32.mrb[95].mxu0  ;;  %v7642_v48 = vpop.f32.mrb[87].mxu1 }
 0x2da   : > { %6121 = vmatpush3.bf16.msra.mxu1 %v2604_v63 }
 0x2db   : > { %6126 = vmatprep.subr.bf16.mxu1 %v8722_v10 }
 0x2dd   : > { %v2321_v28 = vpop.f32.mrb[96].mxu0  ;;  %6123 = vmatmul.mubr.msk.bf16.vlgmr.msra.gmra.mrb[124].mxu1 %vm1002_vm1, %v6828_v8 }
 0x2de   : > { %v7647_v50 = vpop.f32.mrb[97].mxu0  ;;  %6128 = vmatprep.mubr.msk.bf16.mxu1 %vm6867_vm0, %v8722_v10 }
 0x2df   : > { %v2325_v61 = vpop.f32.mrb[98].mxu0 }
 0x2e0   : > { %v2605_v35 = vpack.c.bf16 %v2325_v61, %v2321_v28  ;;  %v7651_v45 = vpop.f32.mrb[99].mxu0 }
 0x2e2   : > { %6127 = vmatpush3.bf16.msra.mxu1 %v2605_v35 }
 0x2e3   : > { %6132 = vmatprep.subr.bf16.mxu1 %v8722_v10 }
 0x2e5   : > { %v2331_v38 = vpop.f32.mrb[100].mxu0  ;;  %v7654_v63 = vpop.f32.mrb[88].mxu1  ;;  %6129 = vmatmul.mubr.msk.bf16.vlgmr.msra.gmra.mrb[128].mxu1 %vm1002_vm1, %v6829_v55 }
 0x2e6   : > { %v7658_v8 = vpop.f32.mrb[101].mxu0  ;;  %v7660_v36 = vpop.f32.mrb[89].mxu1  ;;  %6134 = vmatprep.mubr.msk.bf16.mxu1 %vm6867_vm0, %v8722_v10 }
 0x2e7   : > { %v2335_v61 = vpop.f32.mrb[102].mxu0  ;;  %v7664_v28 = vpop.f32.mrb[90].mxu1 }
 0x2e8   : > { %v2606_v35 = vpack.c.bf16 %v2335_v61, %v2331_v38  ;;  %v7666_v49 = vpop.f32.mrb[103].mxu0  ;;  %v7668_v25 = vpop.f32.mrb[91].mxu1 }
 0x2ea   : > { %6133 = vmatpush3.bf16.msra.mxu1 %v2606_v35 }
 0x2eb   : > { %6138 = vmatprep.subr.bf16.mxu1 %v8722_v10 }
 0x2ed   : > { %v2341_v55 = vpop.f32.mrb[104].mxu0  ;;  %6135 = vmatmul.mubr.msk.bf16.vlgmr.msra.gmra.mrb[132].mxu1 %vm1002_vm1, %v6830_v30 }
 0x2ee   : > { %v7673_v16 = vpop.f32.mrb[105].mxu0  ;;  %6140 = vmatprep.mubr.msk.bf16.mxu1 %vm6867_vm0, %v8722_v10 }
 0x2ef   : > { %v2345_v31 = vpop.f32.mrb[106].mxu0 }
 0x2f0   : > { %v2607_v11 = vpack.c.bf16 %v2345_v31, %v2341_v55  ;;  %v7677_v38 = vpop.f32.mrb[107].mxu0 }
 0x2f2   : > { %6139 = vmatpush3.bf16.msra.mxu1 %v2607_v11 }
 0x2f3   : > { %6144 = vmatprep.subr.bf16.mxu1 %v8722_v10 }
 0x2f5   : > { %v2351_v61 = vpop.f32.mrb[108].mxu0  ;;  %v7680_v35 = vpop.f32.mrb[92].mxu1  ;;  %6141 = vmatmul.mubr.msk.bf16.vlgmr.msra.gmra.mrb[136].mxu1 %vm1002_vm1, %v6831_v57 }
 0x2f6   : > { %v7684_v30 = vpop.f32.mrb[109].mxu0  ;;  %v7686_v24 = vpop.f32.mrb[93].mxu1  ;;  %6146 = vmatprep.mubr.msk.bf16.mxu1 %vm6867_vm0, %v8722_v10 }
 0x2f7   : > { %v2355_v31 = vpop.f32.mrb[110].mxu0  ;;  %v7690_v55 = vpop.f32.mrb[94].mxu1 }
 0x2f8   : > { %v2608_v11 = vpack.c.bf16 %v2355_v31, %v2351_v61  ;;  %v7692_v51 = vpop.f32.mrb[111].mxu0  ;;  %v7694_v53 = vpop.f32.mrb[95].mxu1 }
 0x2f9   : > { %8723 = vst [vmem:[#allocation13_spill] sm:$0xff] %v7692_v51 }
 0x2fa   : > { %6145 = vmatpush3.bf16.msra.mxu1 %v2608_v11 }
 0x2fb   : > { %6156 = vmatprep.subr.bf16.mxu1 %v8722_v10 }
 0x2fd   : > { %v2361_v57 = vpop.f32.mrb[112].mxu0  ;;  %6147 = vmatmul.mubr.msk.bf16.vlgmr.msra.gmra.mrb[140].mxu1 %vm1002_vm1, %v6832_v21 }
 0x2fe   : > { %v7699_v60 = vpop.f32.mrb[113].mxu0  ;;  %6158 = vmatprep.mubr.msk.bf16.mxu1 %vm6867_vm0, %v8722_v10 }
 0x2ff   : > { %8724 = vst [vmem:[#allocation23_spill] sm:$0xff] %v7699_v60  ;;  %v2365_v26 = vpop.f32.mrb[114].mxu0 }
 0x300   : > { %v2609_v2 = vpack.c.bf16 %v2365_v26, %v2361_v57  ;;  %v7703_v61 = vpop.f32.mrb[115].mxu0 }
 0x301   : > { %8725 = vst [vmem:[#allocation24_spill] sm:$0xff] %v7703_v61 }
 0x302   : > { %6151 = vmatpush3.bf16.msra.mxu0 %v2609_v2 }
 0x303   : > { %6162 = vmatprep.subr.bf16.mxu0 %v8722_v10 }
 0x305   : > { %v2371_v31 = vpop.f32.mrb[116].mxu0  ;;  %v7706_v11 = vpop.f32.mrb[96].mxu1  ;;  %6153 = vmatmul.mubr.msk.bf16.vlgmr.msra.gmra.mrb[144].mxu0 %vm1002_vm1, %v6833_v19 }
 0x306   : > { %v7710_v21 = vpop.f32.mrb[117].mxu0  ;;  %v7712_v58 = vpop.f32.mrb[97].mxu1  ;;  %6164 = vmatprep.mubr.msk.bf16.mxu0 %vm6867_vm0, %v8722_v10 }
 0x307   : > { %8726 = vst [vmem:[#allocation25_spill] sm:$0xff] %v7710_v21  ;;  %v2375_v26 = vpop.f32.mrb[118].mxu0  ;;  %v7716_v57 = vpop.f32.mrb[98].mxu1 }
 0x308   : > { %v2610_v2 = vpack.c.bf16 %v2375_v26, %v2371_v31  ;;  %v7718_v23 = vpop.f32.mrb[119].mxu0  ;;  %v7720_v52 = vpop.f32.mrb[99].mxu1 }
 0x309   : > { %8727 = vst [vmem:[#allocation26_spill] sm:$0xff] %v7718_v23  ;;  %v6835_v23 = vld [vmem:[%s6996_s9 + $0x50] sm:$0xff]  }
 0x30a   : > { %6157 = vmatpush3.bf16.msra.mxu1 %v2610_v2 }
 0x30b   : > { %6168 = vmatprep.subr.bf16.mxu1 %v8722_v10 }
 0x30d   : > { %v2381_v19 = vpop.f32.mrb[120].mxu0  ;;  %6159 = vmatmul.mubr.msk.bf16.vlgmr.msra.gmra.mrb[144].mxu1 %vm1002_vm1, %v6834_v59 }
 0x30e   : > { %v7725_v46 = vpop.f32.mrb[121].mxu0  ;;  %6170 = vmatprep.mubr.msk.bf16.mxu1 %vm6867_vm0, %v8722_v10 }
 0x30f   : > { %8728 = vst [vmem:[#allocation27_spill] sm:$0xff] %v7725_v46  ;;  %v2385_v21 = vpop.f32.mrb[122].mxu0 }
 0x310   : > { %v2611_v61 = vpack.c.bf16 %v2385_v21, %v2381_v19  ;;  %v7729_v31 = vpop.f32.mrb[123].mxu0 }
 0x311   : > { %8729 = vst [vmem:[#allocation28_spill] sm:$0xff] %v7729_v31 }
 0x312   : > { %6163 = vmatpush3.bf16.msra.mxu0 %v2611_v61 }
 0x313   : > { %6174 = vmatprep.subr.bf16.mxu0 %v8722_v10 }
 0x315   : > { %v2391_v26 = vpop.f32.mrb[124].mxu0  ;;  %v7732_v2 = vpop.f32.mrb[100].mxu1  ;;  %6165 = vmatmul.mubr.msk.bf16.vlgmr.msra.gmra.mrb[148].mxu0 %vm1002_vm1, %v6835_v23 }
 0x316   : > { %v7736_v59 = vpop.f32.mrb[125].mxu0  ;;  %v7738_v46 = vpop.f32.mrb[101].mxu1  ;;  %6176 = vmatprep.mubr.msk.bf16.mxu0 %vm6867_vm0, %v8722_v10 }
 0x317   : > { %8730 = vst [vmem:[#allocation29_spill] sm:$0xff] %v7736_v59  ;;  %v2395_v21 = vpop.f32.mrb[126].mxu0  ;;  %v7742_v19 = vpop.f32.mrb[102].mxu1 }
 0x318   : > { %8731 = vst [vmem:[#allocation30_spill] sm:$0xff] %v7742_v19  ;;  %v2612_v61 = vpack.c.bf16 %v2395_v21, %v2391_v26  ;;  %v7744_v31 = vpop.f32.mrb[127].mxu0  ;;  %v7746_v62 = vpop.f32.mrb[103].mxu1 }
 0x319   : > { %8732 = vst [vmem:[#allocation31_spill] sm:$0xff] %v7744_v31  ;;  %v6837_v31 = vld [vmem:[%s6996_s9 + $0x60] sm:$0xff]  }
 0x31a   : > { %6169 = vmatpush3.bf16.msra.mxu1 %v2612_v61 }
 0x31b   : > { %6180 = vmatprep.subr.bf16.mxu1 %v8722_v10 }
 0x31d   : > { %v2401_v23 = vpop.f32.mrb[128].mxu0  ;;  %6171 = vmatmul.mubr.msk.bf16.vlgmr.msra.gmra.mrb[148].mxu1 %vm1002_vm1, %v6836_v20 }
 0x31e   : > { %v7751_v59 = vpop.f32.mrb[129].mxu0  ;;  %6182 = vmatprep.mubr.msk.bf16.mxu1 %vm6867_vm0, %v8722_v10 }
 0x31f   : > { %8733 = vst [vmem:[#allocation32_spill] sm:$0xff] %v7751_v59  ;;  %v2405_v60 = vpop.f32.mrb[130].mxu0 }
 0x320   : > { %v2613_v19 = vpack.c.bf16 %v2405_v60, %v2401_v23  ;;  %v7755_v26 = vpop.f32.mrb[131].mxu0 }
 0x321   : > { %8734 = vst [vmem:[#allocation33_spill] sm:$0xff] %v7755_v26 }
 0x322   : > { %6175 = vmatpush3.bf16.msra.mxu0 %v2613_v19 }
 0x323   : > { %6186 = vmatprep.subr.bf16.mxu0 %v8722_v10 }
 0x325   : > { %v2411_v21 = vpop.f32.mrb[132].mxu0  ;;  %v7758_v61 = vpop.f32.mrb[104].mxu1  ;;  %6177 = vmatmul.mubr.msk.bf16.vlgmr.msra.gmra.mrb[152].mxu0 %vm1002_vm1, %v6837_v31 }
 0x326   : > { %8735 = vst [vmem:[#allocation34_spill] sm:$0xff] %v7758_v61  ;;  %v7762_v20 = vpop.f32.mrb[133].mxu0  ;;  %v7764_v59 = vpop.f32.mrb[105].mxu1  ;;  %6188 = vmatprep.mubr.msk.bf16.mxu0 %vm6867_vm0, %v8722_v10  ;;  %v6838_v61 = vld [vmem:[%s6996_s9 + $0x68] sm:$0xff]  }
 0x327   : > { %8736 = vst [vmem:[#allocation35_spill] sm:$0xff] %v7762_v20  ;;  %8737 = vst [vmem:[#allocation36_spill] sm:$0xff] %v7764_v59  ;;  %v2415_v60 = vpop.f32.mrb[134].mxu0  ;;  %v7768_v23 = vpop.f32.mrb[106].mxu1 }
 0x328   : > { %8738 = vst [vmem:[#allocation37_spill] sm:$0xff] %v7768_v23  ;;  %v2614_v19 = vpack.c.bf16 %v2415_v60, %v2411_v21  ;;  %v7770_v26 = vpop.f32.mrb[135].mxu0  ;;  %v7772_v51 = vpop.f32.mrb[107].mxu1  ;;  %v6427_v21 = vld [vmem:[%s8556_s4 + $0x4] ss:$12 sps:$4 sm:$0xff]  }
 0x329   : > { %8739 = vst [vmem:[#allocation38_spill] sm:$0xff] %v7770_v26  ;;  %8740 = vst [vmem:[#allocation39_spill] sm:$0xff] %v7772_v51  ;;  %v6839_v51 = vld [vmem:[%s6996_s9 + $0x70] sm:$0xff]  }
 0x32a   : > { %6181 = vmatpush3.bf16.msra.mxu1 %v2614_v19  ;;  %v6425_v19 = vld [vmem:[%s8556_s4] ss:$12 sps:$4 sm:$0xff]  }
 0x32b   : > { %6192 = vmatprep.subr.bf16.mxu1 %v8722_v10 }
 0x32d   : > { %v2421_v31 = vpop.f32.mrb[136].mxu0  ;;  %6183 = vmatmul.mubr.msk.bf16.vlgmr.msra.gmra.mrb[152].mxu1 %vm1002_vm1, %v6838_v61  ;;  %v6430_v61 = vld [vmem:[%s8556_s4 + $0x1c] ss:$12 sps:$4 sm:$0xff]  }
 0x32e   : > { %v7777_v20 = vpop.f32.mrb[137].mxu0  ;;  %6194 = vmatprep.mubr.msk.bf16.mxu1 %vm6867_vm0, %v8722_v10 }
 0x32f   : > { %8741 = vst [vmem:[#allocation40_spill] sm:$0xff] %v7777_v20  ;;  %v2425_v59 = vpop.f32.mrb[138].mxu0 }
 0x330   : > { %v2615_v60 = vpack.c.bf16 %v2425_v59, %v2421_v31  ;;  %v7784_v26 = vpop.f32.mrb[139].mxu0  ;;  %v6428_v31 = vld [vmem:[%s8556_s4 + $0x18] ss:$12 sps:$4 sm:$0xff]  }
 0x331   : > { %8742 = vst [vmem:[#allocation41_spill] sm:$0xff] %v7784_v26 }
 0x332   : > { %6187 = vmatpush3.bf16.msra.mxu0 %v2615_v60 }
 0x333   : > { %3769 = vmatprep.subr.bf16.mxu0 %v6427_v21 }
 0x335   : > { %v2431_v20 = vpop.f32.mrb[140].mxu0  ;;  %v7792_v23 = vpop.f32.mrb[108].mxu1  ;;  %6189 = vmatmul.mubr.msk.bf16.vlgmr.msra.gmra.mrb[156].mxu0 %vm1002_vm1, %v6839_v51  ;;  %v6433_v51 = vld [vmem:[%s8556_s4 + $0x34] ss:$12 sps:$4 sm:$0xff]  }
 0x336   : > { %8743 = vst [vmem:[#allocation42_spill] sm:$0xff] %v7792_v23  ;;  %v7796_v44 = vpop.f32.mrb[141].mxu0  ;;  %v7798_v59 = vpop.f32.mrb[109].mxu1  ;;  %3770 = vmatpush1.bf16.msra.mxu0 %v6425_v19  ;;  %3801 = vmatprep.mubr.bf16.mxu0 %v8690_v7 }
 0x337   : > { %8744 = vst [vmem:[#allocation43_spill] sm:$0xff] %v7796_v44  ;;  %v2435_v21 = vpop.f32.mrb[142].mxu0  ;;  %v7804_v60 = vpop.f32.mrb[110].mxu1  ;;  %3771 = vmatprep.subr.bf16.mxu0 %v6430_v61  ;;  %v6434_v44 = vld [vmem:[%s8556_s4 + $0x8] ss:$12 sps:$4 sm:$0xff]  }
 0x338   : > { %8745 = vst [vmem:[#allocation44_spill] sm:$0xff] %v7804_v60  ;;  %v2616_v19 = vpack.c.bf16 %v2435_v21, %v2431_v20  ;;  %v7812_v26 = vpop.f32.mrb[143].mxu0  ;;  %v7814_v23 = vpop.f32.mrb[111].mxu1  ;;  %v6431_v60 = vld [vmem:[%s8556_s4 + $0x30] ss:$12 sps:$4 sm:$0xff]  }
 0x339   : > { %8746 = vst [vmem:[#allocation45_spill] sm:$0xff] %v7812_v26  ;;  %8747 = vst [vmem:[#allocation46_spill] sm:$0xff] %v7814_v23  ;;  %v6437_v61 = vld [vmem:[%s8556_s4 + $0x4c] ss:$12 sps:$4 sm:$0xff]  }
 0x33a   : > { %6193 = vmatpush3.bf16.msra.mxu1 %v2616_v19  ;;  %3772 = vmatpush1.bf16.msra.mxu0 %v6428_v31  ;;  %v6438_v20 = vld [vmem:[%s8556_s4 + $0x20] ss:$12 sps:$4 sm:$0xff]   ;;  %v6840_v21 = vld [vmem:[%s6996_s9 + $0x78] sm:$0xff]   ;;  %v6435_v31 = vld [vmem:[%s8556_s4 + $0x48] ss:$12 sps:$4 sm:$0xff]  }
 0x33b   : > { %3773 = vmatprep.subr.bf16.mxu0 %v6433_v51  ;;  %6198 = vmatprep.subr.bf16.mxu1 %v6434_v44  ;;  %v6439_v51 = vld [vmem:[%s8556_s4 + $0x38] ss:$12 sps:$4 sm:$0xff]   ;;  %v6440_v19 = vld [vmem:[%s8556_s4 + $0x50] ss:$12 sps:$4 sm:$0xff]  }
 0x33d   : > { %6195 = vmatmul.mubr.msk.bf16.vlgmr.msra.gmra.mrb[156].mxu1 %vm1002_vm1, %v6840_v21 }
 0x33e   : > { %3774 = vmatpush1.bf16.msra.mxu0 %v6431_v60  ;;  %6199 = vmatpush3.bf16.msra.mxu1 %v6434_v44  ;;  %v5629_v44 = vmul.f32 -1.442695, %v7608_v0  ;;  %v5630_v60 = vmul.f32 -1.442695, %v7616_v54 }
 0x33f   : > { %3775 = vmatprep.subr.bf16.mxu0 %v6437_v61  ;;  %6200 = vmatprep.subr.bf16.mxu1 %v6438_v20  ;;  %v5631_v61 = vmul.f32 -1.442695, %v7602_v17  ;;  %v5635_v17 = vmul.f32 -1.442695, %v7628_v41 }
 0x340   : > { %6569 = vpow2.f32 %v5629_v44 }
 0x341   : > { %6571 = vpow2.f32 %v5630_v60 }
 0x342   : > { %3776 = vmatpush1.bf16.msra.mxu0 %v6435_v31  ;;  %6201 = vmatpush3.bf16.msra.mxu1 %v6438_v20  ;;  %v5632_v20 = vmul.f32 -1.442695, %v7612_v40  ;;  %6573 = vpow2.f32 %v5631_v61  ;;  %v5636_v40 = vmul.f32 -1.442695, %v7638_v33 }
 0x343   : > { %6202 = vmatprep.subr.bf16.mxu1 %v6439_v51  ;;  %6286 = vmatprep.subr.bf16.mxu0 %v8722_v10 }
 0x344   : > { %6575 = vpow2.f32 %v5632_v20 }
 0x346   : > { %6203 = vmatpush3.bf16.msra.mxu1 %v6439_v51  ;;  %v5633_v51 = vmul.f32 -1.442695, %v7634_v3 }
 0x347   : > { %6204 = vmatprep.subr.bf16.mxu1 %v6440_v19 }
 0x348   : > { %6577 = vpow2.f32 %v5633_v51 }
 0x34a   : > { %6205 = vmatpush3.bf16.msra.mxu1 %v6440_v19  ;;  %v6570_v21 = vpop.eup %6569  ;;  %v5634_v19 = vmul.f32 -1.442695, %v7642_v48 }
 0x34b   : > { %6238 = vmatprep.subr.bf16.mxu1 %v8722_v10  ;;  %v6572_v31 = vpop.eup %6571  ;;  %v3369_v26 = vadd.f32 1.0, %v6570_v21 }
 0x34c   : > { %v3370_v10 = vadd.f32 1.0, %v6572_v31  ;;  %v6574_v0 = vpop.eup %6573 }
 0x34d   : > { %6579 = vrcp.f32 %v3369_v26  ;;  %v3371_v44 = vadd.f32 1.0, %v6574_v0 }
 0x34e   : > { %6581 = vpow2.f32 %v5634_v19  ;;  %v6576_v54 = vpop.eup %6575 }
 0x34f   : > { %6583 = vrcp.f32 %v3370_v10  ;;  %v3372_v60 = vadd.f32 1.0, %v6576_v54  ;;  %v5637_v10 = vmul.f32 -1.442695, %v7660_v36  ;;  %v5638_v54 = vmul.f32 -1.442695, %v7668_v25 }
 0x350   : > { %6585 = vpow2.f32 %v5635_v17  ;;  %v5639_v25 = vmul.f32 -1.442695, %v7654_v63 }
 0x351   : > { %6587 = vrcp.f32 %v3371_v44 }
 0x352   : > { %v6578_v3 = vpop.eup %6577  ;;  %6589 = vpow2.f32 %v5636_v40 }
 0x353   : > { %6591 = vrcp.f32 %v3372_v60  ;;  %v3373_v0 = vadd.f32 1.0, %v6578_v3 }
 0x354   : > { %6593 = vpow2.f32 %v5637_v10 }
 0x355   : > { %6595 = vrcp.f32 %v3373_v0 }
 0x356   : > { %6597 = vpow2.f32 %v5638_v54 }
 0x357   : > { %v6580_v21 = vpop.eup %6579 }
 0x358   : > { %v6582_v31 = vpop.eup %6581 }
 0x359   : > { %v6584_v33 = vpop.eup %6583  ;;  %v3374_v40 = vadd.f32 1.0, %v6582_v31  ;;  %v8748_v31 = vmax.f32 %v7303_v1, 0.0 }
 0x35a   : > { %v6586_v23 = vpop.eup %6585 }
 0x35b   : > { %6599 = vrcp.f32 %v3374_v40  ;;  %v3375_v54 = vadd.f32 1.0, %v6586_v23 }
 0x35c   : > { %6601 = vpow2.f32 %v5639_v25 }
 0x35d   : > { %6603 = vrcp.f32 %v3375_v54 }
 0x398   : > { %v2651_v61 = vpop.f32.mrb[112].mxu1 }
 0x399   : > { %v3465_v48 = vsub.f32 %v2651_v61, %v7597_v14  ;;  %v6106_v20 = vpop.f32.mrb[113].mxu1 }
 0x39a   : > { %v2654_v26 = vpop.f32.mrb[114].mxu1 }
 0x39b   : > { %v3497_v51 = vmul.f32 %v6580_v21, %v3465_v48  ;;  %v3466_v41 = vsub.f32 %v2654_v26, %v7599_v43  ;;  %v6107_v19 = vpop.f32.mrb[115].mxu1  ;;  %v6588_v26 = vpop.eup %6587 }
 0x39d   : > { %v3529_v17 = vadd.f32 %v3497_v51, %v7597_v14  ;;  %v3498_v44 = vmul.f32 %v6584_v33, %v3466_v41  ;;  %v6590_v14 = vpop.eup %6589 }
 0x39e   : > { %v6592_v0 = vpop.eup %6591  ;;  %v3376_v40 = vadd.f32 1.0, %v6590_v14 }
 0x39f   : > { %v3561_v61 = vmax.f32 %v3529_v17, 0.0  ;;  %v3530_v60 = vadd.f32 %v3498_v44, %v7599_v43  ;;  %v8749_v43 = vmax.f32 %v7306_v37, 0.0  ;;  %v5640_v17 = vmul.f32 -1.442695, %v7664_v28  ;;  %v6594_v28 = vpop.eup %6593 }
 0x3a0   : > { %v2692_v20 = vpop.f32.mrb[116].mxu1 }
 0x3a1   : > { %v3562_v36 = vmax.f32 %v3530_v60, 0.0  ;;  %v3467_v48 = vsub.f32 %v2692_v20, %v7606_v9  ;;  %v6112_v21 = vpop.f32.mrb[117].mxu1  ;;  %v7856_v10 = vadd.f32 %v3561_v61, %v8748_v31  ;;  %6605 = vpow2.f32 %v5640_v17 }
 0x3a2   : > { %v2695_v3 = vpop.f32.mrb[118].mxu1  ;;  %6607 = vrcp.f32 %v3376_v40 }
 0x3a3   : > { %v7860_v51 = vadd.f32 %v3562_v36, %v8749_v43  ;;  %v3499_v41 = vmul.f32 %v6588_v26, %v3467_v48  ;;  %v3468_v19 = vsub.f32 %v2695_v3, %v7614_v27  ;;  %v6113_v33 = vpop.f32.mrb[119].mxu1  ;;  %v6596_v36 = vpop.eup %6595  ;;  %v5641_v48 = vmul.f32 -1.442695, %v7686_v24 }
 0x3a4   : > { %v8750_v26 = vmax.f32 %v7319_v6, 0.0  ;;  %v8751_v3 = vmax.f32 %v7325_v5, 0.0  ;;  %v3377_v33 = vadd.f32 1.0, %v6594_v28  ;;  %v8752_v28 = vmax.f32 %v7338_v4, 0.0 }
 0x3a5   : > { %v3625_v63 = vpack.c.bf16 %v7860_v51, %v7856_v10  ;;  %v3531_v44 = vadd.f32 %v3499_v41, %v7606_v9  ;;  %v3500_v1 = vmul.f32 %v6592_v0, %v3468_v19  ;;  %v5642_v0 = vmul.f32 -1.442695, %v7694_v53 }
 0x3a6   : > { %6609 = vpow2.f32 %v5641_v48 }
 0x3a7   : > { %v3563_v61 = vmax.f32 %v3531_v44, 0.0  ;;  %v3532_v37 = vadd.f32 %v3500_v1, %v7614_v27  ;;  %5673 = vmatmul.mubr.msk.bf16.vlgmr.msra.gmra.mrb[160].mxu0 %vm2198_vm2, %v3625_v63  ;;  %6206 = vmatprep.mubr.msk.bf16.mxu1 %vm2198_vm2, %v3625_v63  ;;  %v6598_v27 = vpop.eup %6597  ;;  %6611 = vrcp.f32 %v3377_v33 }
 0x3a8   : > { %v2733_v60 = vpop.f32.mrb[120].mxu1  ;;  %3811 = vmatprep.mubr.bf16.mxu0 %v8690_v7  ;;  %v6600_v19 = vpop.eup %6599  ;;  %v3378_v17 = vadd.f32 1.0, %v6598_v27  ;;  %6613 = vpow2.f32 %v5642_v0 }
 0x3a9   : > { %v3564_v23 = vmax.f32 %v3532_v37, 0.0  ;;  %v3469_v20 = vsub.f32 %v2733_v60, %v7621_v29  ;;  %v6118_v9 = vpop.f32.mrb[121].mxu1  ;;  %v7875_v25 = vadd.f32 %v3563_v61, %v8750_v26  ;;  %v6602_v53 = vpop.eup %6601  ;;  %v5643_v37 = vmul.f32 -1.442695, %v7680_v35 }
 0x3aa   : > { %v2736_v21 = vpop.f32.mrb[122].mxu1  ;;  %v6604_v61 = vpop.eup %6603  ;;  %6615 = vrcp.f32 %v3378_v17  ;;  %v3379_v26 = vadd.f32 1.0, %v6602_v53  ;;  %v8754_v17 = vmax.f32 %v7357_v15, 0.0 }
 0x3ab   : > { %v7879_v14 = vadd.f32 %v3564_v23, %v8751_v3  ;;  %v3501_v31 = vmul.f32 %v6596_v36, %v3469_v20  ;;  %v3470_v43 = vsub.f32 %v2736_v21, %v7625_v42  ;;  %v6119_v41 = vpop.f32.mrb[123].mxu1  ;;  %v8753_v20 = vmax.f32 %v7344_v22, 0.0 }
 0x3ac   : > { %v5644_v3 = vmul.f32 -1.442695, %v7690_v55  ;;  %6617 = vpow2.f32 %v5643_v37  ;;  %v5646_v37 = vmul.f32 -1.442695, %v7720_v52 }
 0x3ad   : > { %v3533_v24 = vadd.f32 %v3501_v31, %v7621_v29  ;;  %v3502_v54 = vmul.f32 %v6600_v19, %v3470_v43  ;;  %v3626_v6 = vpack.c.bf16 %v7879_v14, %v7875_v25  ;;  %6619 = vrcp.f32 %v3379_v26 }
 0x3ae   : > { %6621 = vpow2.f32 %v5644_v3  ;;  %v8756_v3 = vmax.f32 %v7376_v13, 0.0 }
 0x3af   : > { %v3565_v63 = vmax.f32 %v3533_v24, 0.0  ;;  %v3534_v5 = vadd.f32 %v3502_v54, %v7625_v42  ;;  %5674 = vmatmul.mubr.msk.bf16.gmra.mrb[164].mxu0 %vm2198_vm2, %v3626_v6  ;;  %6207 = vmatmul.mubr.msk.bf16.vlgmr.msra.gmra.mrb[160].mxu1 %vm2198_vm2, %v3626_v6  ;;  %v6606_v42 = vpop.eup %6605  ;;  %v5645_v54 = vmul.f32 -1.442695, %v7712_v58 }
 0x3b0   : > { %v2774_v44 = vpop.f32.mrb[124].mxu1  ;;  %3821 = vmatprep.mubr.bf16.mxu0 %v8690_v7  ;;  %v6608_v27 = vpop.eup %6607  ;;  %v3380_v43 = vadd.f32 1.0, %v6606_v42 }
 0x3b1   : > { %v3566_v29 = vmax.f32 %v3534_v5, 0.0  ;;  %v3471_v1 = vsub.f32 %v2774_v44, %v7632_v39  ;;  %v6124_v40 = vpop.f32.mrb[125].mxu1  ;;  %v7894_v23 = vadd.f32 %v3565_v63, %v8752_v28  ;;  %v6610_v55 = vpop.eup %6609  ;;  %v8755_v5 = vmax.f32 %v7363_v34, 0.0 }
 0x3b2   : > { %v2777_v60 = vpop.f32.mrb[126].mxu1  ;;  %v6612_v24 = vpop.eup %6611  ;;  %6623 = vrcp.f32 %v3380_v43 }
 0x3b3   : > { %v7898_v9 = vadd.f32 %v3566_v29, %v8753_v20  ;;  %v3503_v36 = vmul.f32 %v6604_v61, %v3471_v1  ;;  %v3472_v48 = vsub.f32 %v2777_v60, %v7640_v18  ;;  %v6125_v21 = vpop.f32.mrb[127].mxu1  ;;  %v3381_v61 = vadd.f32 1.0, %v6610_v55 }
 0x3b4   : > { %6625 = vpow2.f32 %v5645_v54 }
 0x3b5   : > { %v3535_v35 = vadd.f32 %v3503_v36, %v7632_v39  ;;  %v3504_v31 = vmul.f32 %v6608_v27, %v3472_v48  ;;  %v3627_v4 = vpack.c.bf16 %v7898_v9, %v7894_v23  ;;  %6627 = vrcp.f32 %v3381_v61 }
 0x3b6   : > { %6629 = vpow2.f32 %v5646_v37  ;;  %v5647_v27 = vmul.f32 -1.442695, %v7706_v11 }
 0x3b7   : > { %v3567_v41 = vmax.f32 %v3535_v35, 0.0  ;;  %v3536_v22 = vadd.f32 %v3504_v31, %v7640_v18  ;;  %5675 = vmatmul.mubr.msk.bf16.gmra.mrb[168].mxu0 %vm2198_vm2, %v3627_v4  ;;  %6210 = vmatprep.mubr.msk.bf16.mxu1 %vm2198_vm2, %v3627_v4  ;;  %v6614_v18 = vpop.eup %6613  ;;  %v8757_v31 = vmax.f32 %v7382_v32, 0.0 }
 0x3b8   : > { %v2815_v19 = vpop.f32.mrb[128].mxu1  ;;  %3831 = vmatprep.mubr.bf16.mxu0 %v8690_v7  ;;  %v6616_v40 = vpop.eup %6615  ;;  %v3382_v42 = vadd.f32 1.0, %v6614_v18 }
 0x3b9   : > { %v3568_v39 = vmax.f32 %v3536_v22, 0.0  ;;  %v3473_v33 = vsub.f32 %v2815_v19, %v7647_v50  ;;  %v6130_v0 = vpop.f32.mrb[129].mxu1  ;;  %v7913_v63 = vadd.f32 %v3567_v41, %v8754_v17  ;;  %v6618_v52 = vpop.eup %6617 }
 0x3ba   : > { %v2818_v6 = vpop.f32.mrb[130].mxu1  ;;  %v6620_v21 = vpop.eup %6619  ;;  %6631 = vrcp.f32 %v3382_v42  ;;  %v3383_v55 = vadd.f32 1.0, %v6618_v52 }
 0x3bb   : > { %v7917_v44 = vadd.f32 %v3568_v39, %v8755_v5  ;;  %v3505_v53 = vmul.f32 %v6612_v24, %v3473_v33  ;;  %v3474_v29 = vsub.f32 %v2818_v6, %v7651_v45  ;;  %v6131_v1 = vpop.f32.mrb[131].mxu1  ;;  %v5648_v39 = vmul.f32 -1.442695, %v7716_v57 }
 0x3bc   : > { %6633 = vpow2.f32 %v5647_v27  ;;  %v5649_v5 = vmul.f32 -1.442695, %v7738_v46  ;;  %v5651_v27 = vmul.f32 -1.442695, %v7732_v2 }
 0x3bd   : > { %v3537_v58 = vadd.f32 %v3505_v53, %v7647_v50  ;;  %v3506_v60 = vmul.f32 %v6616_v40, %v3474_v29  ;;  %v3628_v15 = vpack.c.bf16 %v7917_v44, %v7913_v63  ;;  %6635 = vrcp.f32 %v3383_v55 }
 0x3be   : > { %6637 = vpow2.f32 %v5648_v39  ;;  %v8758_v29 = vmax.f32 %v7395_v12, 0.0  ;;  %v8759_v40 = vmax.f32 %v7401_v47, 0.0 }
 0x3bf   : > { %v3569_v28 = vmax.f32 %v3537_v58, 0.0  ;;  %v3538_v34 = vadd.f32 %v3506_v60, %v7651_v45  ;;  %5676 = vmatmul.mubr.msk.bf16.gmra.mrb[172].mxu0 %vm2198_vm2, %v3628_v15  ;;  %6211 = vmatmul.mubr.msk.bf16.gmra.mrb[164].mxu1 %vm2198_vm2, %v3628_v15  ;;  %v6622_v45 = vpop.eup %6621 }
 0x3c0   : > { %v2856_v20 = vpop.f32.mrb[132].mxu1  ;;  %3841 = vmatprep.mubr.bf16.mxu0 %v8690_v7  ;;  %v6624_v19 = vpop.eup %6623  ;;  %v3384_v0 = vadd.f32 1.0, %v6622_v45  ;;  %v8760_v45 = vmax.f32 %v7414_v56, 0.0 }
 0x3c1   : > { %v3570_v50 = vmax.f32 %v3538_v34, 0.0  ;;  %v3475_v36 = vsub.f32 %v2856_v20, %v7658_v8  ;;  %v6136_v48 = vpop.f32.mrb[133].mxu1  ;;  %v7932_v35 = vadd.f32 %v3569_v28, %v8756_v3  ;;  %v6626_v57 = vpop.eup %6625  ;;  %v5650_v28 = vmul.f32 -1.442695, %v7746_v62 }
 0x3c2   : > { %v2859_v26 = vpop.f32.mrb[134].mxu1  ;;  %v6628_v17 = vpop.eup %6627  ;;  %6639 = vrcp.f32 %v3384_v0  ;;  %v3385_v42 = vadd.f32 1.0, %v6626_v57 }
 0x3c3   : > { %v7936_v4 = vadd.f32 %v3570_v50, %v8757_v31  ;;  %v3507_v43 = vmul.f32 %v6620_v21, %v3475_v36  ;;  %v3476_v41 = vsub.f32 %v2859_v26, %v7666_v49  ;;  %v6137_v22 = vpop.f32.mrb[135].mxu1  ;;  %6641 = vpow2.f32 %v5649_v5  ;;  %v8761_v31 = vld [vmem:[#allocation14_spill] sm:$0xff] }
 0x3c4   : > { %6643 = vrcp.f32 %v3385_v42  ;;  %v8771_v42 = vld [vmem:[#allocation16_spill] sm:$0xff] }
 0x3c5   : > { %v3539_v11 = vadd.f32 %v3507_v43, %v7658_v8  ;;  %v3508_v33 = vmul.f32 %v6624_v19, %v3476_v41  ;;  %v3629_v13 = vpack.c.bf16 %v7936_v4, %v7932_v35  ;;  %6645 = vpow2.f32 %v5650_v28  ;;  %v8764_v19 = vld [vmem:[#allocation13_spill] sm:$0xff] }
 0x3c6   : > { %v8762_v43 = vmax.f32 %v8761_v31, 0.0  ;;  %v8772_v28 = vmax.f32 %v8771_v42, 0.0 }
 0x3c7   : > { %v3571_v24 = vmax.f32 %v3539_v11, 0.0  ;;  %v3540_v32 = vadd.f32 %v3508_v33, %v7666_v49  ;;  %5677 = vmatmul.mubr.msk.bf16.gmra.mrb[176].mxu0 %vm2198_vm2, %v3629_v13  ;;  %6214 = vmatprep.mubr.msk.bf16.mxu1 %vm2198_vm2, %v3629_v13  ;;  %v6630_v49 = vpop.eup %6629  ;;  %v8765_v13 = vld [vmem:[#allocation30_spill] sm:$0xff] }
 0x3c8   : > { %v2897_v54 = vpop.f32.mrb[136].mxu1  ;;  %3851 = vmatprep.mubr.bf16.mxu0 %v8690_v7  ;;  %v6632_v15 = vpop.eup %6631  ;;  %v3386_v20 = vadd.f32 1.0, %v6630_v49  ;;  %v5652_v0 = vmul.f32 -1.442695, %v8765_v13  ;;  %v8767_v49 = vld [vmem:[#allocation36_spill] sm:$0xff] }
 0x3c9   : > { %v3572_v8 = vmax.f32 %v3540_v32, 0.0  ;;  %v3477_v6 = vsub.f32 %v2897_v54, %v7673_v16  ;;  %v6142_v18 = vpop.f32.mrb[137].mxu1  ;;  %v7951_v1 = vadd.f32 %v3571_v24, %v8758_v29  ;;  %v6634_v62 = vpop.eup %6633  ;;  %v5653_v29 = vmul.f32 -1.442695, %v8767_v49 }
 0x3ca   : > { %v2900_v53 = vpop.f32.mrb[138].mxu1  ;;  %v6636_v21 = vpop.eup %6635  ;;  %6647 = vrcp.f32 %v3386_v20  ;;  %v3387_v33 = vadd.f32 1.0, %v6634_v62  ;;  %v8766_v18 = vld [vmem:[#allocation23_spill] sm:$0xff] }
 0x3cb   : > { %v7955_v61 = vadd.f32 %v3572_v8, %v8759_v40  ;;  %v3509_v37 = vmul.f32 %v6628_v17, %v3477_v6  ;;  %v3478_v58 = vsub.f32 %v2900_v53, %v7677_v38  ;;  %v6143_v60 = vpop.f32.mrb[139].mxu1  ;;  %6649 = vpow2.f32 %v5651_v27  ;;  %v8775_v62 = vld [vmem:[#allocation39_spill] sm:$0xff] }
 0x3cc   : > { %6651 = vrcp.f32 %v3387_v33 }
 0x3cd   : > { %v3541_v46 = vadd.f32 %v3509_v37, %v7673_v16  ;;  %v3510_v34 = vmul.f32 %v6632_v15, %v3478_v58  ;;  %v3630_v12 = vpack.c.bf16 %v7955_v61, %v7951_v1  ;;  %6653 = vpow2.f32 %v5652_v0  ;;  %v8768_v58 = vld [vmem:[#allocation15_spill] sm:$0xff] }
 0x3ce   : > { %v8769_v60 = vmax.f32 %v8768_v58, 0.0 }
 0x3cf   : > { %v3573_v52 = vmax.f32 %v3541_v46, 0.0  ;;  %v3542_v47 = vadd.f32 %v3510_v34, %v7677_v38  ;;  %5678 = vmatmul.mubr.msk.bf16.gmra.mrb[180].mxu0 %vm2198_vm2, %v3630_v12  ;;  %6215 = vmatmul.mubr.msk.bf16.gmra.mrb[168].mxu1 %vm2198_vm2, %v3630_v12  ;;  %v6638_v38 = vpop.eup %6637  ;;  %v8774_v12 = vld [vmem:[#allocation24_spill] sm:$0xff] }
 0x3d0   : > { %v2938_v50 = vpop.f32.mrb[140].mxu1  ;;  %3861 = vmatprep.mubr.bf16.mxu0 %v8690_v7  ;;  %v6640_v11 = vpop.eup %6639  ;;  %v3388_v32 = vadd.f32 1.0, %v6638_v38 }
 0x3d1   : > { %v3574_v16 = vmax.f32 %v3542_v47, 0.0  ;;  %v3479_v36 = vsub.f32 %v2938_v50, %v7684_v30  ;;  %v6148_v48 = vpop.f32.mrb[141].mxu1  ;;  %v7970_v3 = vadd.f32 %v3573_v52, %v8760_v45  ;;  %v6642_v6 = vpop.eup %6641 }
 0x3d2   : > { %v2941_v26 = vpop.f32.mrb[142].mxu1  ;;  %v6644_v53 = vpop.eup %6643  ;;  %6655 = vrcp.f32 %v3388_v32  ;;  %v3389_v50 = vadd.f32 1.0, %v6642_v6  ;;  %v8781_v32 = vld [vmem:[#allocation18_spill] sm:$0xff] }
 0x3d3   : > { %v7974_v41 = vadd.f32 %v3574_v16, %v8762_v43  ;;  %v3511_v22 = vmul.f32 %v6636_v21, %v3479_v36  ;;  %v3480_v55 = vsub.f32 %v2941_v26, %v8764_v19  ;;  %v6149_v39 = vpop.f32.mrb[143].mxu1  ;;  %v6646_v37 = vpop.eup %6645  ;;  %v5654_v16 = vmul.f32 -1.442695, %v8775_v62  ;;  %v8784_v6 = vld [vmem:[#allocation26_spill] sm:$0xff] }
 0x3d4   : > { %v6648_v47 = vpop.eup %6647  ;;  %v3390_v27 = vadd.f32 1.0, %v6646_v37  ;;  %6657 = vpow2.f32 %v5653_v29  ;;  %v5657_v62 = vmul.f32 -1.442695, %v7798_v59 }
 0x3d5   : > { %8763 = vst [vmem:[#allocation14_spill] sm:$0xff] %v7974_v41  ;;  %v3543_v2 = vadd.f32 %v3511_v22, %v7684_v30  ;;  %v3512_v24 = vmul.f32 %v6640_v11, %v3480_v55  ;;  %v3631_v56 = vpack.c.bf16 %v7974_v41, %v7970_v3  ;;  %6659 = vrcp.f32 %v3389_v50  ;;  %v6650_v31 = vpop.eup %6649  ;;  %v8776_v22 = vld [vmem:[#allocation25_spill] sm:$0xff]  ;;  %v8777_v11 = vld [vmem:[#allocation34_spill] sm:$0xff] }
 0x3d6   : > { %6661 = vpow2.f32 %v5654_v16  ;;  %v6652_v39 = vpop.eup %6651  ;;  %v5655_v33 = vmul.f32 -1.442695, %v8777_v11  ;;  %v8794_v11 = vld [vmem:[#allocation46_spill] sm:$0xff] }
 0x3d7   : > { %v3575_v54 = vmax.f32 %v3543_v2, 0.0  ;;  %v3544_v57 = vadd.f32 %v3512_v24, %v8764_v19  ;;  %5679 = vmatmul.mubr.msk.bf16.gmra.mrb[184].mxu0 %vm2198_vm2, %v3631_v56  ;;  %6218 = vmatprep.mubr.msk.bf16.mxu1 %vm2198_vm2, %v3631_v56  ;;  %6663 = vrcp.f32 %v3390_v27  ;;  %v6654_v0 = vpop.eup %6653  ;;  %v8778_v2 = vld [vmem:[#allocation17_spill] sm:$0xff] }
 0x3d8   : > { %v2979_v8 = vpop.f32.mrb[144].mxu0  ;;  %3871 = vmatprep.mubr.bf16.mxu0 %v8690_v7  ;;  %v8779_v24 = vmax.f32 %v8778_v2, 0.0  ;;  %v3392_v58 = vadd.f32 1.0, %v6654_v0  ;;  %6665 = vpow2.f32 %v5655_v33  ;;  %v5658_v33 = vmul.f32 -1.442695, %v8794_v11 }
 0x3d9   : > { %v3576_v30 = vmax.f32 %v3544_v57, 0.0  ;;  %v3481_v17 = vsub.f32 %v2979_v8, %v8766_v18  ;;  %v6154_v5 = vpop.f32.mrb[145].mxu0  ;;  %v7989_v15 = vadd.f32 %v3575_v54, %v8769_v60  ;;  %v8782_v54 = vmax.f32 %v8781_v32, 0.0 }
 0x3da   : > { %v2982_v40 = vpop.f32.mrb[146].mxu0  ;;  %v3391_v5 = vadd.f32 1.0, %v6650_v31 }
 0x3db   : > { %8770 = vst [vmem:[#allocation13_spill] sm:$0xff] %v7989_v15  ;;  %v7993_v46 = vadd.f32 %v3576_v30, %v8772_v28  ;;  %v3513_v34 = vmul.f32 %v6644_v53, %v3481_v17  ;;  %v3482_v20 = vsub.f32 %v2982_v40, %v8774_v12  ;;  %v6155_v52 = vpop.f32.mrb[147].mxu0  ;;  %v8785_v53 = vld [vmem:[#allocation37_spill] sm:$0xff] }
 0x3dc   : > { %v6656_v17 = vpop.eup %6655  ;;  %v5656_v49 = vmul.f32 -1.442695, %v8785_v53  ;;  %6667 = vrcp.f32 %v3391_v5  ;;  %v8796_v53 = vld [vmem:[#allocation42_spill] sm:$0xff] }
 0x3dd   : > { %8773 = vst [vmem:[#allocation30_spill] sm:$0xff] %v7993_v46  ;;  %v3545_v36 = vadd.f32 %v3513_v34, %v8766_v18  ;;  %v3514_v48 = vmul.f32 %v6648_v47, %v3482_v20  ;;  %v3632_v21 = vpack.c.bf16 %v7993_v46, %v7989_v15  ;;  %v8786_v20 = vld [vmem:[#allocation27_spill] sm:$0xff]  ;;  %v6852_v46 = vld [vmem:[%s6996_s9 + $0x58] sm:$0xff]  }
 0x3de   : > { %v6658_v34 = vpop.eup %6657  ;;  %6669 = vpow2.f32 %v5656_v49  ;;  %v5659_v49 = vmul.f32 -1.442695, %v8796_v53 }
 0x3df   : > { %v3577_v26 = vmax.f32 %v3545_v36, 0.0  ;;  %v3546_v38 = vadd.f32 %v3514_v48, %v8774_v12  ;;  %5680 = vmatmul.mubr.msk.bf16.gmra.mrb[188].mxu0 %vm2198_vm2, %v3632_v21  ;;  %6219 = vmatmul.mubr.msk.bf16.gmra.mrb[172].mxu1 %vm2198_vm2, %v3632_v21  ;;  %v6660_v50 = vpop.eup %6659  ;;  %6671 = vrcp.f32 %v3392_v58  ;;  %v8787_v48 = vld [vmem:[#allocation19_spill] sm:$0xff] }
 0x3e0   : > { %v3020_v45 = vpop.f32.mrb[144].mxu1  ;;  %3881 = vmatprep.mubr.bf16.mxu0 %v8690_v7  ;;  %v6662_v36 = vpop.eup %6661  ;;  %v8788_v21 = vmax.f32 %v8787_v48, 0.0  ;;  %6673 = vpow2.f32 %v5657_v62 }
 0x3e1   : > { %v3578_v43 = vmax.f32 %v3546_v38, 0.0  ;;  %v3483_v19 = vsub.f32 %v3020_v45, %v8776_v22  ;;  %v6160_v55 = vpop.f32.mrb[145].mxu1  ;;  %v8008_v56 = vadd.f32 %v3577_v26, %v8779_v24  ;;  %v8790_v26 = vld [vmem:[#allocation20_spill] sm:$0xff]  ;;  %v3394_v2 = vadd.f32 1.0, %v6662_v36 }
 0x3e2   : > { %v3023_v13 = vpop.f32.mrb[146].mxu1  ;;  %v8791_v38 = vmax.f32 %v8790_v26, 0.0  ;;  %v6664_v55 = vpop.eup %6663 }
 0x3e3   : > { %8780 = vst [vmem:[#allocation23_spill] sm:$0xff] %v8008_v56  ;;  %v8012_v57 = vadd.f32 %v3578_v43, %v8782_v54  ;;  %v3515_v8 = vmul.f32 %v6652_v39, %v3483_v19  ;;  %v3484_v30 = vsub.f32 %v3023_v13, %v8784_v6  ;;  %v6161_v18 = vpop.f32.mrb[147].mxu1  ;;  %v8793_v43 = vld [vmem:[#allocation28_spill] sm:$0xff]  ;;  %v3393_v39 = vadd.f32 1.0, %v6658_v34 }
 0x3e5   : > { %8783 = vst [vmem:[#allocation36_spill] sm:$0xff] %v8012_v57  ;;  %v3547_v29 = vadd.f32 %v3515_v8, %v8776_v22  ;;  %v3516_v40 = vmul.f32 %v6656_v17, %v3484_v30  ;;  %v3633_v37 = vpack.c.bf16 %v8012_v57, %v8008_v56  ;;  %6675 = vrcp.f32 %v3393_v39  ;;  %v6666_v8 = vpop.eup %6665  ;;  %v8795_v30 = vld [vmem:[#allocation29_spill] sm:$0xff]  ;;  %v8805_v39 = vld [vmem:[#allocation32_spill] sm:$0xff] }
 0x3e6   : > { %6677 = vpow2.f32 %v5658_v33  ;;  %v6668_v5 = vpop.eup %6667  ;;  %v3395_v62 = vadd.f32 1.0, %v6666_v8 }
 0x3e7   : > { %v3579_v60 = vmax.f32 %v3547_v29, 0.0  ;;  %v3548_v42 = vadd.f32 %v3516_v40, %v8784_v6  ;;  %5681 = vmatmul.mubr.msk.bf16.gmra.mrb[192].mxu0 %vm2198_vm2, %v3633_v37  ;;  %6222 = vmatprep.mubr.msk.bf16.mxu1 %vm2198_vm2, %v3633_v37  ;;  %6679 = vrcp.f32 %v3394_v2  ;;  %v8797_v37 = vld [vmem:[#allocation21_spill] sm:$0xff] }
 0x3e8   : > { %v3061_v28 = vpop.f32.mrb[148].mxu0  ;;  %3891 = vmatprep.mubr.bf16.mxu0 %v8690_v7  ;;  %v6670_v40 = vpop.eup %6669  ;;  %v8798_v58 = vmax.f32 %v8797_v37, 0.0  ;;  %6681 = vpow2.f32 %v5659_v49  ;;  %v8806_v2 = vld [vmem:[#allocation5_spill] sm:$0xff] }
 0x3e9   : > { %v3580_v12 = vmax.f32 %v3548_v42, 0.0  ;;  %v3485_v52 = vsub.f32 %v3061_v28, %v8786_v20  ;;  %v6166_v47 = vpop.f32.mrb[149].mxu0  ;;  %v8027_v27 = vadd.f32 %v3579_v60, %v8788_v21  ;;  %v8800_v42 = vld [vmem:[#allocation22_spill] sm:$0xff]  ;;  %6683 = vrcp.f32 %v3395_v62 }
 0x3ea   : > { %v3064_v16 = vpop.f32.mrb[150].mxu0  ;;  %v8801_v28 = vmax.f32 %v8800_v42, 0.0 }
 0x3eb   : > { %8789 = vst [vmem:[#allocation15_spill] sm:$0xff] %v8027_v27  ;;  %v8031_v45 = vadd.f32 %v3580_v12, %v8791_v38  ;;  %v3517_v31 = vmul.f32 %v6660_v50, %v3485_v52  ;;  %v3486_v22 = vsub.f32 %v3064_v16, %v8793_v43  ;;  %v6167_v19 = vpop.f32.mrb[151].mxu0  ;;  %v6672_v50 = vpop.eup %6671  ;;  %v8804_v16 = vld [vmem:[#allocation44_spill] sm:$0xff]  ;;  %v3396_v38 = vadd.f32 1.0, %v6670_v40 }
 0x3ec   : > { %v5660_v36 = vmul.f32 -1.442695, %v8804_v16  ;;  %v6674_v19 = vpop.eup %6673 }
 0x3ed   : > { %8792 = vst [vmem:[#allocation16_spill] sm:$0xff] %v8031_v45  ;;  %v3549_v59 = vadd.f32 %v3517_v31, %v8786_v20  ;;  %v3518_v13 = vmul.f32 %v6664_v55, %v3486_v22  ;;  %v3634_v0 = vpack.c.bf16 %v8031_v45, %v8027_v27  ;;  %v8803_v20 = vld [vmem:[#allocation31_spill] sm:$0xff]  ;;  %v3397_v49 = vadd.f32 1.0, %v6674_v19  ;;  %v6850_v27 = vld [vmem:[%s6996_s9 + $0x48] sm:$0xff]  }
 0x3ee   : > { %6685 = vpow2.f32 %v5660_v36 }
 0x3ef   : > { %v3581_v24 = vmax.f32 %v3549_v59, 0.0  ;;  %v3550_v32 = vadd.f32 %v3518_v13, %v8793_v43  ;;  %5682 = vmatmul.mubr.msk.bf16.gmra.mrb[196].mxu0 %vm2198_vm2, %v3634_v0  ;;  %6223 = vmatmul.mubr.msk.bf16.gmra.mrb[176].mxu1 %vm2198_vm2, %v3634_v0  ;;  %v6676_v59 = vpop.eup %6675  ;;  %6687 = vrcp.f32 %v3396_v38 }
 0x3f0   : > { %v3102_v54 = vpop.f32.mrb[148].mxu1  ;;  %3901 = vmatprep.mubr.bf16.mxu0 %v8690_v7  ;;  %v6678_v0 = vpop.eup %6677  ;;  %6689 = vrcp.f32 %v3397_v49 }
 0x3f1   : > { %v3582_v6 = vmax.f32 %v3550_v32, 0.0  ;;  %v3487_v18 = vsub.f32 %v3102_v54, %v8795_v30  ;;  %v6172_v17 = vpop.f32.mrb[149].mxu1  ;;  %v8046_v60 = vadd.f32 %v3581_v24, %v8798_v58  ;;  %v8807_v24 = vmax.f32 %v8806_v2, 0.0  ;;  %v8809_v54 = vld [vmem:[#allocation3_spill] sm:$0xff]  ;;  %v6680_v53 = vpop.eup %6679 }
 0x3f2   : > { %v3105_v29 = vpop.f32.mrb[150].mxu1  ;;  %v8810_v8 = vmax.f32 %v8809_v54, 0.0  ;;  %v3398_v58 = vadd.f32 1.0, %v6678_v0 }
 0x3f3   : > { %8799 = vst [vmem:[#allocation24_spill] sm:$0xff] %v8046_v60  ;;  %v8050_v34 = vadd.f32 %v3582_v6, %v8801_v28  ;;  %v3519_v12 = vmul.f32 %v6668_v5, %v3487_v18  ;;  %v3488_v52 = vsub.f32 %v3105_v29, %v8803_v20  ;;  %v6173_v47 = vpop.f32.mrb[151].mxu1  ;;  %v8812_v18 = vld [vmem:[#allocation33_spill] sm:$0xff] }
 0x3f4   : > { %v8813_v47 = vld [vmem:[#allocation35_spill] sm:$0xff]  ;;  %6691 = vrcp.f32 %v3398_v58 }
 0x3f5   : > { %8802 = vst [vmem:[#allocation39_spill] sm:$0xff] %v8050_v34  ;;  %v3551_v48 = vadd.f32 %v3519_v12, %v8795_v30  ;;  %v3520_v21 = vmul.f32 %v6672_v50, %v3488_v52  ;;  %v3635_v26 = vpack.c.bf16 %v8050_v34, %v8046_v60 }
 0x3f7   : > { %v3583_v31 = vmax.f32 %v3551_v48, 0.0  ;;  %v3552_v43 = vadd.f32 %v3520_v21, %v8803_v20  ;;  %5683 = vmatmul.mubr.msk.bf16.gmra.mrb[200].mxu0 %vm2198_vm2, %v3635_v26  ;;  %6226 = vmatprep.mubr.msk.bf16.mxu1 %vm2198_vm2, %v3635_v26  ;;  %v6682_v20 = vpop.eup %6681  ;;  %v8814_v21 = vld [vmem:[#allocation6_spill] sm:$0xff] }
 0x3f8   : > { %v3143_v22 = vpop.f32.mrb[152].mxu0  ;;  %3911 = vmatprep.mubr.bf16.mxu0 %v8690_v7  ;;  %v6684_v16 = vpop.eup %6683  ;;  %v8815_v26 = vmax.f32 %v8814_v21, 0.0 }
 0x3f9   : > { %v3584_v55 = vmax.f32 %v3552_v43, 0.0  ;;  %v3489_v11 = vsub.f32 %v3143_v22, %v8805_v39  ;;  %v6178_v33 = vpop.f32.mrb[153].mxu0  ;;  %v8064_v32 = vadd.f32 %v3583_v31, %v8807_v24  ;;  %v6686_v48 = vpop.eup %6685  ;;  %v8817_v31 = vld [vmem:[#allocation4_spill] sm:$0xff] }
 0x3fa   : > { %v3146_v13 = vpop.f32.mrb[154].mxu0  ;;  %v8818_v43 = vmax.f32 %v8817_v31, 0.0  ;;  %v6688_v33 = vpop.eup %6687  ;;  %v3400_v24 = vadd.f32 1.0, %v6686_v48 }
 0x3fb   : > { %8808 = vst [vmem:[#allocation25_spill] sm:$0xff] %v8064_v32  ;;  %v8068_v6 = vadd.f32 %v3584_v55, %v8810_v8  ;;  %v3521_v30 = vmul.f32 %v6676_v59, %v3489_v11  ;;  %v3490_v17 = vsub.f32 %v3146_v13, %v8812_v18  ;;  %v6179_v5 = vpop.f32.mrb[155].mxu0  ;;  %v8820_v55 = vld [vmem:[#allocation38_spill] sm:$0xff]  ;;  %v3399_v59 = vadd.f32 1.0, %v6682_v20  ;;  %v6690_v49 = vpop.eup %6689 }
 0x3fd   : > { %8811 = vst [vmem:[#allocation34_spill] sm:$0xff] %v8068_v6  ;;  %v3553_v29 = vadd.f32 %v3521_v30, %v8805_v39  ;;  %v3522_v40 = vmul.f32 %v6680_v53, %v3490_v17  ;;  %v3636_v37 = vpack.c.bf16 %v8068_v6, %v8064_v32  ;;  %6693 = vrcp.f32 %v3399_v59  ;;  %v8821_v17 = vld [vmem:[#allocation40_spill] sm:$0xff]  ;;  %v8830_v59 = vld [vmem:[#allocation9_spill] sm:$0xff]  ;;  %v6849_v32 = vld [vmem:[%s6996_s9 + $0x40] sm:$0xff]  }
 0x3fe   : > { %6695 = vrcp.f32 %v3400_v24 }
 0x3ff   : > { %v3585_v42 = vmax.f32 %v3553_v29, 0.0  ;;  %v3554_v28 = vadd.f32 %v3522_v40, %v8812_v18  ;;  %5684 = vmatmul.mubr.msk.bf16.gmra.mrb[204].mxu0 %vm2198_vm2, %v3636_v37  ;;  %6227 = vmatmul.mubr.msk.bf16.gmra.mrb[180].mxu1 %vm2198_vm2, %v3636_v37  ;;  %v8822_v40 = vld [vmem:[#allocation7_spill] sm:$0xff] }
 0x400   : > { %v3184_v12 = vpop.f32.mrb[152].mxu1  ;;  %3921 = vmatprep.mubr.bf16.mxu0 %v8690_v7  ;;  %v8823_v37 = vmax.f32 %v8822_v40, 0.0 }
 0x401   : > { %v3586_v52 = vmax.f32 %v3554_v28, 0.0  ;;  %v3491_v50 = vsub.f32 %v3184_v12, %v8813_v47  ;;  %v6184_v62 = vpop.f32.mrb[153].mxu1  ;;  %v8081_v38 = vadd.f32 %v3585_v42, %v8815_v26  ;;  %v8825_v42 = vld [vmem:[#allocation8_spill] sm:$0xff] }
 0x402   : > { %v3187_v36 = vpop.f32.mrb[154].mxu1  ;;  %v8826_v28 = vmax.f32 %v8825_v42, 0.0  ;;  %v6692_v62 = vpop.eup %6691 }
 0x403   : > { %8816 = vst [vmem:[#allocation17_spill] sm:$0xff] %v8081_v38  ;;  %v8085_v22 = vadd.f32 %v3586_v52, %v8818_v43  ;;  %v3523_v19 = vmul.f32 %v6684_v16, %v3491_v50  ;;  %v3492_v39 = vsub.f32 %v3187_v36, %v8820_v55  ;;  %v6185_v11 = vpop.f32.mrb[155].mxu1  ;;  %v8828_v52 = vld [vmem:[#allocation41_spill] sm:$0xff] }
 0x405   : > { %8819 = vst [vmem:[#allocation18_spill] sm:$0xff] %v8085_v22  ;;  %v3555_v13 = vadd.f32 %v3523_v19, %v8813_v47  ;;  %v3524_v0 = vmul.f32 %v6688_v33, %v3492_v39  ;;  %v3637_v2 = vpack.c.bf16 %v8085_v22, %v8081_v38  ;;  %v8829_v19 = vld [vmem:[#allocation43_spill] sm:$0xff] }
 0x407   : > { %v3587_v54 = vmax.f32 %v3555_v13, 0.0  ;;  %v3556_v8 = vadd.f32 %v3524_v0, %v8820_v55  ;;  %5685 = vmatmul.mubr.msk.bf16.gmra.mrb[208].mxu0 %vm2198_vm2, %v3637_v2  ;;  %6230 = vmatprep.mubr.msk.bf16.mxu1 %vm2198_vm2, %v3637_v2  ;;  %v6694_v11 = vpop.eup %6693  ;;  %v8831_v13 = vmax.f32 %v8830_v59, 0.0  ;;  %v8833_v2 = vld [vmem:[#allocation10_spill] sm:$0xff] }
 0x408   : > { %v3225_v30 = vpop.f32.mrb[156].mxu0  ;;  %3931 = vmatprep.mubr.bf16.mxu0 %v8690_v7  ;;  %v8834_v24 = vmax.f32 %v8833_v2, 0.0 }
 0x409   : > { %v3588_v18 = vmax.f32 %v3556_v8, 0.0  ;;  %v3493_v5 = vsub.f32 %v3225_v30, %v8821_v17  ;;  %v6190_v53 = vpop.f32.mrb[157].mxu0  ;;  %v8098_v58 = vadd.f32 %v3587_v54, %v8823_v37  ;;  %v8836_v30 = vld [vmem:[#allocation45_spill] sm:$0xff] }
 0x40a   : > { %v3228_v29 = vpop.f32.mrb[158].mxu0 }
 0x40b   : > { %8824 = vst [vmem:[#allocation26_spill] sm:$0xff] %v8098_v58  ;;  %v8102_v12 = vadd.f32 %v3588_v18, %v8826_v28  ;;  %v3525_v20 = vmul.f32 %v6690_v49, %v3493_v5  ;;  %v3494_v47 = vsub.f32 %v3228_v29, %v8828_v52  ;;  %v6191_v50 = vpop.f32.mrb[159].mxu0  ;;  %v6696_v5 = vpop.eup %6695  ;;  %v8837_v28 = vld [vmem:[#allocation11_spill] sm:$0xff] }
 0x40d   : > { %8827 = vst [vmem:[#allocation37_spill] sm:$0xff] %v8102_v12  ;;  %v3557_v16 = vadd.f32 %v3525_v20, %v8821_v17  ;;  %v3526_v36 = vmul.f32 %v6692_v62, %v3494_v47  ;;  %v3638_v48 = vpack.c.bf16 %v8102_v12, %v8098_v58  ;;  %v8838_v20 = vmax.f32 %v8837_v28, 0.0  ;;  %v8840_v47 = vld [vmem:[#allocation12_spill] sm:$0xff]  ;;  %v6848_v58 = vld [vmem:[%s6996_s9 + $0x38] sm:$0xff]  }
 0x40e   : > { %v8841_v50 = vmax.f32 %v8840_v47, 0.0 }
 0x40f   : > { %v3589_v21 = vmax.f32 %v3557_v16, 0.0  ;;  %v3558_v26 = vadd.f32 %v3526_v36, %v8828_v52  ;;  %5686 = vmatmul.mubr.msk.bf16.gmra.mrb[212].mxu0 %vm2198_vm2, %v3638_v48  ;;  %6231 = vmatmul.mubr.msk.bf16.gmra.mrb[184].mxu1 %vm2198_vm2, %v3638_v48  ;;  %v8843_v36 = vmov 0.0  }
 0x410   : > { %v3266_v31 = vpop.f32.mrb[156].mxu1  ;;  %3941 = vmatprep.mubr.bf16.mxu0 %v8690_v7 }
 0x411   : > { %v3590_v43 = vmax.f32 %v3558_v26, 0.0  ;;  %v3495_v55 = vsub.f32 %v3266_v31, %v8829_v19  ;;  %v6196_v39 = vpop.f32.mrb[157].mxu1  ;;  %v8115_v0 = vadd.f32 %v3589_v21, %v8831_v13 }
 0x412   : > { %v3269_v33 = vpop.f32.mrb[158].mxu1 }
 0x413   : > { %8832 = vst [vmem:[#allocation27_spill] sm:$0xff] %v8115_v0  ;;  %v8119_v54 = vadd.f32 %v3590_v43, %v8834_v24  ;;  %v3527_v8 = vmul.f32 %v6694_v11, %v3495_v55  ;;  %v3496_v18 = vsub.f32 %v3269_v33, %v8836_v30  ;;  %v6197_v17 = vpop.f32.mrb[159].mxu1  ;;  %v6841_v55 = vld [vmem:[%s6996_s9] sm:$0xff]  }
 0x415   : > { %8835 = vst [vmem:[#allocation19_spill] sm:$0xff] %v8119_v54  ;;  %v3559_v53 = vadd.f32 %v3527_v8, %v8829_v19  ;;  %v3528_v49 = vmul.f32 %v6696_v5, %v3496_v18  ;;  %v3639_v29 = vpack.c.bf16 %v8119_v54, %v8115_v0 }
 0x417   : > { %v3591_v40 = vmax.f32 %v3559_v53, 0.0  ;;  %v3560_v37 = vadd.f32 %v3528_v49, %v8836_v30  ;;  %5687 = vmatmul.mubr.msk.bf16.gmra.mrb[216].mxu0 %vm2198_vm2, %v3639_v29  ;;  %6234 = vmatprep.mubr.msk.bf16.mxu1 %vm2198_vm2, %v3639_v29  ;;  %v6842_v30 = vld [vmem:[%s6996_s9 + $0x8] sm:$0xff]  }
 0x418   : > { %3951 = vmatprep.mubr.bf16.mxu0 %v8690_v7 }
 0x419   : > { %v3592_v42 = vmax.f32 %v3560_v37, 0.0  ;;  %v8131_v52 = vadd.f32 %v3591_v40, %v8838_v20  ;;  %v6843_v40 = vld [vmem:[%s6996_s9 + $0x10] sm:$0xff]  }
 0x41b   : > { %8839 = vst [vmem:[#allocation20_spill] sm:$0xff] %v8131_v52  ;;  %v8135_v62 = vadd.f32 %v3592_v42, %v8841_v50 }
 0x41d   : > { %8842 = vst [vmem:[#allocation28_spill] sm:$0xff] %v8135_v62  ;;  %v3640_v16 = vpack.c.bf16 %v8135_v62, %v8131_v52  ;;  %v6847_v52 = vld [vmem:[%s6996_s9 + $0x30] sm:$0xff]  }
 0x41f   : > { %5688 = vmatmul.mubr.msk.bf16.gmra.mrb[220].mxu0 %vm2198_vm2, %v3640_v16  ;;  %6235 = vmatmul.mubr.msk.bf16.gmra.mrb[188].mxu1 %vm2198_vm2, %v3640_v16 }
 0x420   : > { %6240 = vmatprep.mubr.msk.bf16.mxu1 %vm6867_vm0, %v8843_v36  ;;  %6288 = vmatprep.mubr.msk.bf16.mxu0 %vm6867_vm0, %v8843_v36 }
 0x47a   : > { %v3803_v7 = vpop.f32.mrb[160].mxu0 }
 0x47b   : > { %v8145_v48 = vpop.f32.mrb[161].mxu0 }
 0x47c   : > { %v3807_v21 = vpop.f32.mrb[162].mxu0 }
 0x47d   : > { %v4123_v26 = vpack.c.bf16 %v3807_v21, %v3803_v7  ;;  %v8147_v31 = vpop.f32.mrb[163].mxu0  ;;  %v6844_v21 = vld [vmem:[%s6996_s9 + $0x18] sm:$0xff]  }
 0x47f   : > { %6239 = vmatpush3.bf16.msra.mxu1 %v4123_v26 }
 0x480   : > { %6244 = vmatprep.subr.bf16.mxu1 %v8843_v36 }
 0x482   : > { %v3813_v43 = vpop.f32.mrb[164].mxu0  ;;  %v8150_v19 = vpop.f32.mrb[160].mxu1  ;;  %6241 = vmatmul.mubr.msk.bf16.vlgmr.msra.gmra.mrb[192].mxu1 %vm1002_vm1, %v6841_v55 }
 0x483   : > { %v8154_v39 = vpop.f32.mrb[165].mxu0  ;;  %v8156_v11 = vpop.f32.mrb[161].mxu1  ;;  %6246 = vmatprep.mubr.msk.bf16.mxu1 %vm6867_vm0, %v8843_v36 }
 0x484   : > { %v3817_v33 = vpop.f32.mrb[166].mxu0  ;;  %v8160_v59 = vpop.f32.mrb[162].mxu1 }
 0x485   : > { %v4124_v13 = vpack.c.bf16 %v3817_v33, %v3813_v43  ;;  %v8162_v2 = vpop.f32.mrb[167].mxu0  ;;  %v8164_v24 = vpop.f32.mrb[163].mxu1 }
 0x487   : > { %6245 = vmatpush3.bf16.msra.mxu1 %v4124_v13 }
 0x488   : > { %6250 = vmatprep.subr.bf16.mxu1 %v8843_v36 }
 0x48a   : > { %v3823_v8 = vpop.f32.mrb[168].mxu0  ;;  %6247 = vmatmul.mubr.msk.bf16.vlgmr.msra.gmra.mrb[196].mxu1 %vm1002_vm1, %v6842_v30  ;;  %v6845_v30 = vld [vmem:[%s6996_s9 + $0x20] sm:$0xff]  }
 0x48b   : > { %v8169_v18 = vpop.f32.mrb[169].mxu0  ;;  %6252 = vmatprep.mubr.msk.bf16.mxu1 %vm6867_vm0, %v8843_v36 }
 0x48c   : > { %v3827_v17 = vpop.f32.mrb[170].mxu0 }
 0x48d   : > { %v4125_v5 = vpack.c.bf16 %v3827_v17, %v3823_v8  ;;  %v8173_v53 = vpop.f32.mrb[171].mxu0 }
 0x48f   : > { %6251 = vmatpush3.bf16.msra.mxu1 %v4125_v5 }
 0x490   : > { %6256 = vmatprep.subr.bf16.mxu1 %v8843_v36 }
 0x492   : > { %v3833_v49 = vpop.f32.mrb[172].mxu0  ;;  %v8176_v29 = vpop.f32.mrb[164].mxu1  ;;  %6253 = vmatmul.mubr.msk.bf16.vlgmr.msra.gmra.mrb[200].mxu1 %vm1002_vm1, %v6843_v40 }
 0x493   : > { %v8180_v37 = vpop.f32.mrb[173].mxu0  ;;  %v8182_v42 = vpop.f32.mrb[165].mxu1  ;;  %6258 = vmatprep.mubr.msk.bf16.mxu1 %vm6867_vm0, %v8843_v36 }
 0x494   : > { %v3837_v28 = vpop.f32.mrb[174].mxu0  ;;  %v8186_v20 = vpop.f32.mrb[166].mxu1 }
 0x495   : > { %v4126_v47 = vpack.c.bf16 %v3837_v28, %v3833_v49  ;;  %v8188_v50 = vpop.f32.mrb[175].mxu0  ;;  %v8190_v16 = vpop.f32.mrb[167].mxu1 }
 0x497   : > { %6257 = vmatpush3.bf16.msra.mxu1 %v4126_v47 }
 0x498   : > { %6262 = vmatprep.subr.bf16.mxu1 %v8843_v36 }
 0x49a   : > { %v3843_v7 = vpop.f32.mrb[176].mxu0  ;;  %6259 = vmatmul.mubr.msk.bf16.vlgmr.msra.gmra.mrb[204].mxu1 %vm1002_vm1, %v6844_v21 }
 0x49b   : > { %v8195_v26 = vpop.f32.mrb[177].mxu0  ;;  %6264 = vmatprep.mubr.msk.bf16.mxu1 %vm6867_vm0, %v8843_v36 }
 0x49c   : > { %v3847_v43 = vpop.f32.mrb[178].mxu0 }
 0x49d   : > { %v4127_v55 = vpack.c.bf16 %v3847_v43, %v3843_v7  ;;  %v8199_v33 = vpop.f32.mrb[179].mxu0  ;;  %v6846_v43 = vld [vmem:[%s6996_s9 + $0x28] sm:$0xff]  }
 0x49f   : > { %6263 = vmatpush3.bf16.msra.mxu1 %v4127_v55 }
 0x4a0   : > { %6268 = vmatprep.subr.bf16.mxu1 %v8843_v36 }
 0x4a2   : > { %v3853_v13 = vpop.f32.mrb[180].mxu0  ;;  %v8202_v8 = vpop.f32.mrb[168].mxu1  ;;  %6265 = vmatmul.mubr.msk.bf16.vlgmr.msra.gmra.mrb[208].mxu1 %vm1002_vm1, %v6845_v30 }
 0x4a3   : > { %v8206_v17 = vpop.f32.mrb[181].mxu0  ;;  %v8208_v5 = vpop.f32.mrb[169].mxu1  ;;  %6270 = vmatprep.mubr.msk.bf16.mxu1 %vm6867_vm0, %v8843_v36 }
 0x4a4   : > { %v3857_v49 = vpop.f32.mrb[182].mxu0  ;;  %v8212_v40 = vpop.f32.mrb[170].mxu1 }
 0x4a5   : > { %v4128_v28 = vpack.c.bf16 %v3857_v49, %v3853_v13  ;;  %v8214_v47 = vpop.f32.mrb[183].mxu0  ;;  %v8216_v7 = vpop.f32.mrb[171].mxu1 }
 0x4a7   : > { %6269 = vmatpush3.bf16.msra.mxu1 %v4128_v28 }
 0x4a8   : > { %6274 = vmatprep.subr.bf16.mxu1 %v8843_v36 }
 0x4aa   : > { %v3863_v21 = vpop.f32.mrb[184].mxu0  ;;  %6271 = vmatmul.mubr.msk.bf16.vlgmr.msra.gmra.mrb[212].mxu1 %vm1002_vm1, %v6846_v43 }
 0x4ab   : > { %v8221_v55 = vpop.f32.mrb[185].mxu0  ;;  %6276 = vmatprep.mubr.msk.bf16.mxu1 %vm6867_vm0, %v8843_v36 }
 0x4ac   : > { %v3867_v30 = vpop.f32.mrb[186].mxu0 }
 0x4ad   : > { %v4129_v62 = vpack.c.bf16 %v3867_v30, %v3863_v21  ;;  %v8225_v13 = vpop.f32.mrb[187].mxu0 }
 0x4af   : > { %6275 = vmatpush3.bf16.msra.mxu1 %v4129_v62 }
 0x4b0   : > { %6280 = vmatprep.subr.bf16.mxu1 %v8843_v36 }
 0x4b2   : > { %v3873_v49 = vpop.f32.mrb[188].mxu0  ;;  %v8228_v28 = vpop.f32.mrb[172].mxu1  ;;  %6277 = vmatmul.mubr.msk.bf16.vlgmr.msra.gmra.mrb[216].mxu1 %vm1002_vm1, %v6847_v52 }
 0x4b3   : > { %v8232_v43 = vpop.f32.mrb[189].mxu0  ;;  %v8234_v54 = vpop.f32.mrb[173].mxu1  ;;  %6282 = vmatprep.mubr.msk.bf16.mxu1 %vm6867_vm0, %v8843_v36 }
 0x4b4   : > { %v3877_v21 = vpop.f32.mrb[190].mxu0  ;;  %v8238_v30 = vpop.f32.mrb[174].mxu1 }
 0x4b5   : > { %v4130_v62 = vpack.c.bf16 %v3877_v21, %v3873_v49  ;;  %v8240_v0 = vpop.f32.mrb[191].mxu0  ;;  %v8242_v12 = vpop.f32.mrb[175].mxu1 }
 0x4b6   : > { %8844 = vst [vmem:[#allocation46_spill] sm:$0xff] %v8240_v0 }
 0x4b7   : > { %6281 = vmatpush3.bf16.msra.mxu1 %v4130_v62 }
 0x4b8   : > { %6292 = vmatprep.subr.bf16.mxu1 %v8843_v36 }
 0x4ba   : > { %v3883_v52 = vpop.f32.mrb[192].mxu0  ;;  %6283 = vmatmul.mubr.msk.bf16.vlgmr.msra.gmra.mrb[220].mxu1 %vm1002_vm1, %v6848_v58 }
 0x4bb   : > { %v8247_v22 = vpop.f32.mrb[193].mxu0  ;;  %6294 = vmatprep.mubr.msk.bf16.mxu1 %vm6867_vm0, %v8843_v36 }
 0x4bc   : > { %8845 = vst [vmem:[#allocation29_spill] sm:$0xff] %v8247_v22  ;;  %v3887_v38 = vpop.f32.mrb[194].mxu0 }
 0x4bd   : > { %v4131_v6 = vpack.c.bf16 %v3887_v38, %v3883_v52  ;;  %v8251_v49 = vpop.f32.mrb[195].mxu0 }
 0x4be   : > { %8846 = vst [vmem:[#allocation42_spill] sm:$0xff] %v8251_v49 }
 0x4bf   : > { %6287 = vmatpush3.bf16.msra.mxu0 %v4131_v6 }
 0x4c0   : > { %6298 = vmatprep.subr.bf16.mxu0 %v8843_v36 }
 0x4c2   : > { %v3893_v21 = vpop.f32.mrb[196].mxu0  ;;  %v8254_v62 = vpop.f32.mrb[176].mxu1  ;;  %6289 = vmatmul.mubr.msk.bf16.vlgmr.msra.gmra.mrb[224].mxu0 %vm1002_vm1, %v6849_v32 }
 0x4c3   : > { %v8258_v58 = vpop.f32.mrb[197].mxu0  ;;  %v8260_v34 = vpop.f32.mrb[177].mxu1  ;;  %6300 = vmatprep.mubr.msk.bf16.mxu0 %vm6867_vm0, %v8843_v36 }
 0x4c4   : > { %8847 = vst [vmem:[#allocation21_spill] sm:$0xff] %v8258_v58  ;;  %v3897_v38 = vpop.f32.mrb[198].mxu0  ;;  %v8264_v52 = vpop.f32.mrb[178].mxu1 }
 0x4c5   : > { %v4132_v6 = vpack.c.bf16 %v3897_v38, %v3893_v21  ;;  %v8266_v60 = vpop.f32.mrb[199].mxu0  ;;  %v8268_v45 = vpop.f32.mrb[179].mxu1 }
 0x4c6   : > { %8848 = vst [vmem:[#allocation22_spill] sm:$0xff] %v8266_v60  ;;  %v6851_v60 = vld [vmem:[%s6996_s9 + $0x50] sm:$0xff]  }
 0x4c7   : > { %6293 = vmatpush3.bf16.msra.mxu1 %v4132_v6 }
 0x4c8   : > { %6304 = vmatprep.subr.bf16.mxu1 %v8843_v36 }
 0x4ca   : > { %v3903_v32 = vpop.f32.mrb[200].mxu0  ;;  %6295 = vmatmul.mubr.msk.bf16.vlgmr.msra.gmra.mrb[224].mxu1 %vm1002_vm1, %v6850_v27 }
 0x4cb   : > { %v8273_v57 = vpop.f32.mrb[201].mxu0  ;;  %6306 = vmatprep.mubr.msk.bf16.mxu1 %vm6867_vm0, %v8843_v36 }
 0x4cc   : > { %8849 = vst [vmem:[#allocation31_spill] sm:$0xff] %v8273_v57  ;;  %v3907_v58 = vpop.f32.mrb[202].mxu0 }
 0x4cd   : > { %v4133_v56 = vpack.c.bf16 %v3907_v58, %v3903_v32  ;;  %v8277_v21 = vpop.f32.mrb[203].mxu0 }
 0x4ce   : > { %8850 = vst [vmem:[#allocation44_spill] sm:$0xff] %v8277_v21 }
 0x4cf   : > { %6299 = vmatpush3.bf16.msra.mxu0 %v4133_v56 }
 0x4d0   : > { %6310 = vmatprep.subr.bf16.mxu0 %v8843_v36 }
 0x4d2   : > { %v3913_v38 = vpop.f32.mrb[204].mxu0  ;;  %v8280_v6 = vpop.f32.mrb[180].mxu1  ;;  %6301 = vmatmul.mubr.msk.bf16.vlgmr.msra.gmra.mrb[228].mxu0 %vm1002_vm1, %v6851_v60 }
 0x4d3   : > { %v8284_v27 = vpop.f32.mrb[205].mxu0  ;;  %v8286_v57 = vpop.f32.mrb[181].mxu1  ;;  %6312 = vmatprep.mubr.msk.bf16.mxu0 %vm6867_vm0, %v8843_v36 }
 0x4d4   : > { %8851 = vst [vmem:[#allocation32_spill] sm:$0xff] %v8284_v27  ;;  %v3917_v58 = vpop.f32.mrb[206].mxu0  ;;  %v8290_v32 = vpop.f32.mrb[182].mxu1 }
 0x4d5   : > { %8852 = vst [vmem:[#allocation5_spill] sm:$0xff] %v8290_v32  ;;  %v4134_v56 = vpack.c.bf16 %v3917_v58, %v3913_v38  ;;  %v8292_v21 = vpop.f32.mrb[207].mxu0  ;;  %v8294_v49 = vpop.f32.mrb[183].mxu1 }
 0x4d6   : > { %8853 = vst [vmem:[#allocation3_spill] sm:$0xff] %v8292_v21  ;;  %v6853_v21 = vld [vmem:[%s6996_s9 + $0x60] sm:$0xff]  }
 0x4d7   : > { %6305 = vmatpush3.bf16.msra.mxu1 %v4134_v56 }
 0x4d8   : > { %6316 = vmatprep.subr.bf16.mxu1 %v8843_v36 }
 0x4da   : > { %v3923_v60 = vpop.f32.mrb[208].mxu0  ;;  %6307 = vmatmul.mubr.msk.bf16.vlgmr.msra.gmra.mrb[228].mxu1 %vm1002_vm1, %v6852_v46 }
 0x4db   : > { %v8299_v27 = vpop.f32.mrb[209].mxu0  ;;  %6318 = vmatprep.mubr.msk.bf16.mxu1 %vm6867_vm0, %v8843_v36 }
 0x4dc   : > { %8854 = vst [vmem:[#allocation33_spill] sm:$0xff] %v8299_v27  ;;  %v3927_v22 = vpop.f32.mrb[210].mxu0 }
 0x4dd   : > { %v4135_v15 = vpack.c.bf16 %v3927_v22, %v3923_v60  ;;  %v8303_v38 = vpop.f32.mrb[211].mxu0 }
 0x4de   : > { %8855 = vst [vmem:[#allocation35_spill] sm:$0xff] %v8303_v38 }
 0x4df   : > { %6311 = vmatpush3.bf16.msra.mxu0 %v4135_v15 }
 0x4e0   : > { %6322 = vmatprep.subr.bf16.mxu0 %v8843_v36 }
 0x4e2   : > { %v3933_v58 = vpop.f32.mrb[212].mxu0  ;;  %v8306_v56 = vpop.f32.mrb[184].mxu1  ;;  %6313 = vmatmul.mubr.msk.bf16.vlgmr.msra.gmra.mrb[232].mxu0 %vm1002_vm1, %v6853_v21 }
 0x4e3   : > { %8856 = vst [vmem:[#allocation6_spill] sm:$0xff] %v8306_v56  ;;  %v8310_v46 = vpop.f32.mrb[213].mxu0  ;;  %v8312_v27 = vpop.f32.mrb[185].mxu1  ;;  %6324 = vmatprep.mubr.msk.bf16.mxu0 %vm6867_vm0, %v8843_v36  ;;  %v6854_v56 = vld [vmem:[%s6996_s9 + $0x68] sm:$0xff]  }
 0x4e4   : > { %8857 = vst [vmem:[#allocation4_spill] sm:$0xff] %v8310_v46  ;;  %8858 = vst [vmem:[#allocation38_spill] sm:$0xff] %v8312_v27  ;;  %v3937_v22 = vpop.f32.mrb[214].mxu0  ;;  %v8316_v60 = vpop.f32.mrb[186].mxu1 }
 0x4e5   : > { %8859 = vst [vmem:[#allocation40_spill] sm:$0xff] %v8316_v60  ;;  %v4136_v15 = vpack.c.bf16 %v3937_v22, %v3933_v58  ;;  %v8318_v38 = vpop.f32.mrb[215].mxu0  ;;  %v8320_v32 = vpop.f32.mrb[187].mxu1 }
 0x4e6   : > { %8860 = vst [vmem:[#allocation7_spill] sm:$0xff] %v8318_v38  ;;  %8861 = vst [vmem:[#allocation8_spill] sm:$0xff] %v8320_v32 }
 0x4e7   : > { %6317 = vmatpush3.bf16.msra.mxu1 %v4136_v15  ;;  %v6855_v15 = vld [vmem:[%s6996_s9 + $0x70] sm:$0xff]  }
 0x4e8   : > { %6328 = vmatprep.subr.bf16.mxu1 %v8843_v36 }
 0x4ea   : > { %v3943_v21 = vpop.f32.mrb[216].mxu0  ;;  %6319 = vmatmul.mubr.msk.bf16.vlgmr.msra.gmra.mrb[232].mxu1 %vm1002_vm1, %v6854_v56 }
 0x4eb   : > { %v8325_v46 = vpop.f32.mrb[217].mxu0  ;;  %6330 = vmatprep.mubr.msk.bf16.mxu1 %vm6867_vm0, %v8843_v36 }
 0x4ec   : > { %8862 = vst [vmem:[#allocation41_spill] sm:$0xff] %v8325_v46  ;;  %v3947_v27 = vpop.f32.mrb[218].mxu0 }
 0x4ed   : > { %v4137_v58 = vpack.c.bf16 %v3947_v27, %v3943_v21  ;;  %v8329_v22 = vpop.f32.mrb[219].mxu0  ;;  %v6856_v21 = vld [vmem:[%s6996_s9 + $0x78] sm:$0xff]  }
 0x4ee   : > { %8863 = vst [vmem:[#allocation43_spill] sm:$0xff] %v8329_v22  ;;  %v5724_v22 = vmul.f32 -1.442695, %v8160_v59  ;;  %v5728_v59 = vmul.f32 -1.442695, %v8186_v20 }
 0x4ef   : > { %6323 = vmatpush3.bf16.msra.mxu0 %v4137_v58  ;;  %v5721_v58 = vmul.f32 -1.442695, %v8156_v11 }
 0x4f1   : > { %6697 = vpow2.f32 %v5721_v58 }
 0x4f2   : > { %v3953_v38 = vpop.f32.mrb[220].mxu0  ;;  %v8331_v60 = vpop.f32.mrb[188].mxu1  ;;  %6325 = vmatmul.mubr.msk.bf16.vlgmr.msra.gmra.mrb[236].mxu0 %vm1002_vm1, %v6855_v15  ;;  %v5722_v15 = vmul.f32 -1.442695, %v8164_v24 }
 0x4f3   : > { %v8335_v32 = vpop.f32.mrb[221].mxu0  ;;  %v8337_v56 = vpop.f32.mrb[189].mxu1 }
 0x4f4   : > { %8864 = vst [vmem:[#allocation9_spill] sm:$0xff] %v8335_v32  ;;  %v3957_v46 = vpop.f32.mrb[222].mxu0  ;;  %v8339_v0 = vpop.f32.mrb[190].mxu1  ;;  %6699 = vpow2.f32 %v5722_v15  ;;  %v5723_v32 = vmul.f32 -1.442695, %v8150_v19 }
 0x4f5   : > { %8865 = vst [vmem:[#allocation10_spill] sm:$0xff] %v8339_v0  ;;  %v4138_v36 = vpack.c.bf16 %v3957_v46, %v3953_v38  ;;  %v8341_v41 = vpop.f32.mrb[223].mxu0  ;;  %v8343_v27 = vpop.f32.mrb[191].mxu1  ;;  %v5726_v0 = vmul.f32 -1.442695, %v8190_v16 }
 0x4f6   : > { %8866 = vst [vmem:[#allocation45_spill] sm:$0xff] %v8341_v41  ;;  %6701 = vpow2.f32 %v5723_v32  ;;  %v5725_v41 = vmul.f32 -1.442695, %v8182_v42  ;;  %v5727_v19 = vmul.f32 -1.442695, %v8176_v29 }
 0x4f7   : > { %6329 = vmatpush3.bf16.msra.mxu1 %v4138_v36  ;;  %6703 = vpow2.f32 %v5724_v22 }
 0x4f8   : > { %6705 = vpow2.f32 %v5725_v41 }
 0x4fa   : > { %6331 = vmatmul.mubr.msk.bf16.vlgmr.msra.gmra.mrb[236].mxu1 %vm1002_vm1, %v6856_v21 }
 0x4fb   : > { %v6698_v38 = vpop.eup %6697 }
 0x4fc   : > { %v4891_v36 = vadd.f32 1.0, %v6698_v38 }
 0x4fe   : > { %v6700_v46 = vpop.eup %6699  ;;  %6707 = vrcp.f32 %v4891_v36 }
 0x4ff   : > { %v4892_v21 = vadd.f32 1.0, %v6700_v46  ;;  %6709 = vpow2.f32 %v5726_v0  ;;  %v5729_v46 = vmul.f32 -1.442695, %v8208_v5 }
 0x500   : > { %v6702_v11 = vpop.eup %6701 }
 0x501   : > { %6711 = vrcp.f32 %v4892_v21  ;;  %v6704_v24 = vpop.eup %6703  ;;  %v4893_v58 = vadd.f32 1.0, %v6702_v11 }
 0x502   : > { %v4894_v32 = vadd.f32 1.0, %v6704_v24  ;;  %6713 = vpow2.f32 %v5727_v19  ;;  %v6706_v42 = vpop.eup %6705  ;;  %v5730_v24 = vmul.f32 -1.442695, %v8216_v7 }
 0x503   : > { %6715 = vrcp.f32 %v4893_v58  ;;  %v4895_v11 = vadd.f32 1.0, %v6706_v42 }
 0x504   : > { %6717 = vpow2.f32 %v5728_v59 }
 0x505   : > { %6719 = vrcp.f32 %v4894_v32 }
 0x506   : > { %6721 = vpow2.f32 %v5729_v46 }
 0x507   : > { %6723 = vrcp.f32 %v4895_v11 }
 0x508   : > { %v6708_v41 = vpop.eup %6707  ;;  %6725 = vpow2.f32 %v5730_v24 }
 0x509   : > { %v6710_v0 = vpop.eup %6709 }
 0x50a   : > { %v4896_v59 = vadd.f32 1.0, %v6710_v0 }
 0x50b   : > { %v6712_v20 = vpop.eup %6711 }
 0x50c   : > { %6727 = vrcp.f32 %v4896_v59 }
 0x555   : > { %v4173_v22 = vpop.f32.mrb[192].mxu1 }
 0x556   : > { %v4987_v16 = vsub.f32 %v4173_v22, %v8145_v48  ;;  %v6242_v15 = vpop.f32.mrb[193].mxu1 }
 0x557   : > { %v4176_v38 = vpop.f32.mrb[194].mxu1  ;;  %v5731_v15 = vmul.f32 -1.442695, %v8202_v8 }
 0x558   : > { %v5019_v36 = vmul.f32 %v6708_v41, %v4987_v16  ;;  %v4988_v29 = vsub.f32 %v4176_v38, %v8147_v31  ;;  %v6243_v21 = vpop.f32.mrb[195].mxu1  ;;  %v6714_v16 = vpop.eup %6713 }
 0x559   : > { %v6716_v21 = vpop.eup %6715  ;;  %v4897_v11 = vadd.f32 1.0, %v6714_v16  ;;  %6729 = vpow2.f32 %v5731_v15 }
 0x55a   : > { %v5051_v19 = vadd.f32 %v5019_v36, %v8145_v48  ;;  %v5020_v58 = vmul.f32 %v6712_v20, %v4988_v29  ;;  %v5732_v48 = vmul.f32 -1.442695, %v8212_v40  ;;  %v6718_v46 = vpop.eup %6717 }
 0x55b   : > { %v6720_v20 = vpop.eup %6719  ;;  %v4898_v59 = vadd.f32 1.0, %v6718_v46 }
 0x55c   : > { %v5083_v22 = vmax.f32 %v5051_v19, 0.0  ;;  %v5052_v32 = vadd.f32 %v5020_v58, %v8147_v31  ;;  %6731 = vpow2.f32 %v5732_v48 }
 0x55d   : > { %v4214_v5 = vpop.f32.mrb[196].mxu1  ;;  %6733 = vrcp.f32 %v4897_v11 }
 0x55e   : > { %v5115_v41 = vadd.f32 %v5083_v22, %v7856_v10  ;;  %v5084_v38 = vmax.f32 %v5052_v32, 0.0  ;;  %v4989_v42 = vsub.f32 %v4214_v5, %v8154_v39  ;;  %v6248_v7 = vpop.f32.mrb[197].mxu1  ;;  %v5733_v22 = vmul.f32 -1.442695, %v8234_v54 }
 0x55f   : > { %v4217_v0 = vpop.f32.mrb[198].mxu1  ;;  %v5734_v5 = vmul.f32 -1.442695, %v8242_v12  ;;  %6735 = vrcp.f32 %v4898_v59 }
 0x560   : > { %v5116_v31 = vadd.f32 %v5084_v38, %v7860_v51  ;;  %v5021_v36 = vmul.f32 %v6716_v21, %v4989_v42  ;;  %v4990_v8 = vsub.f32 %v4217_v0, %v8162_v2  ;;  %v6249_v29 = vpop.f32.mrb[199].mxu1  ;;  %v5147_v10 = vsel %vm2198_vm2, %v5115_v41, 0.0  ;;  %v6722_v38 = vpop.eup %6721 }
 0x561   : > { %v6724_v21 = vpop.eup %6723  ;;  %6737 = vpow2.f32 %v5733_v22  ;;  %v5735_v22 = vmul.f32 -1.442695, %v8228_v28 }
 0x562   : > { %v5148_v24 = vsel %vm2198_vm2, %v5116_v31, 0.0  ;;  %v5053_v19 = vadd.f32 %v5021_v36, %v8154_v39  ;;  %v5022_v58 = vmul.f32 %v6720_v20, %v4990_v8  ;;  %v6726_v54 = vpop.eup %6725  ;;  %v4899_v8 = vadd.f32 1.0, %v6722_v38 }
 0x563   : > { %v5149_v40 = vadd.f32 %v5148_v24, %v5147_v10  ;;  %v6728_v36 = vpop.eup %6727  ;;  %6739 = vpow2.f32 %v5734_v5  ;;  %v4900_v24 = vadd.f32 1.0, %v6726_v54 }
 0x564   : > { %v5085_v51 = vmax.f32 %v5053_v19, 0.0  ;;  %v5054_v32 = vadd.f32 %v5022_v58, %v8162_v2  ;;  %v6730_v10 = vpop.eup %6729  ;;  %6741 = vrcp.f32 %v4899_v8 }
 0x565   : > { %v5150_v16 = vrot.slane %v5149_v40, 4  ;;  %v4255_v15 = vpop.f32.mrb[200].mxu1  ;;  %6743 = vrcp.f32 %v4900_v24 }
 0x566   : > { %v5117_v41 = vadd.f32 %v5085_v51, %v7875_v25  ;;  %v5086_v42 = vmax.f32 %v5054_v32, 0.0  ;;  %v4991_v39 = vsub.f32 %v4255_v15, %v8169_v18  ;;  %v6254_v7 = vpop.f32.mrb[201].mxu1  ;;  %6745 = vpow2.f32 %v5735_v22 }
 0x567   : > { %v5151_v48 = vadd.f32 %v5150_v16, %v5149_v40  ;;  %v4258_v0 = vpop.f32.mrb[202].mxu1  ;;  %v6732_v40 = vpop.eup %6731 }
 0x568   : > { %v5118_v2 = vadd.f32 %v5086_v42, %v7879_v14  ;;  %v5023_v46 = vmul.f32 %v6724_v21, %v4991_v39  ;;  %v4992_v12 = vsub.f32 %v4258_v0, %v8173_v53  ;;  %v6255_v31 = vpop.f32.mrb[203].mxu1  ;;  %v5156_v25 = vsel %vm2198_vm2, %v5117_v41, 0.0  ;;  %v6734_v38 = vpop.eup %6733 }
 0x569   : > { %v5152_v19 = vrot.slane %v5151_v48, 2  ;;  %v4901_v41 = vadd.f32 1.0, %v6730_v10  ;;  %v4902_v21 = vadd.f32 1.0, %v6732_v40 }
 0x56a   : > { %v5157_v29 = vsel %vm2198_vm2, %v5118_v2, 0.0  ;;  %v5055_v20 = vadd.f32 %v5023_v46, %v8169_v18  ;;  %v5024_v11 = vmul.f32 %v6728_v36, %v4992_v12  ;;  %v6736_v2 = vpop.eup %6735 }
 0x56b   : > { %v5158_v58 = vadd.f32 %v5157_v29, %v5156_v25  ;;  %v5153_v42 = vadd.f32 %v5152_v19, %v5151_v48  ;;  %v6738_v12 = vpop.eup %6737  ;;  %6747 = vrcp.f32 %v4901_v41 }
 0x56c   : > { %v5087_v59 = vmax.f32 %v5055_v20, 0.0  ;;  %v5056_v14 = vadd.f32 %v5024_v11, %v8173_v53  ;;  %6749 = vrcp.f32 %v4902_v21 }
 0x56d   : > { %v5159_v51 = vrot.slane %v5158_v58, 4  ;;  %v4296_v32 = vpop.f32.mrb[204].mxu1  ;;  %v6740_v25 = vpop.eup %6739 }
 0x56e   : > { %v5119_v5 = vadd.f32 %v5087_v59, %v7894_v23  ;;  %v5088_v16 = vmax.f32 %v5056_v14, 0.0  ;;  %v4993_v15 = vsub.f32 %v4296_v32, %v8180_v37  ;;  %v6260_v18 = vpop.f32.mrb[205].mxu1  ;;  %v5736_v23 = vmul.f32 -1.442695, %v8238_v30 }
 0x56f   : > { %v5160_v39 = vadd.f32 %v5159_v51, %v5158_v58  ;;  %v4299_v7 = vpop.f32.mrb[206].mxu1  ;;  %v5737_v30 = vmul.f32 -1.442695, %v8260_v34  ;;  %v4903_v59 = vadd.f32 1.0, %v6738_v12  ;;  %v6742_v51 = vpop.eup %6741  ;;  %v4904_v32 = vadd.f32 1.0, %v6740_v25 }
 0x570   : > { %v5120_v53 = vadd.f32 %v5088_v16, %v7898_v9  ;;  %v5025_v0 = vmul.f32 %v6734_v38, %v4993_v15  ;;  %v4994_v28 = vsub.f32 %v4299_v7, %v8188_v50  ;;  %v6261_v54 = vpop.f32.mrb[207].mxu1  ;;  %v5165_v31 = vsel %vm2198_vm2, %v5119_v5, 0.0  ;;  %v8398_v34 = vld [vmem:[%s8557_s5] ss:$0 sm:$0xff]  ;;  %v6744_v7 = vpop.eup %6743 }
 0x571   : > { %v5161_v46 = vrot.slane %v5160_v39, 2  ;;  %v5154_v9 = vrot.slane %v5153_v42, 1  ;;  %6751 = vpow2.f32 %v5736_v23  ;;  %v6746_v54 = vpop.eup %6745  ;;  %v5739_v12 = vmul.f32 -1.442695, %v8254_v62 }
 0x572   : > { %v5166_v36 = vsel %vm2198_vm2, %v5120_v53, 0.0  ;;  %v5057_v48 = vadd.f32 %v5025_v0, %v8180_v37  ;;  %v5026_v8 = vmul.f32 %v6736_v2, %v4994_v28  ;;  %6753 = vpow2.f32 %v5737_v30 }
 0x573   : > { %v5162_v29 = vadd.f32 %v5161_v46, %v5160_v39  ;;  %v5167_v20 = vadd.f32 %v5166_v36, %v5165_v31  ;;  %v5155_v5 = vadd.f32 %v5154_v9, %v5153_v42  ;;  %6755 = vrcp.f32 %v4903_v59 }
 0x574   : > { %v5089_v11 = vmax.f32 %v5057_v48, 0.0  ;;  %v5058_v10 = vadd.f32 %v5026_v8, %v8188_v50  ;;  %v5738_v50 = vmul.f32 -1.442695, %v8268_v45  ;;  %v4905_v62 = vadd.f32 1.0, %v6746_v54 }
 0x575   : > { %v5163_v24 = vrot.slane %v5162_v29, 1  ;;  %v5168_v19 = vrot.slane %v5167_v20, 4  ;;  %v4337_v58 = vpop.f32.mrb[208].mxu1  ;;  %v6748_v48 = vpop.eup %6747  ;;  %v5740_v59 = vmul.f32 -1.442695, %v8264_v52 }
 0x576   : > { %v5121_v14 = vadd.f32 %v5089_v11, %v7913_v63  ;;  %v5090_v37 = vmax.f32 %v5058_v10, 0.0  ;;  %v4995_v40 = vsub.f32 %v4337_v58, %v8195_v26  ;;  %v6266_v22 = vpop.f32.mrb[209].mxu1  ;;  %6757 = vpow2.f32 %v5738_v50 }
 0x577   : > { %v5164_v16 = vadd.f32 %v5163_v24, %v5162_v29  ;;  %v5169_v15 = vadd.f32 %v5168_v19, %v5167_v20  ;;  %v4340_v18 = vpop.f32.mrb[210].mxu1  ;;  %6759 = vrcp.f32 %v4904_v32 }
 0x578   : > { %v5122_v38 = vadd.f32 %v5090_v37, %v7917_v44  ;;  %v5027_v63 = vmul.f32 %v6742_v51, %v4995_v40  ;;  %v4996_v41 = vsub.f32 %v4340_v18, %v8199_v33  ;;  %v6267_v39 = vpop.f32.mrb[211].mxu1  ;;  %v5174_v53 = vsel %vm2198_vm2, %v5121_v14, 0.0 }
 0x579   : > { %v5299_v42 = vmul.f32 %v8398_v34, %v5164_v16  ;;  %v5170_v21 = vrot.slane %v5169_v15, 2  ;;  %v5298_v44 = vmul.f32 %v8398_v34, %v5155_v5  ;;  %6761 = vpow2.f32 %v5739_v12 }
 0x57a   : > { %v5175_v45 = vsel %vm2198_vm2, %v5122_v38, 0.0  ;;  %v5059_v0 = vadd.f32 %v5027_v63, %v8195_v26  ;;  %v5028_v28 = vmul.f32 %v6744_v7, %v4996_v41  ;;  %v6750_v26 = vpop.eup %6749  ;;  %6763 = vrcp.f32 %v4905_v62 }
 0x57b   : > { %v5330_v2 = vrot.slane %v5299_v42, 7  ;;  %v5171_v23 = vadd.f32 %v5170_v21, %v5169_v15  ;;  %v5176_v46 = vadd.f32 %v5175_v45, %v5174_v53  ;;  %v6752_v24 = vpop.eup %6751  ;;  %v5741_v39 = vmul.f32 -1.442695, %v8286_v57 }
 0x57c   : > { %v5091_v31 = vmax.f32 %v5059_v0, 0.0  ;;  %v5060_v36 = vadd.f32 %v5028_v28, %v8199_v33  ;;  %v6754_v18 = vpop.eup %6753  ;;  %v4906_v52 = vadd.f32 1.0, %v6752_v24  ;;  %6765 = vpow2.f32 %v5740_v59 }
 0x57d   : > { %v5172_v8 = vrot.slane %v5171_v23, 1  ;;  %v5177_v25 = vrot.slane %v5176_v46, 4  ;;  %v4378_v9 = vpop.f32.mrb[212].mxu1  ;;  %v5332_v29 = vsel %vm5331_vm3, %v5330_v2, %v5298_v44  ;;  %v6756_v54 = vpop.eup %6755  ;;  %v4907_v44 = vadd.f32 1.0, %v6754_v18 }
 0x57e   : > { %v5123_v20 = vadd.f32 %v5091_v31, %v7932_v35  ;;  %v5092_v11 = vmax.f32 %v5060_v36, 0.0  ;;  %v4997_v10 = vsub.f32 %v4378_v9, %v8206_v17  ;;  %v6272_v30 = vpop.f32.mrb[213].mxu1  ;;  %6767 = vrcp.f32 %v4906_v52  ;;  %v8868_v52 = vld [vmem:[#allocation46_spill] sm:$0xff] }
 0x57f   : > { %v5173_v19 = vadd.f32 %v5172_v8, %v5171_v23  ;;  %v5178_v33 = vadd.f32 %v5177_v25, %v5176_v46  ;;  %v4381_v58 = vpop.f32.mrb[214].mxu1  ;;  %v5742_v57 = vmul.f32 -1.442695, %v8294_v49  ;;  %6769 = vpow2.f32 %v5741_v39 }
 0x580   : > { %v5124_v14 = vadd.f32 %v5092_v11, %v7936_v4  ;;  %v5029_v37 = vmul.f32 %v6748_v48, %v4997_v10  ;;  %v4998_v40 = vsub.f32 %v4381_v58, %v8214_v47  ;;  %v6273_v22 = vpop.f32.mrb[215].mxu1  ;;  %v5183_v5 = vsel %vm2198_vm2, %v5123_v20, 0.0  ;;  %v6758_v46 = vpop.eup %6757 }
 0x581   : > { %v5179_v35 = vrot.slane %v5178_v33, 2  ;;  %v5300_v51 = vmul.f32 %v8398_v34, %v5173_v19  ;;  %v4908_v11 = vadd.f32 1.0, %v6758_v46  ;;  %v5743_v24 = vmul.f32 -1.442695, %v8280_v6 }
 0x582   : > { %v5184_v32 = vsel %vm2198_vm2, %v5124_v14, 0.0  ;;  %v5061_v16 = vadd.f32 %v5029_v37, %v8206_v17  ;;  %v5030_v15 = vmul.f32 %v6750_v26, %v4998_v40  ;;  %6771 = vrcp.f32 %v4907_v44 }
 0x583   : > { %v5180_v50 = vadd.f32 %v5179_v35, %v5178_v33  ;;  %v5185_v4 = vadd.f32 %v5184_v32, %v5183_v5  ;;  %v5333_v38 = vrot.slane %v5300_v51, 6  ;;  %6773 = vpow2.f32 %v5742_v57 }
 0x584   : > { %v5093_v63 = vmax.f32 %v5061_v16, 0.0  ;;  %v5062_v41 = vadd.f32 %v5030_v15, %v8214_v47  ;;  %6775 = vrcp.f32 %v4908_v11  ;;  %v8867_v16 = vld [vmem:[#allocation14_spill] sm:$0xff] }
 0x585   : > { %v5181_v7 = vrot.slane %v5180_v50, 1  ;;  %v5186_v42 = vrot.slane %v5185_v4, 4  ;;  %v4419_v21 = vpop.f32.mrb[216].mxu1  ;;  %v5335_v53 = vsel %vm5334_vm4, %v5333_v38, %v5332_v29  ;;  %6777 = vpow2.f32 %v5743_v24 }
 0x586   : > { %v5125_v17 = vadd.f32 %v5093_v63, %v7951_v1  ;;  %v5094_v45 = vmax.f32 %v5062_v41, 0.0  ;;  %v4999_v0 = vsub.f32 %v4419_v21, %v8221_v55  ;;  %v6278_v28 = vpop.f32.mrb[217].mxu1  ;;  %v6760_v1 = vpop.eup %6759  ;;  %v8869_v63 = vld [vmem:[#allocation5_spill] sm:$0xff] }
 0x587   : > { %v5182_v2 = vadd.f32 %v5181_v7, %v5180_v50  ;;  %v5187_v23 = vadd.f32 %v5186_v42, %v5185_v4  ;;  %v4422_v47 = vpop.f32.mrb[218].mxu1  ;;  %v6762_v49 = vpop.eup %6761 }
 0x588   : > { %v5126_v12 = vadd.f32 %v5094_v45, %v7955_v61  ;;  %v5031_v31 = vmul.f32 %v6756_v54, %v4999_v0  ;;  %v5000_v36 = vsub.f32 %v4422_v47, %v8225_v13  ;;  %v6279_v48 = vpop.f32.mrb[219].mxu1  ;;  %v5192_v9 = vsel %vm2198_vm2, %v5125_v17, 0.0  ;;  %v6764_v37 = vpop.eup %6763 }
 0x589   : > { %v5188_v8 = vrot.slane %v5187_v23, 2  ;;  %v5301_v25 = vmul.f32 %v8398_v34, %v5182_v2  ;;  %v4909_v51 = vadd.f32 1.0, %v6762_v49 }
 0x58a   : > { %v5193_v29 = vsel %vm2198_vm2, %v5126_v12, 0.0  ;;  %v5063_v26 = vadd.f32 %v5031_v31, %v8221_v55  ;;  %v5032_v20 = vmul.f32 %v6760_v1, %v5000_v36  ;;  %v8871_v36 = vld [vmem:[#allocation13_spill] sm:$0xff] }
 0x58b   : > { %v5189_v61 = vadd.f32 %v5188_v8, %v5187_v23  ;;  %v5194_v10 = vadd.f32 %v5193_v29, %v5192_v9  ;;  %v5336_v30 = vrot.slane %v5301_v25, 5  ;;  %6779 = vrcp.f32 %v4909_v51  ;;  %v8870_v23 = vld [vmem:[#allocation38_spill] sm:$0xff]  ;;  %v8872_v1 = vld [vmem:[#allocation29_spill] sm:$0xff] }
 0x58c   : > { %v5095_v62 = vmax.f32 %v5063_v26, 0.0  ;;  %v5064_v19 = vadd.f32 %v5032_v20, %v8225_v13  ;;  %v6766_v13 = vpop.eup %6765  ;;  %v5745_v47 = vmul.f32 -1.442695, %v8870_v23 }
 0x58d   : > { %v5190_v33 = vrot.slane %v5189_v61, 1  ;;  %v5195_v58 = vrot.slane %v5194_v10, 4  ;;  %v4460_v59 = vpop.f32.mrb[220].mxu1  ;;  %v5338_v14 = vsel %vm5337_vm5, %v5336_v30, %v5335_v53  ;;  %v6768_v38 = vpop.eup %6767  ;;  %v4910_v45 = vadd.f32 1.0, %v6766_v13  ;;  %v8874_v30 = vld [vmem:[#allocation30_spill] sm:$0xff] }
 0x58e   : > { %v5127_v55 = vadd.f32 %v5095_v62, %v7970_v3  ;;  %v5096_v40 = vmax.f32 %v5064_v19, 0.0  ;;  %v5001_v22 = vsub.f32 %v4460_v59, %v8232_v43  ;;  %v6284_v35 = vpop.f32.mrb[221].mxu1  ;;  %v5744_v3 = vmul.f32 -1.442695, %v8869_v63  ;;  %v6770_v17 = vpop.eup %6769  ;;  %v8875_v19 = vld [vmem:[#allocation42_spill] sm:$0xff]  ;;  %v8876_v63 = vld [vmem:[#allocation23_spill] sm:$0xff] }
 0x58f   : > { %v5196_v6 = vadd.f32 %v5195_v58, %v5194_v10  ;;  %v4463_v5 = vpop.f32.mrb[222].mxu1  ;;  %v5191_v32 = vadd.f32 %v5190_v33, %v5189_v61  ;;  %v6772_v9 = vpop.eup %6771  ;;  %v4911_v29 = vadd.f32 1.0, %v6770_v17  ;;  %v8873_v61 = vld [vmem:[#allocation8_spill] sm:$0xff] }
 0x590   : > { %v5128_v15 = vadd.f32 %v5096_v40, %v8867_v16  ;;  %v5033_v18 = vmul.f32 %v6764_v37, %v5001_v22  ;;  %v5002_v50 = vsub.f32 %v4463_v5, %v8868_v52  ;;  %v6285_v4 = vpop.f32.mrb[223].mxu1  ;;  %v5201_v7 = vsel %vm2198_vm2, %v5127_v55, 0.0  ;;  %v6774_v11 = vpop.eup %6773 }
 0x591   : > { %v5197_v41 = vrot.slane %v5196_v6, 2  ;;  %v5302_v39 = vmul.f32 %v8398_v34, %v5191_v32  ;;  %6781 = vpow2.f32 %v5744_v3  ;;  %v5746_v10 = vmul.f32 -1.442695, %v8873_v61  ;;  %v6776_v59 = vpop.eup %6775 }
 0x592   : > { %v5202_v42 = vsel %vm2198_vm2, %v5128_v15, 0.0  ;;  %v5065_v21 = vadd.f32 %v5033_v18, %v8232_v43  ;;  %v5034_v53 = vmul.f32 %v6768_v38, %v5002_v50  ;;  %6783 = vrcp.f32 %v4910_v45  ;;  %v6778_v55 = vpop.eup %6777 }
 0x593   : > { %v5198_v0 = vadd.f32 %v5197_v41, %v5196_v6  ;;  %v5203_v28 = vadd.f32 %v5202_v42, %v5201_v7  ;;  %v5339_v54 = vrot.slane %v5302_v39, 4  ;;  %6785 = vpow2.f32 %v5745_v47  ;;  %v8877_v39 = vld [vmem:[#allocation21_spill] sm:$0xff]  ;;  %v8880_v47 = vld [vmem:[#allocation22_spill] sm:$0xff] }
 0x594   : > { %v5097_v44 = vmax.f32 %v5065_v21, 0.0  ;;  %v5066_v2 = vadd.f32 %v5034_v53, %v8868_v52  ;;  %v4912_v6 = vadd.f32 1.0, %v6774_v11  ;;  %6787 = vpow2.f32 %v5746_v10 }
 0x595   : > { %v5204_v46 = vrot.slane %v5203_v28, 4  ;;  %v4501_v57 = vpop.f32.mrb[224].mxu0  ;;  %v5199_v12 = vrot.slane %v5198_v0, 1  ;;  %v5341_v31 = vsel %vm5340_vm6, %v5339_v54, %v5338_v14  ;;  %6789 = vrcp.f32 %v4911_v29  ;;  %v6780_v38 = vpop.eup %6779 }
 0x596   : > { %v5129_v43 = vadd.f32 %v5097_v44, %v8871_v36  ;;  %v5098_v48 = vmax.f32 %v5066_v2, 0.0  ;;  %v5003_v8 = vsub.f32 %v4501_v57, %v8872_v1  ;;  %v6290_v25 = vpop.f32.mrb[225].mxu0  ;;  %v4913_v21 = vadd.f32 1.0, %v6778_v55  ;;  %v8879_v44 = vld [vmem:[#allocation36_spill] sm:$0xff] }
 0x597   : > { %v5205_v26 = vadd.f32 %v5204_v46, %v5203_v28  ;;  %v4504_v20 = vpop.f32.mrb[226].mxu0  ;;  %v5200_v49 = vadd.f32 %v5199_v12, %v5198_v0  ;;  %6791 = vrcp.f32 %v4912_v6  ;;  %v8878_v28 = vld [vmem:[#allocation6_spill] sm:$0xff] }
 0x598   : > { %v5130_v24 = vadd.f32 %v5098_v48, %v8874_v30  ;;  %v5035_v62 = vmul.f32 %v6772_v9, %v5003_v8  ;;  %v5004_v33 = vsub.f32 %v4504_v20, %v8875_v19  ;;  %v6291_v58 = vpop.f32.mrb[227].mxu0  ;;  %v5210_v40 = vsel %vm2198_vm2, %v5129_v43, 0.0 }
 0x599   : > { %v5206_v14 = vrot.slane %v5205_v26, 2  ;;  %v5303_v37 = vmul.f32 %v8398_v34, %v5200_v49  ;;  %v5747_v54 = vmul.f32 -1.442695, %v8878_v28  ;;  %v8882_v58 = vld [vmem:[#allocation15_spill] sm:$0xff] }
 0x59a   : > { %v5211_v22 = vsel %vm2198_vm2, %v5130_v24, 0.0  ;;  %v5067_v35 = vadd.f32 %v5035_v62, %v8872_v1  ;;  %v5036_v51 = vmul.f32 %v6776_v59, %v5004_v33 }
 0x59b   : > { %v5212_v5 = vadd.f32 %v5211_v22, %v5210_v40  ;;  %v5207_v32 = vadd.f32 %v5206_v14, %v5205_v26  ;;  %v5342_v13 = vrot.slane %v5303_v37, 3  ;;  %v6782_v0 = vpop.eup %6781  ;;  %6793 = vpow2.f32 %v5747_v54  ;;  %v8883_v37 = vld [vmem:[#allocation31_spill] sm:$0xff] }
 0x59c   : > { %v5099_v16 = vmax.f32 %v5067_v35, 0.0  ;;  %v5068_v15 = vadd.f32 %v5036_v51, %v8875_v19  ;;  %v6784_v12 = vpop.eup %6783  ;;  %v4914_v26 = vadd.f32 1.0, %v6782_v0  ;;  %6795 = vrcp.f32 %v4913_v21 }
 0x59d   : > { %v5213_v18 = vrot.slane %v5212_v5, 4  ;;  %v4542_v52 = vpop.f32.mrb[224].mxu1  ;;  %v5208_v50 = vrot.slane %v5207_v32, 1  ;;  %v5344_v4 = vsel %vm5343_vm7, %v5342_v13, %v5341_v31  ;;  %v8881_v31 = vld [vmem:[#allocation40_spill] sm:$0xff]  ;;  %v6786_v29 = vpop.eup %6785  ;;  %v5749_v35 = vmul.f32 -1.442695, %v8337_v56 }
 0x59e   : > { %v5131_v3 = vadd.f32 %v5099_v16, %v8876_v63  ;;  %v5100_v41 = vmax.f32 %v5068_v15, 0.0  ;;  %v5005_v7 = vsub.f32 %v4542_v52, %v8877_v39  ;;  %v6296_v42 = vpop.f32.mrb[225].mxu1  ;;  %v5748_v36 = vmul.f32 -1.442695, %v8881_v31  ;;  %v6788_v33 = vpop.eup %6787  ;;  %v8884_v13 = vld [vmem:[#allocation16_spill] sm:$0xff] }
 0x59f   : > { %v4545_v53 = vpop.f32.mrb[226].mxu1  ;;  %v5209_v17 = vadd.f32 %v5208_v50, %v5207_v32  ;;  %v5214_v45 = vadd.f32 %v5213_v18, %v5212_v5  ;;  %v6790_v22 = vpop.eup %6789  ;;  %v5750_v32 = vmul.f32 -1.442695, %v8343_v27  ;;  %v8885_v18 = vld [vmem:[#allocation44_spill] sm:$0xff]  ;;  %v4916_v63 = vadd.f32 1.0, %v6788_v33 }
 0x5a0   : > { %v5132_v2 = vadd.f32 %v5100_v41, %v8879_v44  ;;  %v5037_v23 = vmul.f32 %v6780_v38, %v5005_v7  ;;  %v5006_v46 = vsub.f32 %v4545_v53, %v8880_v47  ;;  %v6297_v57 = vpop.f32.mrb[227].mxu1  ;;  %v5219_v1 = vsel %vm2198_vm2, %v5131_v3, 0.0  ;;  %v8886_v44 = vld [vmem:[#allocation24_spill] sm:$0xff] }
 0x5a1   : > { %v5215_v43 = vrot.slane %v5214_v45, 2  ;;  %v5304_v48 = vmul.f32 %v8398_v34, %v5209_v17  ;;  %6797 = vpow2.f32 %v5748_v36  ;;  %v4915_v38 = vadd.f32 1.0, %v6786_v29 }
 0x5a2   : > { %v5220_v8 = vsel %vm2198_vm2, %v5132_v2, 0.0  ;;  %v5069_v25 = vadd.f32 %v5037_v23, %v8877_v39  ;;  %v5038_v9 = vmul.f32 %v6784_v12, %v5006_v46  ;;  %6799 = vrcp.f32 %v4914_v26  ;;  %v8889_v26 = vld [vmem:[#allocation3_spill] sm:$0xff] }
 0x5a3   : > { %v5221_v20 = vadd.f32 %v5220_v8, %v5219_v1  ;;  %v5216_v49 = vadd.f32 %v5215_v43, %v5214_v45  ;;  %v5345_v11 = vrot.slane %v5304_v48, 2  ;;  %6801 = vpow2.f32 %v5749_v35 }
 0x5a4   : > { %v5101_v61 = vmax.f32 %v5069_v25, 0.0  ;;  %v5070_v10 = vadd.f32 %v5038_v9, %v8880_v47  ;;  %6803 = vpow2.f32 %v5750_v32  ;;  %v8887_v47 = vld [vmem:[#allocation32_spill] sm:$0xff]  ;;  %v5751_v8 = vmul.f32 -1.442695, %v8331_v60  ;;  %v8888_v25 = vld [vmem:[#allocation39_spill] sm:$0xff]  ;;  %v8891_v32 = vld [vmem:[#allocation25_spill] sm:$0xff] }
 0x5a5   : > { %v5222_v30 = vrot.slane %v5221_v20, 4  ;;  %v4583_v24 = vpop.f32.mrb[228].mxu0  ;;  %v5217_v62 = vrot.slane %v5216_v49, 1  ;;  %v5347_v19 = vsel %vm5346_vm8, %v5345_v11, %v5344_v4  ;;  %v6792_v4 = vpop.eup %6791  ;;  %6805 = vrcp.f32 %v4915_v38 }
 0x5a6   : > { %v5133_v59 = vadd.f32 %v5101_v61, %v8882_v58  ;;  %v5102_v14 = vmax.f32 %v5070_v10, 0.0  ;;  %v5007_v55 = vsub.f32 %v4583_v24, %v8883_v37  ;;  %v6302_v40 = vpop.f32.mrb[229].mxu0  ;;  %v6794_v54 = vpop.eup %6793  ;;  %6807 = vrcp.f32 %v4916_v63  ;;  %v8890_v10 = vld [vmem:[#allocation10_spill] sm:$0xff] }
 0x5a7   : > { %v5223_v51 = vadd.f32 %v5222_v30, %v5221_v20  ;;  %v4586_v6 = vpop.f32.mrb[230].mxu0  ;;  %v5218_v5 = vadd.f32 %v5217_v62, %v5216_v49  ;;  %v6796_v31 = vpop.eup %6795  ;;  %v4917_v61 = vadd.f32 1.0, %v6794_v54  ;;  %v5752_v30 = vmul.f32 -1.442695, %v8890_v10 }
 0x5a8   : > { %v5134_v16 = vadd.f32 %v5102_v14, %v8884_v13  ;;  %v5039_v15 = vmul.f32 %v6790_v22, %v5007_v55  ;;  %v5008_v52 = vsub.f32 %v4586_v6, %v8885_v18  ;;  %v6303_v50 = vpop.f32.mrb[231].mxu0  ;;  %v5228_v41 = vsel %vm2198_vm2, %v5133_v59, 0.0 }
 0x5a9   : > { %v5305_v3 = vmul.f32 %v8398_v34, %v5218_v5  ;;  %v5224_v27 = vrot.slane %v5223_v51, 2  ;;  %6809 = vpow2.f32 %v5751_v8 }
 0x5aa   : > { %v5229_v56 = vsel %vm2198_vm2, %v5134_v16, 0.0  ;;  %v5071_v39 = vadd.f32 %v5039_v15, %v8883_v37  ;;  %v5040_v7 = vmul.f32 %v6792_v4, %v5008_v52  ;;  %6811 = vrcp.f32 %v4917_v61  ;;  %v8892_v15 = vld [vmem:[#allocation33_spill] sm:$0xff] }
 0x5ab   : > { %v5230_v42 = vadd.f32 %v5229_v56, %v5228_v41  ;;  %v5348_v21 = vrot.slane %v5305_v3, 1  ;;  %v5225_v36 = vadd.f32 %v5224_v27, %v5223_v51  ;;  %v6798_v1 = vpop.eup %6797  ;;  %6813 = vpow2.f32 %v5752_v30  ;;  %v8893_v41 = vld [vmem:[#allocation34_spill] sm:$0xff] }
 0x5ac   : > { %v5103_v53 = vmax.f32 %v5071_v39, 0.0  ;;  %v5072_v17 = vadd.f32 %v5040_v7, %v8885_v18  ;;  %v6800_v11 = vpop.eup %6799  ;;  %v4918_v59 = vadd.f32 1.0, %v6798_v1  ;;  %v8894_v7 = vld [vmem:[#allocation35_spill] sm:$0xff] }
 0x5ad   : > { %v5231_v45 = vrot.slane %v5230_v42, 4  ;;  %v4624_v0 = vpop.f32.mrb[228].mxu1  ;;  %v5350_v28 = vsel %vm5349_vm9, %v5348_v21, %v5347_v19  ;;  %v5226_v60 = vrot.slane %v5225_v36, 1  ;;  %v6802_v22 = vpop.eup %6801 }
 0x5ae   : > { %v5135_v2 = vadd.f32 %v5103_v53, %v8886_v44  ;;  %v5104_v23 = vmax.f32 %v5072_v17, 0.0  ;;  %v5009_v46 = vsub.f32 %v4624_v0, %v8887_v47  ;;  %v6308_v57 = vpop.f32.mrb[229].mxu1  ;;  %v5367_v12 = vsel %vm2198_vm2, %v5350_v28, 0.0  ;;  %v6804_v5 = vpop.eup %6803 }
 0x5af   : > { %v5232_v43 = vadd.f32 %v5231_v45, %v5230_v42  ;;  %5368 = vadd.xlane.f32.xlu0 %v5367_v12  ;;  %v4627_v48 = vpop.f32.mrb[230].mxu1  ;;  %v6806_v50 = vpop.eup %6805  ;;  %6815 = vrcp.f32 %v4918_v59  ;;  %v5227_v4 = vadd.f32 %v5226_v60, %v5225_v36  ;;  %v4919_v53 = vadd.f32 1.0, %v6802_v22 }
 0x5b0   : > { %v5136_v9 = vadd.f32 %v5104_v23, %v8888_v25  ;;  %v5041_v29 = vmul.f32 %v6796_v31, %v5009_v46  ;;  %v5010_v20 = vsub.f32 %v4627_v48, %v8889_v26  ;;  %v6309_v49 = vpop.f32.mrb[231].mxu1  ;;  %v5237_v62 = vsel %vm2198_vm2, %v5135_v2, 0.0  ;;  %v6808_v21 = vpop.eup %6807  ;;  %v8895_v25 = vld [vmem:[#allocation17_spill] sm:$0xff] }
 0x5b1   : > { %v5233_v24 = vrot.slane %v5232_v43, 2  ;;  %v4920_v17 = vadd.f32 1.0, %v6804_v5  ;;  %v5306_v23 = vmul.f32 %v8398_v34, %v5227_v4  ;;  %6817 = vrcp.f32 %v4919_v53 }
 0x5b2   : > { %v5238_v19 = vsel %vm2198_vm2, %v5136_v9, 0.0  ;;  %v5073_v33 = vadd.f32 %v5041_v29, %v8887_v47  ;;  %v5042_v58 = vmul.f32 %v6800_v11, %v5010_v20 }
 0x5b3   : > { %v5234_v14 = vadd.f32 %v5233_v24, %v5232_v43  ;;  %v5239_v37 = vadd.f32 %v5238_v19, %v5237_v62  ;;  %v6810_v8 = vpop.eup %6809  ;;  %6819 = vrcp.f32 %v4920_v17  ;;  %v8897_v62 = vld [vmem:[#allocation18_spill] sm:$0xff]  ;;  %v8901_v17 = vld [vmem:[#allocation37_spill] sm:$0xff] }
 0x5b4   : > { %v5105_v55 = vmax.f32 %v5073_v33, 0.0  ;;  %v5074_v40 = vadd.f32 %v5042_v58, %v8889_v26  ;;  %v8896_v26 = vld [vmem:[#allocation4_spill] sm:$0xff]  ;;  %v6812_v11 = vpop.eup %6811  ;;  %v8898_v58 = vld [vmem:[#allocation7_spill] sm:$0xff] }
 0x5b5   : > { %v5235_v35 = vrot.slane %v5234_v14, 1  ;;  %v5240_v51 = vrot.slane %v5239_v37, 4  ;;  %v4665_v6 = vpop.f32.mrb[232].mxu0  ;;  %v6814_v24 = vpop.eup %6813 }
 0x5b6   : > { %v5137_v13 = vadd.f32 %v5105_v55, %v8891_v32  ;;  %v5106_v16 = vmax.f32 %v5074_v40, 0.0  ;;  %v5011_v18 = vsub.f32 %v4665_v6, %v8892_v15  ;;  %v6314_v52 = vpop.f32.mrb[233].mxu0  ;;  %v4922_v5 = vadd.f32 1.0, %v6814_v24 }
 0x5b7   : > { %v5236_v38 = vadd.f32 %v5235_v35, %v5234_v14  ;;  %v5241_v63 = vadd.f32 %v5240_v51, %v5239_v37  ;;  %v4668_v3 = vpop.f32.mrb[234].mxu0  ;;  %v4921_v37 = vadd.f32 1.0, %v6810_v8 }
 0x5b8   : > { %v5138_v56 = vadd.f32 %v5106_v16, %v8893_v41  ;;  %v5043_v39 = vmul.f32 %v6806_v50, %v5011_v18  ;;  %v5012_v27 = vsub.f32 %v4668_v3, %v8894_v7  ;;  %v6315_v42 = vpop.f32.mrb[235].mxu0  ;;  %v5246_v28 = vsel %vm2198_vm2, %v5137_v13, 0.0 }
 0x5b9   : > { %v5307_v45 = vmul.f32 %v8398_v34, %v5236_v38  ;;  %v5242_v0 = vrot.slane %v5241_v63, 2  ;;  %v6816_v14 = vpop.eup %6815  ;;  %6821 = vrcp.f32 %v4921_v37 }
 0x5ba   : > { %v5247_v54 = vsel %vm2198_vm2, %v5138_v56, 0.0  ;;  %v5075_v44 = vadd.f32 %v5043_v39, %v8892_v15  ;;  %v5044_v2 = vmul.f32 %v6808_v21, %v5012_v27  ;;  %v8900_v56 = vld [vmem:[#allocation41_spill] sm:$0xff]  ;;  %6823 = vrcp.f32 %v4922_v5 }
 0x5bb   : > { %v5351_v47 = vrot.slane %v5307_v45, 7  ;;  %v5243_v46 = vadd.f32 %v5242_v0, %v5241_v63  ;;  %v5248_v57 = vadd.f32 %v5247_v54, %v5246_v28  ;;  %v8899_v63 = vld [vmem:[#allocation26_spill] sm:$0xff]  ;;  %v6818_v27 = vpop.eup %6817  ;;  %v8902_v28 = vld [vmem:[#allocation43_spill] sm:$0xff] }
 0x5bc   : > { %v5107_v12 = vmax.f32 %v5075_v44, 0.0  ;;  %v5076_v31 = vadd.f32 %v5044_v2, %v8894_v7 }
 0x5bd   : > { %v5244_v36 = vrot.slane %v5243_v46, 1  ;;  %v5249_v43 = vrot.slane %v5248_v57, 4  ;;  %v4706_v48 = vpop.f32.mrb[232].mxu1  ;;  %v5352_v1 = vsel %vm5331_vm3, %v5351_v47, %v5306_v23  ;;  %v6820_v2 = vpop.eup %6819 }
 0x5be   : > { %v5139_v9 = vadd.f32 %v5107_v12, %v8895_v25  ;;  %v5108_v29 = vmax.f32 %v5076_v31, 0.0  ;;  %v5013_v20 = vsub.f32 %v4706_v48, %v8896_v26  ;;  %v6320_v49 = vpop.f32.mrb[233].mxu1 }
 0x5bf   : > { %v5245_v61 = vadd.f32 %v5244_v36, %v5243_v46  ;;  %v5250_v10 = vadd.f32 %v5249_v43, %v5248_v57  ;;  %v4709_v30 = vpop.f32.mrb[234].mxu1 }
 0x5c0   : > { %v5140_v19 = vadd.f32 %v5108_v29, %v8897_v62  ;;  %v5045_v33 = vmul.f32 %v6812_v11, %v5013_v20  ;;  %v5014_v59 = vsub.f32 %v4709_v30, %v8898_v58  ;;  %v6321_v60 = vpop.f32.mrb[235].mxu1  ;;  %v5255_v22 = vsel %vm2198_vm2, %v5139_v9, 0.0  ;;  %v8903_v20 = vld [vmem:[#allocation27_spill] sm:$0xff] }
 0x5c1   : > { %v5251_v55 = vrot.slane %v5250_v10, 2  ;;  %v5308_v40 = vmul.f32 %v8398_v34, %v5245_v61  ;;  %v8904_v61 = vld [vmem:[#allocation9_spill] sm:$0xff] }
 0x5c2   : > { %v5256_v35 = vsel %vm2198_vm2, %v5140_v19, 0.0  ;;  %v5077_v51 = vadd.f32 %v5045_v33, %v8896_v26  ;;  %v5046_v6 = vmul.f32 %v6816_v14, %v5014_v59  ;;  %v8906_v14 = vld [vmem:[#allocation45_spill] sm:$0xff] }
 0x5c3   : > { %v5252_v32 = vadd.f32 %v5251_v55, %v5250_v10  ;;  %v5257_v13 = vadd.f32 %v5256_v35, %v5255_v22  ;;  %v5353_v16 = vrot.slane %v5308_v40, 6  ;;  %v6822_v24 = vpop.eup %6821 }
 0x5c4   : > { %v5109_v15 = vmax.f32 %v5077_v51, 0.0  ;;  %v5078_v18 = vadd.f32 %v5046_v6, %v8898_v58  ;;  %v8905_v58 = vld [vmem:[#allocation19_spill] sm:$0xff]  ;;  %v6824_v40 = vpop.eup %6823 }
 0x5c5   : > { %v5253_v52 = vrot.slane %v5252_v32, 1  ;;  %v5258_v50 = vrot.slane %v5257_v13, 4  ;;  %v4747_v4 = vpop.f32.mrb[236].mxu0  ;;  %v5354_v38 = vsel %vm5334_vm4, %v5353_v16, %v5352_v1 }
 0x5c6   : > { %v5141_v3 = vadd.f32 %v5109_v15, %v8899_v63  ;;  %v5110_v41 = vmax.f32 %v5078_v18, 0.0  ;;  %v5015_v39 = vsub.f32 %v4747_v4, %v8900_v56  ;;  %v6326_v7 = vpop.f32.mrb[237].mxu0  ;;  %v8907_v63 = vld [vmem:[#allocation20_spill] sm:$0xff] }
 0x5c7   : > { %v5254_v42 = vadd.f32 %v5253_v52, %v5252_v32  ;;  %v5259_v21 = vadd.f32 %v5258_v50, %v5257_v13  ;;  %v4750_v53 = vpop.f32.mrb[238].mxu0  ;;  %v8908_v7 = vld [vmem:[#allocation28_spill] sm:$0xff] }
 0x5c8   : > { %v5142_v45 = vadd.f32 %v5110_v41, %v8901_v17  ;;  %v5047_v0 = vmul.f32 %v6818_v27, %v5015_v39  ;;  %v5016_v54 = vsub.f32 %v4750_v53, %v8902_v28  ;;  %v6327_v44 = vpop.f32.mrb[239].mxu0  ;;  %v5264_v46 = vsel %vm2198_vm2, %v5141_v3, 0.0 }
 0x5c9   : > { %v5260_v23 = vrot.slane %v5259_v21, 2  ;;  %v5309_v47 = vmul.f32 %v8398_v34, %v5254_v42 }
 0x5ca   : > { %v5265_v57 = vsel %vm2198_vm2, %v5142_v45, 0.0  ;;  %v5079_v12 = vadd.f32 %v5047_v0, %v8900_v56  ;;  %v5048_v31 = vmul.f32 %v6820_v2, %v5016_v54 }
 0x5cb   : > { %v5261_v36 = vadd.f32 %v5260_v23, %v5259_v21  ;;  %v5266_v43 = vadd.f32 %v5265_v57, %v5264_v46  ;;  %v5355_v48 = vrot.slane %v5309_v47, 5 }
 0x5cc   : > { %v5111_v1 = vmax.f32 %v5079_v12, 0.0  ;;  %v5080_v8 = vadd.f32 %v5048_v31, %v8902_v28 }
 0x5cd   : > { %v5262_v25 = vrot.slane %v5261_v36, 1  ;;  %v5267_v9 = vrot.slane %v5266_v43, 4  ;;  %v4788_v29 = vpop.f32.mrb[236].mxu1  ;;  %v5356_v26 = vsel %vm5337_vm5, %v5355_v48, %v5354_v38 }
 0x5ce   : > { %v5143_v49 = vadd.f32 %v5111_v1, %v8903_v20  ;;  %v5112_v11 = vmax.f32 %v5080_v8, 0.0  ;;  %v5017_v10 = vsub.f32 %v4788_v29, %v8904_v61  ;;  %v6332_v30 = vpop.f32.mrb[237].mxu1  ;;  %v5379_v29 = vlaneseq }
 0x5cf   : > { %v5268_v62 = vadd.f32 %v5267_v9, %v5266_v43  ;;  %v4791_v19 = vpop.f32.mrb[238].mxu1  ;;  %v5263_v33 = vadd.f32 %v5262_v25, %v5261_v36 }
 0x5d0   : > { %v5144_v59 = vadd.f32 %v5112_v11, %v8905_v58  ;;  %v5049_v60 = vmul.f32 %v6822_v24, %v5017_v10  ;;  %v5018_v37 = vsub.f32 %v4791_v19, %v8906_v14  ;;  %v6333_v55 = vpop.f32.mrb[239].mxu1  ;;  %v5273_v51 = vsel %vm2198_vm2, %v5143_v49, 0.0 }
 0x5d1   : > { %v5269_v22 = vrot.slane %v5268_v62, 2  ;;  %v5310_v35 = vmul.f32 %v8398_v34, %v5263_v33  ;;  %v5382_v20 = vshrl.u32 %v5379_v29, 7  ;;  %v5374_v11 = vstv %s5373_s28 }
 0x5d2   : > { %v5274_v6 = vsel %vm2198_vm2, %v5144_v59, 0.0  ;;  %v5081_v5 = vadd.f32 %v5049_v60, %v8904_v61  ;;  %v5050_v32 = vmul.f32 %v6824_v40, %v5018_v37 }
 0x5d3   : > { %v5270_v13 = vadd.f32 %v5269_v22, %v5268_v62  ;;  %v5275_v16 = vadd.f32 %v5274_v6, %v5273_v51  ;;  %v5357_v15 = vrot.slane %v5310_v35, 4 }
 0x5d4   : > { %v5113_v18 = vmax.f32 %v5081_v5, 0.0  ;;  %v5082_v52 = vadd.f32 %v5050_v32, %v8906_v14 }
 0x5d5   : > { %v5276_v50 = vrot.slane %v5275_v16, 4  ;;  %v5271_v4 = vrot.slane %v5270_v13, 1  ;;  %v5358_v38 = vsel %vm5340_vm6, %v5357_v15, %v5356_v26  ;;  %v5380_v26 = vand.u32 127, %v5379_v29 }
 0x5d6   : > { %v5145_v3 = vadd.f32 %v5113_v18, %v8907_v63  ;;  %v5114_v41 = vmax.f32 %v5082_v52, 0.0 }
 0x5d7   : > { %v5277_v56 = vadd.f32 %v5276_v50, %v5275_v16  ;;  %v5272_v39 = vadd.f32 %v5271_v4, %v5270_v13  ;;  %v5385_v49 = vadd.s32 4294967288, %v5380_v26  ;;  %v5383_v10 = vsub.s32 %v5380_v26, %v5382_v20 }
 0x5d8   : > { %v5146_v27 = vadd.f32 %v5114_v41, %v8908_v7  ;;  %v5282_v53 = vsel %vm2198_vm2, %v5145_v3, 0.0 }
 0x5d9   : > { %v5278_v42 = vrot.slane %v5277_v56, 2  ;;  %v5311_v21 = vmul.f32 %v8398_v34, %v5272_v39  ;;  %v5388_v24 = vsub.s32 %v5385_v49, %v5382_v20 }
 0x5da   : > { %v5283_v17 = vsel %vm2198_vm2, %v5146_v27, 0.0 }
 0x5db   : > { %v5284_v45 = vadd.f32 %v5283_v17, %v5282_v53  ;;  %v5279_v0 = vadd.f32 %v5278_v42, %v5277_v56  ;;  %v5359_v28 = vrot.slane %v5311_v21, 3 }
 0x5dd   : > { %v5285_v54 = vrot.slane %v5284_v45, 4  ;;  %v5280_v44 = vrot.slane %v5279_v0, 1  ;;  %v5360_v2 = vsel %vm5343_vm7, %v5359_v28, %v5358_v38 }
 0x5df   : > { %v5286_v23 = vadd.f32 %v5285_v54, %v5284_v45  ;;  %v5281_v47 = vadd.f32 %v5280_v44, %v5279_v0 }
 0x5e1   : > { %v5287_v46 = vrot.slane %v5286_v23, 2  ;;  %v5312_v57 = vmul.f32 %v8398_v34, %v5281_v47 }
 0x5e3   : > { %v5288_v12 = vadd.f32 %v5287_v46, %v5286_v23  ;;  %v5361_v31 = vrot.slane %v5312_v57, 2 }
 0x5e5   : > { %v5289_v36 = vrot.slane %v5288_v12, 1  ;;  %v5362_v43 = vsel %vm5346_vm8, %v5361_v31, %v5360_v2 }
 0x5e7   : > { %v5290_v48 = vadd.f32 %v5289_v36, %v5288_v12 }
 0x5e9   : > { %v5313_v1 = vmul.f32 %v8398_v34, %v5290_v48 }
 0x5eb   : > { %v5363_v8 = vrot.slane %v5313_v1, 1 }
 0x5ed   : > { %v5364_v25 = vsel %vm5349_vm9, %v5363_v8, %v5362_v43 }
 0x5ee   : > { %v5370_v9 = vsel %vm2198_vm2, %v5364_v25, 0.0 }
 0x5ef   : > { %5371 = vadd.xlane.f32.xlu0 %v5370_v9 }
 0x63c   : > { %v5369_v61 = vpop.xlane.xlu0 %5368 }
 0x63d   : > { %v5375_v30 = vadd.f32 %v5374_v11, %v5369_v61 }
 0x63f   : > { %v5384_v19 = vrot.slane %v5375_v30, %v5383_v10 }
 0x67c   : > { %v5372_v62 = vpop.xlane.xlu0 %5371 }
 0x67d   : > { %v5376_v34 = vadd.f32 %v5374_v11, %v5372_v62 }
 0x67f   : > { %v5389_v33 = vrot.slane %v5376_v34, %v5388_v24 }
 0x681   : > { %v5391_v58 = vsel %vm5390_vm10, %v5389_v33, %v5384_v19 }
 0x682   : > { %5394 = vst.msk [vmem:[%s305_s8] sm:$0x1] %vm5393_vm11, %v5391_v58 }
 0x683 PF: > { %s18_s26 = sadd.s32 1, %s6863_s26  }
 0x684   : > { %p15_p5 = scmp.ge.s32.totalorder %s18_s26, 4  }
 0x686   :  { %17 = sbr.rel (!%p15_p5) target bundleno = 2 (0x2), region = 81 }

</bundles_post_ra>
